<compile_context>
chip_gen: v6e
topology: v6e:2x2x1
jax: 0.10.0
libtpu: 0.0.40
codegen_flags: <defaults>
</compile_context>

<pallas_src>
import functools

import jax
import jax.numpy as jnp
from jax.experimental import pallas as pl
from jax.experimental.pallas import tpu as pltpu

EMBED_DIM = 256      # embed_dim   (4096 in the original module)
HIDDEN_DIM = 512     # hidden_dim  (8192 in the original module)
NUM_HEADS = 2        # num_heads   (16 in the original module) -> head_dim = 128 (lane aligned)
LN_EPS = 1e-5        # nn.LayerNorm default eps


# ---------------------------------------------------------------------------
# in-kernel building blocks (operate on VMEM values)
# ---------------------------------------------------------------------------

def _layernorm(x, gamma, beta):
    """Per-row LayerNorm in f32 (PyTorch semantics: biased variance, eps=1e-5)."""
    mu = jnp.mean(x, axis=-1, keepdims=True)
    xc = x - mu
    var = jnp.mean(xc * xc, axis=-1, keepdims=True)
    return xc * jax.lax.rsqrt(var + LN_EPS) * gamma + beta


def _gelu(x):
    # TODO(synk): PyTorch nn.GELU defaults to exact erf GELU; tanh approximation
    # used here for guaranteed EUP lowering (per-element difference < 1e-3).
    c = jnp.float32(0.7978845608028654)  # sqrt(2/pi)
    return 0.5 * x * (1.0 + jnp.tanh(c * (x + 0.044715 * x * x * x)))


def _mha(q, kv, wq, bq, wk, bk, wv, bv, wo, bo, num_heads):
    """Unbatched nn.MultiheadAttention forward (eval: dropout = identity).

    q: (L_q, D) f32, kv: (L_kv, D) f32. Weights are (in, out)-layout bf16,
    biases (1, D) f32. Returns (L_q, D) f32.
    """
    D = q.shape[-1]
    hd = D // num_heads
    f32 = jnp.float32
    bf16 = jnp.bfloat16

    # Projections: bf16 operands on the MXU, f32 accumulation (K/V projections are
    # computed exactly once — kernel is not gridded over query rows).
    Q = jnp.dot(q.astype(bf16), wq, preferred_element_type=f32) + bq
    K = jnp.dot(kv.astype(bf16), wk, preferred_element_type=f32) + bk
    V = jnp.dot(kv.astype(bf16), wv, preferred_element_type=f32) + bv
    Qb, Kb, Vb = Q.astype(bf16), K.astype(bf16), V.astype(bf16)

    scale = 1.0 / (hd ** 0.5)
    acc = None
    # Static unroll over 2 heads (demo); head_dim = 128 -> every per-head slice is
    # lane-aligned, no (L, H, hd) reshape/transpose needed.
    # TODO(synk): at 16 heads (production) switch to lax.fori_loop + VMEM scratch
    # accumulator to bound live ranges / avoid vreg spills at large row tiles.
    for h in range(num_heads):
        sl = slice(h * hd, (h + 1) * hd)
        s = jax.lax.dot_general(
            Qb[:, sl], Kb[:, sl], (((1,), (1,)), ((), ())),
            preferred_element_type=f32) * scale                   # (L_q, L_kv) f32
        s = s - jnp.max(s, axis=-1, keepdims=True)
        p = jnp.exp(s)
        p = p * pl.reciprocal(jnp.sum(p, axis=-1, keepdims=True), approx=True)
        oh = jnp.dot(p.astype(bf16), Vb[:, sl],
                     preferred_element_type=f32)                  # (L_q, hd)
        # out_proj applied blockwise: concat_h(oh) @ Wo == sum_h oh @ Wo[h*hd:(h+1)*hd, :]
        contrib = jnp.dot(oh.astype(bf16), wo[sl, :], preferred_element_type=f32)
        acc = contrib if acc is None else acc + contrib
    return acc + bo


# ---------------------------------------------------------------------------
# fused kernel: both self-attn blocks + cross-attn + FFN + LayerNorms + score head
# ---------------------------------------------------------------------------

def expander_fused_kernel(
        concat_ref, remained_ref,
        # self_attn (concat stream) + norm1
        sa_wq, sa_bq, sa_wk, sa_bk, sa_wv, sa_bv, sa_wo, sa_bo, g1, b1,
        # self_attn_2 (remained stream) + norm3
        sb_wq, sb_bq, sb_wk, sb_bk, sb_wv, sb_bv, sb_wo, sb_bo, g3, b3,
        # cross_attn + norm2
        ca_wq, ca_bq, ca_wk, ca_bk, ca_wv, ca_bv, ca_wo, ca_bo, g2, b2,
        # ffn + norm4
        w1, fb1, w2, fb2, g4, b4,
        # score head
        ws, bs,
        score_ref):
    f32 = jnp.float32
    bf16 = jnp.bfloat16
    concat = concat_ref[...]            # (L_c, D) f32
    remained = remained_ref[...]        # (L_r, D) f32

    # x = norm1(self_attn(concat, concat, concat) + concat)
    x = _layernorm(
        _mha(concat, concat,
             sa_wq[...], sa_bq[...], sa_wk[...], sa_bk[...],
             sa_wv[...], sa_bv[...], sa_wo[...], sa_bo[...], NUM_HEADS) + concat,
        g1[...], b1[...])

    # r = norm3(self_attn_2(remained, remained, remained) + remained)
    r = _layernorm(
        _mha(remained, remained,
             sb_wq[...], sb_bq[...], sb_wk[...], sb_bk[...],
             sb_wv[...], sb_bv[...], sb_wo[...], sb_bo[...], NUM_HEADS) + remained,
        g3[...], b3[...])

    # h = norm2(cross_attn(r, x, x) + r)      (residual path stays f32, no HBM trip)
    h = _layernorm(
        _mha(r, x,
             ca_wq[...], ca_bq[...], ca_wk[...], ca_bk[...],
             ca_wv[...], ca_bv[...], ca_wo[...], ca_bo[...], NUM_HEADS) + r,
        g2[...], b2[...])

    # FFN: Linear -> GELU -> Linear  (bf16 MXU operands, f32 accumulation)
    f = jnp.dot(h.astype(bf16), w1[...], preferred_element_type=f32) + fb1[...]
    f = _gelu(f)
    f = jnp.dot(f.astype(bf16), w2[...], preferred_element_type=f32) + fb2[...]

    h2 = _layernorm(h + f, g4[...], b4[...])  # norm4

    # score_proj (out_features = 1), written LANE-DENSE as a (1, L_r) row:
    # contract the (1, D) weight with h2 (L_r, D) on the D axis -> (1, L_r), then sigmoid.
    z = jax.lax.dot_general(ws[...], h2, (((1,), (1,)), ((), ())),
                            preferred_element_type=f32) + bs[...]   # (1, L_r)
    score_ref[...] = 1.0 / (1.0 + jnp.exp(-z))


# ---------------------------------------------------------------------------
# module forward
# ---------------------------------------------------------------------------

def expander_forward(selected_patches, remained_patches, text_embed, params):
    f32 = jnp.float32
    # Concat done once at the XLA level — no in-kernel jnp.concatenate VMEM copy.
    concat = jnp.concatenate([selected_patches, text_embed], axis=0).astype(f32)
    remained = remained_patches.astype(f32)
    L_r = remained.shape[0]

    flat = (tuple(params["self_attn"]) + tuple(params["norm1"])
            + tuple(params["self_attn_2"]) + tuple(params["norm3"])
            + tuple(params["cross_attn"]) + tuple(params["norm2"])
            + tuple(params["ffn"]) + tuple(params["norm4"])
            + tuple(params["score_proj"]))
    args = (concat, remained) + flat

    scores = pl.pallas_call(
        expander_fused_kernel,
        out_shape=jax.ShapeDtypeStruct((1, L_r), jnp.float32),
        # Gridless call: every array is a single resident full-shape VMEM block.
        in_specs=[pl.BlockSpec(memory_space=pltpu.MemorySpace.VMEM) for _ in args],
        out_specs=pl.BlockSpec(memory_space=pltpu.MemorySpace.VMEM),
    )(*args)
    return scores[0]                     # (L_r,) f32, in (0, 1)


# ---------------------------------------------------------------------------
# parameters (already in kernel layout: weights pre-transposed to (in, out), bf16)
# From a PyTorch checkpoint:  wq = in_proj_weight[:D].T,  wo = out_proj.weight.T, etc.
# ---------------------------------------------------------------------------

def _init_mha(key, D):
    ks = jax.random.split(key, 8)
    s = 1.0 / jnp.sqrt(jnp.float32(D))
    w = lambda k: (s * jax.random.normal(k, (D, D), jnp.float32)).astype(jnp.bfloat16)
    b = lambda k: s * jax.random.normal(k, (1, D), jnp.float32)
    return (w(ks[0]), b(ks[1]),   # wq, bq
            w(ks[2]), b(ks[3]),   # wk, bk
            w(ks[4]), b(ks[5]),   # wv, bv
            w(ks[6]), b(ks[7]))   # wo, bo


def _init_ln(D):
    return (jnp.ones((1, D), jnp.float32), jnp.zeros((1, D), jnp.float32))


def init_params(key, D=EMBED_DIM, H=HIDDEN_DIM):
    k1, k2, k3, k4, k5, k6, k7, k8 = jax.random.split(key, 8)
    s_d = 1.0 / jnp.sqrt(jnp.float32(D))
    s_h = 1.0 / jnp.sqrt(jnp.float32(H))
    ffn = ((s_d * jax.random.normal(k4, (D, H), jnp.float32)).astype(jnp.bfloat16),
           s_d * jax.random.normal(k5, (1, H), jnp.float32),
           (s_h * jax.random.normal(k6, (H, D), jnp.float32)).astype(jnp.bfloat16),
           s_h * jax.random.normal(k7, (1, D), jnp.float32))
    score = (s_d * jax.random.normal(k8, (1, D), jnp.float32),   # score_proj weight (1, D)
             jnp.zeros((1, 1), jnp.float32))
    return {
        "self_attn": _init_mha(k1, D),
        "norm1": _init_ln(D),
        "self_attn_2": _init_mha(k2, D),
        "norm3": _init_ln(D),
        "cross_attn": _init_mha(k3, D),
        "norm2": _init_ln(D),
        "ffn": ffn,
        "norm4": _init_ln(D),
        "score_proj": score,
    }


# ---------------------------------------------------------------------------
# pure-JAX reference (f32) for a loose numerical sanity check
# ---------------------------------------------------------------------------

def _mha_ref(q, kv, wq, bq, wk, bk, wv, bv, wo, bo, num_heads):
    f32 = jnp.float32
    Q = q @ wq.astype(f32) + bq
    K = kv @ wk.astype(f32) + bk
    V = kv @ wv.astype(f32) + bv
    hd = q.shape[-1] // num_heads
    Qh = Q.reshape(-1, num_heads, hd).transpose(1, 0, 2)
    Kh = K.reshape(-1, num_heads, hd).transpose(1, 0, 2)
    Vh = V.reshape(-1, num_heads, hd).transpose(1, 0, 2)
    s = jnp.einsum("hqd,hkd->hqk", Qh, Kh) / jnp.sqrt(jnp.float32(hd))
    p = jax.nn.softmax(s, axis=-1)
    o = jnp.einsum("hqk,hkd->hqd", p, Vh).transpose(1, 0, 2).reshape(-1, num_heads * hd)
    return o @ wo.astype(f32) + bo


def expander_forward_ref(selected, remained, text, params):
    f32 = jnp.float32
    concat = jnp.concatenate([selected, text], axis=0).astype(f32)
    remained = remained.astype(f32)
    x = _layernorm(_mha_ref(concat, concat, *params["self_attn"], NUM_HEADS) + concat,
                   *params["norm1"])
    r = _layernorm(_mha_ref(remained, remained, *params["self_attn_2"], NUM_HEADS) + remained,
                   *params["norm3"])
    h = _layernorm(_mha_ref(r, x, *params["cross_attn"], NUM_HEADS) + r, *params["norm2"])
    w1, b1, w2, b2 = params["ffn"]
    f = _gelu(h @ w1.astype(f32) + b1) @ w2.astype(f32) + b2
    h2 = _layernorm(h + f, *params["norm4"])
    ws, bs = params["score_proj"]
    z = jnp.sum(h2 * ws, axis=-1) + bs[0, 0]
    return 1.0 / (1.0 + jnp.exp(-z))


if __name__ == "__main__":
    key = jax.random.PRNGKey(0)
    k_sel, k_rem, k_txt, k_p = jax.random.split(key, 4)

    L_sel, L_txt, L_rem = 16, 8, 16          # concat length 24 (multiple of 8 sublanes)
    selected = jax.random.normal(k_sel, (L_sel, EMBED_DIM), jnp.float32)
    remained = jax.random.normal(k_rem, (L_rem, EMBED_DIM), jnp.float32)
    text = jax.random.normal(k_txt, (L_txt, EMBED_DIM), jnp.float32)
    params = init_params(k_p)

    fwd = jax.jit(expander_forward)
    scores = jax.block_until_ready(fwd(selected, remained, text, params))

    assert scores.shape == (L_rem,)
    assert bool(jnp.all(jnp.isfinite(scores)))
    assert bool(jnp.all((scores >= 0.0) & (scores <= 1.0)))

    ref = expander_forward_ref(selected, remained, text, params)
    assert bool(jnp.max(jnp.abs(scores - ref)) < 0.05), "kernel deviates from f32 reference"

    print("KERNEL_OK")
</pallas_src>

<mosaic_0001>
module attributes {stable_mosaic.version = 11 : i64} {
  func.func @expander_fused_kernel(%arg0: memref<24x256xf32, #tpu.memory_space<vmem>>, %arg1: memref<16x256xf32, #tpu.memory_space<vmem>>, %arg2: memref<256x256xbf16, #tpu.memory_space<vmem>>, %arg3: memref<1x256xf32, #tpu.memory_space<vmem>>, %arg4: memref<256x256xbf16, #tpu.memory_space<vmem>>, %arg5: memref<1x256xf32, #tpu.memory_space<vmem>>, %arg6: memref<256x256xbf16, #tpu.memory_space<vmem>>, %arg7: memref<1x256xf32, #tpu.memory_space<vmem>>, %arg8: memref<256x256xbf16, #tpu.memory_space<vmem>>, %arg9: memref<1x256xf32, #tpu.memory_space<vmem>>, %arg10: memref<1x256xf32, #tpu.memory_space<vmem>>, %arg11: memref<1x256xf32, #tpu.memory_space<vmem>>, %arg12: memref<256x256xbf16, #tpu.memory_space<vmem>>, %arg13: memref<1x256xf32, #tpu.memory_space<vmem>>, %arg14: memref<256x256xbf16, #tpu.memory_space<vmem>>, %arg15: memref<1x256xf32, #tpu.memory_space<vmem>>, %arg16: memref<256x256xbf16, #tpu.memory_space<vmem>>, %arg17: memref<1x256xf32, #tpu.memory_space<vmem>>, %arg18: memref<256x256xbf16, #tpu.memory_space<vmem>>, %arg19: memref<1x256xf32, #tpu.memory_space<vmem>>, %arg20: memref<1x256xf32, #tpu.memory_space<vmem>>, %arg21: memref<1x256xf32, #tpu.memory_space<vmem>>, %arg22: memref<256x256xbf16, #tpu.memory_space<vmem>>, %arg23: memref<1x256xf32, #tpu.memory_space<vmem>>, %arg24: memref<256x256xbf16, #tpu.memory_space<vmem>>, %arg25: memref<1x256xf32, #tpu.memory_space<vmem>>, %arg26: memref<256x256xbf16, #tpu.memory_space<vmem>>, %arg27: memref<1x256xf32, #tpu.memory_space<vmem>>, %arg28: memref<256x256xbf16, #tpu.memory_space<vmem>>, %arg29: memref<1x256xf32, #tpu.memory_space<vmem>>, %arg30: memref<1x256xf32, #tpu.memory_space<vmem>>, %arg31: memref<1x256xf32, #tpu.memory_space<vmem>>, %arg32: memref<256x512xbf16, #tpu.memory_space<vmem>>, %arg33: memref<1x512xf32, #tpu.memory_space<vmem>>, %arg34: memref<512x256xbf16, #tpu.memory_space<vmem>>, %arg35: memref<1x256xf32, #tpu.memory_space<vmem>>, %arg36: memref<1x256xf32, #tpu.memory_space<vmem>>, %arg37: memref<1x256xf32, #tpu.memory_space<vmem>>, %arg38: memref<1x256xf32, #tpu.memory_space<vmem>>, %arg39: memref<1x1xf32, #tpu.memory_space<vmem>>, %arg40: memref<1x16xf32, #tpu.memory_space<vmem>>) attributes {dimension_semantics = [], scalar_prefetch = 0 : i64, scratch_operands = 0 : i64, tpu.core_type = #tpu.core_type<tc>} {
    %c0 = arith.constant 0 : index
    %c0_0 = arith.constant 0 : index
    %0 = vector.load %arg0[%c0, %c0_0] : memref<24x256xf32, #tpu.memory_space<vmem>>, vector<24x256xf32>
    %c0_1 = arith.constant 0 : index
    %c0_2 = arith.constant 0 : index
    %1 = vector.load %arg1[%c0_1, %c0_2] : memref<16x256xf32, #tpu.memory_space<vmem>>, vector<16x256xf32>
    %c0_3 = arith.constant 0 : index
    %c0_4 = arith.constant 0 : index
    %2 = vector.load %arg2[%c0_3, %c0_4] : memref<256x256xbf16, #tpu.memory_space<vmem>>, vector<256x256xbf16>
    %c0_5 = arith.constant 0 : index
    %c0_6 = arith.constant 0 : index
    %3 = vector.load %arg3[%c0_5, %c0_6] : memref<1x256xf32, #tpu.memory_space<vmem>>, vector<1x256xf32>
    %c0_7 = arith.constant 0 : index
    %c0_8 = arith.constant 0 : index
    %4 = vector.load %arg4[%c0_7, %c0_8] : memref<256x256xbf16, #tpu.memory_space<vmem>>, vector<256x256xbf16>
    %c0_9 = arith.constant 0 : index
    %c0_10 = arith.constant 0 : index
    %5 = vector.load %arg5[%c0_9, %c0_10] : memref<1x256xf32, #tpu.memory_space<vmem>>, vector<1x256xf32>
    %c0_11 = arith.constant 0 : index
    %c0_12 = arith.constant 0 : index
    %6 = vector.load %arg6[%c0_11, %c0_12] : memref<256x256xbf16, #tpu.memory_space<vmem>>, vector<256x256xbf16>
    %c0_13 = arith.constant 0 : index
    %c0_14 = arith.constant 0 : index
    %7 = vector.load %arg7[%c0_13, %c0_14] : memref<1x256xf32, #tpu.memory_space<vmem>>, vector<1x256xf32>
    %c0_15 = arith.constant 0 : index
    %c0_16 = arith.constant 0 : index
    %8 = vector.load %arg8[%c0_15, %c0_16] : memref<256x256xbf16, #tpu.memory_space<vmem>>, vector<256x256xbf16>
    %c0_17 = arith.constant 0 : index
    %c0_18 = arith.constant 0 : index
    %9 = vector.load %arg9[%c0_17, %c0_18] : memref<1x256xf32, #tpu.memory_space<vmem>>, vector<1x256xf32>
    %10 = arith.truncf %0 : vector<24x256xf32> to vector<24x256xbf16>
    %cst = arith.constant dense<0.000000e+00> : vector<24x256xf32>
    %11 = tpu.matmul %10, %2, %cst {dimension_numbers = #tpu.dot_dimension_numbers<[1], [0], [0], [1], [0, 0, 1, 1], [], []>} : vector<24x256xbf16>, vector<256x256xbf16>, vector<24x256xf32> -> vector<24x256xf32>
    %12 = vector.broadcast %3 : vector<1x256xf32> to vector<24x256xf32>
    %13 = arith.addf %11, %12 : vector<24x256xf32>
    %14 = arith.truncf %0 : vector<24x256xf32> to vector<24x256xbf16>
    %cst_19 = arith.constant dense<0.000000e+00> : vector<24x256xf32>
    %15 = tpu.matmul %14, %4, %cst_19 {dimension_numbers = #tpu.dot_dimension_numbers<[1], [0], [0], [1], [0, 0, 1, 1], [], []>} : vector<24x256xbf16>, vector<256x256xbf16>, vector<24x256xf32> -> vector<24x256xf32>
    %16 = vector.broadcast %5 : vector<1x256xf32> to vector<24x256xf32>
    %17 = arith.addf %15, %16 : vector<24x256xf32>
    %18 = arith.truncf %0 : vector<24x256xf32> to vector<24x256xbf16>
    %cst_20 = arith.constant dense<0.000000e+00> : vector<24x256xf32>
    %19 = tpu.matmul %18, %6, %cst_20 {dimension_numbers = #tpu.dot_dimension_numbers<[1], [0], [0], [1], [0, 0, 1, 1], [], []>} : vector<24x256xbf16>, vector<256x256xbf16>, vector<24x256xf32> -> vector<24x256xf32>
    %20 = vector.broadcast %7 : vector<1x256xf32> to vector<24x256xf32>
    %21 = arith.addf %19, %20 : vector<24x256xf32>
    %22 = arith.truncf %13 : vector<24x256xf32> to vector<24x256xbf16>
    %23 = arith.truncf %17 : vector<24x256xf32> to vector<24x256xbf16>
    %24 = arith.truncf %21 : vector<24x256xf32> to vector<24x256xbf16>
    %25 = vector.extract_strided_slice %22 {offsets = [0, 0], sizes = [24, 128], strides = [1, 1]} : vector<24x256xbf16> to vector<24x128xbf16>
    %26 = vector.extract_strided_slice %23 {offsets = [0, 0], sizes = [24, 128], strides = [1, 1]} : vector<24x256xbf16> to vector<24x128xbf16>
    %cst_21 = arith.constant dense<0.000000e+00> : vector<24x24xf32>
    %27 = tpu.matmul %25, %26, %cst_21 {dimension_numbers = #tpu.dot_dimension_numbers<[1], [1], [0], [0], [0, 0, 1, 0], [], []>} : vector<24x128xbf16>, vector<24x128xbf16>, vector<24x24xf32> -> vector<24x24xf32>
    %cst_22 = arith.constant 0.0883883461 : f32
    %28 = vector.broadcast %cst_22 : f32 to vector<24x24xf32>
    %29 = arith.mulf %27, %28 : vector<24x24xf32>
    %cst_23 = arith.constant dense<0xFF800000> : vector<24xf32>
    %30 = vector.multi_reduction <maximumf>, %29, %cst_23 [1] : vector<24x24xf32> to vector<24xf32>
    %31 = vector.shape_cast %30 : vector<24xf32> to vector<24x1xf32>
    %32 = vector.broadcast %31 : vector<24x1xf32> to vector<24x24xf32>
    %33 = arith.subf %29, %32 : vector<24x24xf32>
    %34 = math.exp %33 : vector<24x24xf32>
    %cst_24 = arith.constant dense<0.000000e+00> : vector<24xf32>
    %35 = vector.multi_reduction <add>, %34, %cst_24 [1] : vector<24x24xf32> to vector<24xf32>
    %36 = vector.shape_cast %35 : vector<24xf32> to vector<24x1xf32>
    %37 = tpu.reciprocal %36 {approx = true} : vector<24x1xf32> -> vector<24x1xf32>
    %38 = vector.broadcast %37 : vector<24x1xf32> to vector<24x24xf32>
    %39 = arith.mulf %34, %38 : vector<24x24xf32>
    %40 = arith.truncf %39 : vector<24x24xf32> to vector<24x24xbf16>
    %41 = vector.extract_strided_slice %24 {offsets = [0, 0], sizes = [24, 128], strides = [1, 1]} : vector<24x256xbf16> to vector<24x128xbf16>
    %cst_25 = arith.constant dense<0.000000e+00> : vector<24x128xf32>
    %42 = tpu.matmul %40, %41, %cst_25 {dimension_numbers = #tpu.dot_dimension_numbers<[1], [0], [0], [1], [0, 0, 1, 1], [], []>} : vector<24x24xbf16>, vector<24x128xbf16>, vector<24x128xf32> -> vector<24x128xf32>
    %43 = arith.truncf %42 : vector<24x128xf32> to vector<24x128xbf16>
    %44 = vector.extract_strided_slice %8 {offsets = [0, 0], sizes = [128, 256], strides = [1, 1]} : vector<256x256xbf16> to vector<128x256xbf16>
    %cst_26 = arith.constant dense<0.000000e+00> : vector<24x256xf32>
    %45 = tpu.matmul %43, %44, %cst_26 {dimension_numbers = #tpu.dot_dimension_numbers<[1], [0], [0], [1], [0, 0, 1, 1], [], []>} : vector<24x128xbf16>, vector<128x256xbf16>, vector<24x256xf32> -> vector<24x256xf32>
    %46 = vector.extract_strided_slice %22 {offsets = [0, 128], sizes = [24, 128], strides = [1, 1]} : vector<24x256xbf16> to vector<24x128xbf16>
    %47 = vector.extract_strided_slice %23 {offsets = [0, 128], sizes = [24, 128], strides = [1, 1]} : vector<24x256xbf16> to vector<24x128xbf16>
    %cst_27 = arith.constant dense<0.000000e+00> : vector<24x24xf32>
    %48 = tpu.matmul %46, %47, %cst_27 {dimension_numbers = #tpu.dot_dimension_numbers<[1], [1], [0], [0], [0, 0, 1, 0], [], []>} : vector<24x128xbf16>, vector<24x128xbf16>, vector<24x24xf32> -> vector<24x24xf32>
    %cst_28 = arith.constant 0.0883883461 : f32
    %49 = vector.broadcast %cst_28 : f32 to vector<24x24xf32>
    %50 = arith.mulf %48, %49 : vector<24x24xf32>
    %cst_29 = arith.constant dense<0xFF800000> : vector<24xf32>
    %51 = vector.multi_reduction <maximumf>, %50, %cst_29 [1] : vector<24x24xf32> to vector<24xf32>
    %52 = vector.shape_cast %51 : vector<24xf32> to vector<24x1xf32>
    %53 = vector.broadcast %52 : vector<24x1xf32> to vector<24x24xf32>
    %54 = arith.subf %50, %53 : vector<24x24xf32>
    %55 = math.exp %54 : vector<24x24xf32>
    %cst_30 = arith.constant dense<0.000000e+00> : vector<24xf32>
    %56 = vector.multi_reduction <add>, %55, %cst_30 [1] : vector<24x24xf32> to vector<24xf32>
    %57 = vector.shape_cast %56 : vector<24xf32> to vector<24x1xf32>
    %58 = tpu.reciprocal %57 {approx = true} : vector<24x1xf32> -> vector<24x1xf32>
    %59 = vector.broadcast %58 : vector<24x1xf32> to vector<24x24xf32>
    %60 = arith.mulf %55, %59 : vector<24x24xf32>
    %61 = arith.truncf %60 : vector<24x24xf32> to vector<24x24xbf16>
    %62 = vector.extract_strided_slice %24 {offsets = [0, 128], sizes = [24, 128], strides = [1, 1]} : vector<24x256xbf16> to vector<24x128xbf16>
    %cst_31 = arith.constant dense<0.000000e+00> : vector<24x128xf32>
    %63 = tpu.matmul %61, %62, %cst_31 {dimension_numbers = #tpu.dot_dimension_numbers<[1], [0], [0], [1], [0, 0, 1, 1], [], []>} : vector<24x24xbf16>, vector<24x128xbf16>, vector<24x128xf32> -> vector<24x128xf32>
    %64 = arith.truncf %63 : vector<24x128xf32> to vector<24x128xbf16>
    %65 = vector.extract_strided_slice %8 {offsets = [128, 0], sizes = [128, 256], strides = [1, 1]} : vector<256x256xbf16> to vector<128x256xbf16>
    %cst_32 = arith.constant dense<0.000000e+00> : vector<24x256xf32>
    %66 = tpu.matmul %64, %65, %cst_32 {dimension_numbers = #tpu.dot_dimension_numbers<[1], [0], [0], [1], [0, 0, 1, 1], [], []>} : vector<24x128xbf16>, vector<128x256xbf16>, vector<24x256xf32> -> vector<24x256xf32>
    %67 = arith.addf %45, %66 : vector<24x256xf32>
    %68 = vector.broadcast %9 : vector<1x256xf32> to vector<24x256xf32>
    %69 = arith.addf %67, %68 : vector<24x256xf32>
    %70 = arith.addf %69, %0 : vector<24x256xf32>
    %c0_33 = arith.constant 0 : index
    %c0_34 = arith.constant 0 : index
    %71 = vector.load %arg10[%c0_33, %c0_34] : memref<1x256xf32, #tpu.memory_space<vmem>>, vector<1x256xf32>
    %c0_35 = arith.constant 0 : index
    %c0_36 = arith.constant 0 : index
    %72 = vector.load %arg11[%c0_35, %c0_36] : memref<1x256xf32, #tpu.memory_space<vmem>>, vector<1x256xf32>
    %cst_37 = arith.constant dense<0.000000e+00> : vector<24xf32>
    %73 = vector.multi_reduction <add>, %70, %cst_37 [1] : vector<24x256xf32> to vector<24xf32>
    %74 = vector.shape_cast %73 : vector<24xf32> to vector<24x1xf32>
    %cst_38 = arith.constant 2.560000e+02 : f32
    %75 = vector.broadcast %cst_38 : f32 to vector<24x1xf32>
    %76 = arith.divf %74, %75 : vector<24x1xf32>
    %77 = vector.broadcast %76 : vector<24x1xf32> to vector<24x256xf32>
    %78 = arith.subf %70, %77 : vector<24x256xf32>
    %79 = arith.mulf %78, %78 : vector<24x256xf32>
    %cst_39 = arith.constant dense<0.000000e+00> : vector<24xf32>
    %80 = vector.multi_reduction <add>, %79, %cst_39 [1] : vector<24x256xf32> to vector<24xf32>
    %81 = vector.shape_cast %80 : vector<24xf32> to vector<24x1xf32>
    %cst_40 = arith.constant 2.560000e+02 : f32
    %82 = vector.broadcast %cst_40 : f32 to vector<24x1xf32>
    %83 = arith.divf %81, %82 : vector<24x1xf32>
    %cst_41 = arith.constant 9.99999974E-6 : f32
    %84 = vector.broadcast %cst_41 : f32 to vector<24x1xf32>
    %85 = arith.addf %83, %84 : vector<24x1xf32>
    %86 = math.rsqrt %85 : vector<24x1xf32>
    %87 = vector.broadcast %86 : vector<24x1xf32> to vector<24x256xf32>
    %88 = arith.mulf %78, %87 : vector<24x256xf32>
    %89 = vector.broadcast %71 : vector<1x256xf32> to vector<24x256xf32>
    %90 = arith.mulf %88, %89 : vector<24x256xf32>
    %91 = vector.broadcast %72 : vector<1x256xf32> to vector<24x256xf32>
    %92 = arith.addf %90, %91 : vector<24x256xf32>
    %c0_42 = arith.constant 0 : index
    %c0_43 = arith.constant 0 : index
    %93 = vector.load %arg12[%c0_42, %c0_43] : memref<256x256xbf16, #tpu.memory_space<vmem>>, vector<256x256xbf16>
    %c0_44 = arith.constant 0 : index
    %c0_45 = arith.constant 0 : index
    %94 = vector.load %arg13[%c0_44, %c0_45] : memref<1x256xf32, #tpu.memory_space<vmem>>, vector<1x256xf32>
    %c0_46 = arith.constant 0 : index
    %c0_47 = arith.constant 0 : index
    %95 = vector.load %arg14[%c0_46, %c0_47] : memref<256x256xbf16, #tpu.memory_space<vmem>>, vector<256x256xbf16>
    %c0_48 = arith.constant 0 : index
    %c0_49 = arith.constant 0 : index
    %96 = vector.load %arg15[%c0_48, %c0_49] : memref<1x256xf32, #tpu.memory_space<vmem>>, vector<1x256xf32>
    %c0_50 = arith.constant 0 : index
    %c0_51 = arith.constant 0 : index
    %97 = vector.load %arg16[%c0_50, %c0_51] : memref<256x256xbf16, #tpu.memory_space<vmem>>, vector<256x256xbf16>
    %c0_52 = arith.constant 0 : index
    %c0_53 = arith.constant 0 : index
    %98 = vector.load %arg17[%c0_52, %c0_53] : memref<1x256xf32, #tpu.memory_space<vmem>>, vector<1x256xf32>
    %c0_54 = arith.constant 0 : index
    %c0_55 = arith.constant 0 : index
    %99 = vector.load %arg18[%c0_54, %c0_55] : memref<256x256xbf16, #tpu.memory_space<vmem>>, vector<256x256xbf16>
    %c0_56 = arith.constant 0 : index
    %c0_57 = arith.constant 0 : index
    %100 = vector.load %arg19[%c0_56, %c0_57] : memref<1x256xf32, #tpu.memory_space<vmem>>, vector<1x256xf32>
    %101 = arith.truncf %1 : vector<16x256xf32> to vector<16x256xbf16>
    %cst_58 = arith.constant dense<0.000000e+00> : vector<16x256xf32>
    %102 = tpu.matmul %101, %93, %cst_58 {dimension_numbers = #tpu.dot_dimension_numbers<[1], [0], [0], [1], [0, 0, 1, 1], [], []>} : vector<16x256xbf16>, vector<256x256xbf16>, vector<16x256xf32> -> vector<16x256xf32>
    %103 = vector.broadcast %94 : vector<1x256xf32> to vector<16x256xf32>
    %104 = arith.addf %102, %103 : vector<16x256xf32>
    %105 = arith.truncf %1 : vector<16x256xf32> to vector<16x256xbf16>
    %cst_59 = arith.constant dense<0.000000e+00> : vector<16x256xf32>
    %106 = tpu.matmul %105, %95, %cst_59 {dimension_numbers = #tpu.dot_dimension_numbers<[1], [0], [0], [1], [0, 0, 1, 1], [], []>} : vector<16x256xbf16>, vector<256x256xbf16>, vector<16x256xf32> -> vector<16x256xf32>
    %107 = vector.broadcast %96 : vector<1x256xf32> to vector<16x256xf32>
    %108 = arith.addf %106, %107 : vector<16x256xf32>
    %109 = arith.truncf %1 : vector<16x256xf32> to vector<16x256xbf16>
    %cst_60 = arith.constant dense<0.000000e+00> : vector<16x256xf32>
    %110 = tpu.matmul %109, %97, %cst_60 {dimension_numbers = #tpu.dot_dimension_numbers<[1], [0], [0], [1], [0, 0, 1, 1], [], []>} : vector<16x256xbf16>, vector<256x256xbf16>, vector<16x256xf32> -> vector<16x256xf32>
    %111 = vector.broadcast %98 : vector<1x256xf32> to vector<16x256xf32>
    %112 = arith.addf %110, %111 : vector<16x256xf32>
    %113 = arith.truncf %104 : vector<16x256xf32> to vector<16x256xbf16>
    %114 = arith.truncf %108 : vector<16x256xf32> to vector<16x256xbf16>
    %115 = arith.truncf %112 : vector<16x256xf32> to vector<16x256xbf16>
    %116 = vector.extract_strided_slice %113 {offsets = [0, 0], sizes = [16, 128], strides = [1, 1]} : vector<16x256xbf16> to vector<16x128xbf16>
    %117 = vector.extract_strided_slice %114 {offsets = [0, 0], sizes = [16, 128], strides = [1, 1]} : vector<16x256xbf16> to vector<16x128xbf16>
    %cst_61 = arith.constant dense<0.000000e+00> : vector<16x16xf32>
    %118 = tpu.matmul %116, %117, %cst_61 {dimension_numbers = #tpu.dot_dimension_numbers<[1], [1], [0], [0], [0, 0, 1, 0], [], []>} : vector<16x128xbf16>, vector<16x128xbf16>, vector<16x16xf32> -> vector<16x16xf32>
    %cst_62 = arith.constant 0.0883883461 : f32
    %119 = vector.broadcast %cst_62 : f32 to vector<16x16xf32>
    %120 = arith.mulf %118, %119 : vector<16x16xf32>
    %cst_63 = arith.constant dense<0xFF800000> : vector<16xf32>
    %121 = vector.multi_reduction <maximumf>, %120, %cst_63 [1] : vector<16x16xf32> to vector<16xf32>
    %122 = vector.shape_cast %121 : vector<16xf32> to vector<16x1xf32>
    %123 = vector.broadcast %122 : vector<16x1xf32> to vector<16x16xf32>
    %124 = arith.subf %120, %123 : vector<16x16xf32>
    %125 = math.exp %124 : vector<16x16xf32>
    %cst_64 = arith.constant dense<0.000000e+00> : vector<16xf32>
    %126 = vector.multi_reduction <add>, %125, %cst_64 [1] : vector<16x16xf32> to vector<16xf32>
    %127 = vector.shape_cast %126 : vector<16xf32> to vector<16x1xf32>
    %128 = tpu.reciprocal %127 {approx = true} : vector<16x1xf32> -> vector<16x1xf32>
    %129 = vector.broadcast %128 : vector<16x1xf32> to vector<16x16xf32>
    %130 = arith.mulf %125, %129 : vector<16x16xf32>
    %131 = arith.truncf %130 : vector<16x16xf32> to vector<16x16xbf16>
    %132 = vector.extract_strided_slice %115 {offsets = [0, 0], sizes = [16, 128], strides = [1, 1]} : vector<16x256xbf16> to vector<16x128xbf16>
    %cst_65 = arith.constant dense<0.000000e+00> : vector<16x128xf32>
    %133 = tpu.matmul %131, %132, %cst_65 {dimension_numbers = #tpu.dot_dimension_numbers<[1], [0], [0], [1], [0, 0, 1, 1], [], []>} : vector<16x16xbf16>, vector<16x128xbf16>, vector<16x128xf32> -> vector<16x128xf32>
    %134 = arith.truncf %133 : vector<16x128xf32> to vector<16x128xbf16>
    %135 = vector.extract_strided_slice %99 {offsets = [0, 0], sizes = [128, 256], strides = [1, 1]} : vector<256x256xbf16> to vector<128x256xbf16>
    %cst_66 = arith.constant dense<0.000000e+00> : vector<16x256xf32>
    %136 = tpu.matmul %134, %135, %cst_66 {dimension_numbers = #tpu.dot_dimension_numbers<[1], [0], [0], [1], [0, 0, 1, 1], [], []>} : vector<16x128xbf16>, vector<128x256xbf16>, vector<16x256xf32> -> vector<16x256xf32>
    %137 = vector.extract_strided_slice %113 {offsets = [0, 128], sizes = [16, 128], strides = [1, 1]} : vector<16x256xbf16> to vector<16x128xbf16>
    %138 = vector.extract_strided_slice %114 {offsets = [0, 128], sizes = [16, 128], strides = [1, 1]} : vector<16x256xbf16> to vector<16x128xbf16>
    %cst_67 = arith.constant dense<0.000000e+00> : vector<16x16xf32>
    %139 = tpu.matmul %137, %138, %cst_67 {dimension_numbers = #tpu.dot_dimension_numbers<[1], [1], [0], [0], [0, 0, 1, 0], [], []>} : vector<16x128xbf16>, vector<16x128xbf16>, vector<16x16xf32> -> vector<16x16xf32>
    %cst_68 = arith.constant 0.0883883461 : f32
    %140 = vector.broadcast %cst_68 : f32 to vector<16x16xf32>
    %141 = arith.mulf %139, %140 : vector<16x16xf32>
    %cst_69 = arith.constant dense<0xFF800000> : vector<16xf32>
    %142 = vector.multi_reduction <maximumf>, %141, %cst_69 [1] : vector<16x16xf32> to vector<16xf32>
    %143 = vector.shape_cast %142 : vector<16xf32> to vector<16x1xf32>
    %144 = vector.broadcast %143 : vector<16x1xf32> to vector<16x16xf32>
    %145 = arith.subf %141, %144 : vector<16x16xf32>
    %146 = math.exp %145 : vector<16x16xf32>
    %cst_70 = arith.constant dense<0.000000e+00> : vector<16xf32>
    %147 = vector.multi_reduction <add>, %146, %cst_70 [1] : vector<16x16xf32> to vector<16xf32>
    %148 = vector.shape_cast %147 : vector<16xf32> to vector<16x1xf32>
    %149 = tpu.reciprocal %148 {approx = true} : vector<16x1xf32> -> vector<16x1xf32>
    %150 = vector.broadcast %149 : vector<16x1xf32> to vector<16x16xf32>
    %151 = arith.mulf %146, %150 : vector<16x16xf32>
    %152 = arith.truncf %151 : vector<16x16xf32> to vector<16x16xbf16>
    %153 = vector.extract_strided_slice %115 {offsets = [0, 128], sizes = [16, 128], strides = [1, 1]} : vector<16x256xbf16> to vector<16x128xbf16>
    %cst_71 = arith.constant dense<0.000000e+00> : vector<16x128xf32>
    %154 = tpu.matmul %152, %153, %cst_71 {dimension_numbers = #tpu.dot_dimension_numbers<[1], [0], [0], [1], [0, 0, 1, 1], [], []>} : vector<16x16xbf16>, vector<16x128xbf16>, vector<16x128xf32> -> vector<16x128xf32>
    %155 = arith.truncf %154 : vector<16x128xf32> to vector<16x128xbf16>
    %156 = vector.extract_strided_slice %99 {offsets = [128, 0], sizes = [128, 256], strides = [1, 1]} : vector<256x256xbf16> to vector<128x256xbf16>
    %cst_72 = arith.constant dense<0.000000e+00> : vector<16x256xf32>
    %157 = tpu.matmul %155, %156, %cst_72 {dimension_numbers = #tpu.dot_dimension_numbers<[1], [0], [0], [1], [0, 0, 1, 1], [], []>} : vector<16x128xbf16>, vector<128x256xbf16>, vector<16x256xf32> -> vector<16x256xf32>
    %158 = arith.addf %136, %157 : vector<16x256xf32>
    %159 = vector.broadcast %100 : vector<1x256xf32> to vector<16x256xf32>
    %160 = arith.addf %158, %159 : vector<16x256xf32>
    %161 = arith.addf %160, %1 : vector<16x256xf32>
    %c0_73 = arith.constant 0 : index
    %c0_74 = arith.constant 0 : index
    %162 = vector.load %arg20[%c0_73, %c0_74] : memref<1x256xf32, #tpu.memory_space<vmem>>, vector<1x256xf32>
    %c0_75 = arith.constant 0 : index
    %c0_76 = arith.constant 0 : index
    %163 = vector.load %arg21[%c0_75, %c0_76] : memref<1x256xf32, #tpu.memory_space<vmem>>, vector<1x256xf32>
    %cst_77 = arith.constant dense<0.000000e+00> : vector<16xf32>
    %164 = vector.multi_reduction <add>, %161, %cst_77 [1] : vector<16x256xf32> to vector<16xf32>
    %165 = vector.shape_cast %164 : vector<16xf32> to vector<16x1xf32>
    %cst_78 = arith.constant 2.560000e+02 : f32
    %166 = vector.broadcast %cst_78 : f32 to vector<16x1xf32>
    %167 = arith.divf %165, %166 : vector<16x1xf32>
    %168 = vector.broadcast %167 : vector<16x1xf32> to vector<16x256xf32>
    %169 = arith.subf %161, %168 : vector<16x256xf32>
    %170 = arith.mulf %169, %169 : vector<16x256xf32>
    %cst_79 = arith.constant dense<0.000000e+00> : vector<16xf32>
    %171 = vector.multi_reduction <add>, %170, %cst_79 [1] : vector<16x256xf32> to vector<16xf32>
    %172 = vector.shape_cast %171 : vector<16xf32> to vector<16x1xf32>
    %cst_80 = arith.constant 2.560000e+02 : f32
    %173 = vector.broadcast %cst_80 : f32 to vector<16x1xf32>
    %174 = arith.divf %172, %173 : vector<16x1xf32>
    %cst_81 = arith.constant 9.99999974E-6 : f32
    %175 = vector.broadcast %cst_81 : f32 to vector<16x1xf32>
    %176 = arith.addf %174, %175 : vector<16x1xf32>
    %177 = math.rsqrt %176 : vector<16x1xf32>
    %178 = vector.broadcast %177 : vector<16x1xf32> to vector<16x256xf32>
    %179 = arith.mulf %169, %178 : vector<16x256xf32>
    %180 = vector.broadcast %162 : vector<1x256xf32> to vector<16x256xf32>
    %181 = arith.mulf %179, %180 : vector<16x256xf32>
    %182 = vector.broadcast %163 : vector<1x256xf32> to vector<16x256xf32>
    %183 = arith.addf %181, %182 : vector<16x256xf32>
    %c0_82 = arith.constant 0 : index
    %c0_83 = arith.constant 0 : index
    %184 = vector.load %arg22[%c0_82, %c0_83] : memref<256x256xbf16, #tpu.memory_space<vmem>>, vector<256x256xbf16>
    %c0_84 = arith.constant 0 : index
    %c0_85 = arith.constant 0 : index
    %185 = vector.load %arg23[%c0_84, %c0_85] : memref<1x256xf32, #tpu.memory_space<vmem>>, vector<1x256xf32>
    %c0_86 = arith.constant 0 : index
    %c0_87 = arith.constant 0 : index
    %186 = vector.load %arg24[%c0_86, %c0_87] : memref<256x256xbf16, #tpu.memory_space<vmem>>, vector<256x256xbf16>
    %c0_88 = arith.constant 0 : index
    %c0_89 = arith.constant 0 : index
    %187 = vector.load %arg25[%c0_88, %c0_89] : memref<1x256xf32, #tpu.memory_space<vmem>>, vector<1x256xf32>
    %c0_90 = arith.constant 0 : index
    %c0_91 = arith.constant 0 : index
    %188 = vector.load %arg26[%c0_90, %c0_91] : memref<256x256xbf16, #tpu.memory_space<vmem>>, vector<256x256xbf16>
    %c0_92 = arith.constant 0 : index
    %c0_93 = arith.constant 0 : index
    %189 = vector.load %arg27[%c0_92, %c0_93] : memref<1x256xf32, #tpu.memory_space<vmem>>, vector<1x256xf32>
    %c0_94 = arith.constant 0 : index
    %c0_95 = arith.constant 0 : index
    %190 = vector.load %arg28[%c0_94, %c0_95] : memref<256x256xbf16, #tpu.memory_space<vmem>>, vector<256x256xbf16>
    %c0_96 = arith.constant 0 : index
    %c0_97 = arith.constant 0 : index
    %191 = vector.load %arg29[%c0_96, %c0_97] : memref<1x256xf32, #tpu.memory_space<vmem>>, vector<1x256xf32>
    %192 = arith.truncf %183 : vector<16x256xf32> to vector<16x256xbf16>
    %cst_98 = arith.constant dense<0.000000e+00> : vector<16x256xf32>
    %193 = tpu.matmul %192, %184, %cst_98 {dimension_numbers = #tpu.dot_dimension_numbers<[1], [0], [0], [1], [0, 0, 1, 1], [], []>} : vector<16x256xbf16>, vector<256x256xbf16>, vector<16x256xf32> -> vector<16x256xf32>
    %194 = vector.broadcast %185 : vector<1x256xf32> to vector<16x256xf32>
    %195 = arith.addf %193, %194 : vector<16x256xf32>
    %196 = arith.truncf %92 : vector<24x256xf32> to vector<24x256xbf16>
    %cst_99 = arith.constant dense<0.000000e+00> : vector<24x256xf32>
    %197 = tpu.matmul %196, %186, %cst_99 {dimension_numbers = #tpu.dot_dimension_numbers<[1], [0], [0], [1], [0, 0, 1, 1], [], []>} : vector<24x256xbf16>, vector<256x256xbf16>, vector<24x256xf32> -> vector<24x256xf32>
    %198 = vector.broadcast %187 : vector<1x256xf32> to vector<24x256xf32>
    %199 = arith.addf %197, %198 : vector<24x256xf32>
    %200 = arith.truncf %92 : vector<24x256xf32> to vector<24x256xbf16>
    %cst_100 = arith.constant dense<0.000000e+00> : vector<24x256xf32>
    %201 = tpu.matmul %200, %188, %cst_100 {dimension_numbers = #tpu.dot_dimension_numbers<[1], [0], [0], [1], [0, 0, 1, 1], [], []>} : vector<24x256xbf16>, vector<256x256xbf16>, vector<24x256xf32> -> vector<24x256xf32>
    %202 = vector.broadcast %189 : vector<1x256xf32> to vector<24x256xf32>
    %203 = arith.addf %201, %202 : vector<24x256xf32>
    %204 = arith.truncf %195 : vector<16x256xf32> to vector<16x256xbf16>
    %205 = arith.truncf %199 : vector<24x256xf32> to vector<24x256xbf16>
    %206 = arith.truncf %203 : vector<24x256xf32> to vector<24x256xbf16>
    %207 = vector.extract_strided_slice %204 {offsets = [0, 0], sizes = [16, 128], strides = [1, 1]} : vector<16x256xbf16> to vector<16x128xbf16>
    %208 = vector.extract_strided_slice %205 {offsets = [0, 0], sizes = [24, 128], strides = [1, 1]} : vector<24x256xbf16> to vector<24x128xbf16>
    %cst_101 = arith.constant dense<0.000000e+00> : vector<16x24xf32>
    %209 = tpu.matmul %207, %208, %cst_101 {dimension_numbers = #tpu.dot_dimension_numbers<[1], [1], [0], [0], [0, 0, 1, 0], [], []>} : vector<16x128xbf16>, vector<24x128xbf16>, vector<16x24xf32> -> vector<16x24xf32>
    %cst_102 = arith.constant 0.0883883461 : f32
    %210 = vector.broadcast %cst_102 : f32 to vector<16x24xf32>
    %211 = arith.mulf %209, %210 : vector<16x24xf32>
    %cst_103 = arith.constant dense<0xFF800000> : vector<16xf32>
    %212 = vector.multi_reduction <maximumf>, %211, %cst_103 [1] : vector<16x24xf32> to vector<16xf32>
    %213 = vector.shape_cast %212 : vector<16xf32> to vector<16x1xf32>
    %214 = vector.broadcast %213 : vector<16x1xf32> to vector<16x24xf32>
    %215 = arith.subf %211, %214 : vector<16x24xf32>
    %216 = math.exp %215 : vector<16x24xf32>
    %cst_104 = arith.constant dense<0.000000e+00> : vector<16xf32>
    %217 = vector.multi_reduction <add>, %216, %cst_104 [1] : vector<16x24xf32> to vector<16xf32>
    %218 = vector.shape_cast %217 : vector<16xf32> to vector<16x1xf32>
    %219 = tpu.reciprocal %218 {approx = true} : vector<16x1xf32> -> vector<16x1xf32>
    %220 = vector.broadcast %219 : vector<16x1xf32> to vector<16x24xf32>
    %221 = arith.mulf %216, %220 : vector<16x24xf32>
    %222 = arith.truncf %221 : vector<16x24xf32> to vector<16x24xbf16>
    %223 = vector.extract_strided_slice %206 {offsets = [0, 0], sizes = [24, 128], strides = [1, 1]} : vector<24x256xbf16> to vector<24x128xbf16>
    %cst_105 = arith.constant dense<0.000000e+00> : vector<16x128xf32>
    %224 = tpu.matmul %222, %223, %cst_105 {dimension_numbers = #tpu.dot_dimension_numbers<[1], [0], [0], [1], [0, 0, 1, 1], [], []>} : vector<16x24xbf16>, vector<24x128xbf16>, vector<16x128xf32> -> vector<16x128xf32>
    %225 = arith.truncf %224 : vector<16x128xf32> to vector<16x128xbf16>
    %226 = vector.extract_strided_slice %190 {offsets = [0, 0], sizes = [128, 256], strides = [1, 1]} : vector<256x256xbf16> to vector<128x256xbf16>
    %cst_106 = arith.constant dense<0.000000e+00> : vector<16x256xf32>
    %227 = tpu.matmul %225, %226, %cst_106 {dimension_numbers = #tpu.dot_dimension_numbers<[1], [0], [0], [1], [0, 0, 1, 1], [], []>} : vector<16x128xbf16>, vector<128x256xbf16>, vector<16x256xf32> -> vector<16x256xf32>
    %228 = vector.extract_strided_slice %204 {offsets = [0, 128], sizes = [16, 128], strides = [1, 1]} : vector<16x256xbf16> to vector<16x128xbf16>
    %229 = vector.extract_strided_slice %205 {offsets = [0, 128], sizes = [24, 128], strides = [1, 1]} : vector<24x256xbf16> to vector<24x128xbf16>
    %cst_107 = arith.constant dense<0.000000e+00> : vector<16x24xf32>
    %230 = tpu.matmul %228, %229, %cst_107 {dimension_numbers = #tpu.dot_dimension_numbers<[1], [1], [0], [0], [0, 0, 1, 0], [], []>} : vector<16x128xbf16>, vector<24x128xbf16>, vector<16x24xf32> -> vector<16x24xf32>
    %cst_108 = arith.constant 0.0883883461 : f32
    %231 = vector.broadcast %cst_108 : f32 to vector<16x24xf32>
    %232 = arith.mulf %230, %231 : vector<16x24xf32>
    %cst_109 = arith.constant dense<0xFF800000> : vector<16xf32>
    %233 = vector.multi_reduction <maximumf>, %232, %cst_109 [1] : vector<16x24xf32> to vector<16xf32>
    %234 = vector.shape_cast %233 : vector<16xf32> to vector<16x1xf32>
    %235 = vector.broadcast %234 : vector<16x1xf32> to vector<16x24xf32>
    %236 = arith.subf %232, %235 : vector<16x24xf32>
    %237 = math.exp %236 : vector<16x24xf32>
    %cst_110 = arith.constant dense<0.000000e+00> : vector<16xf32>
    %238 = vector.multi_reduction <add>, %237, %cst_110 [1] : vector<16x24xf32> to vector<16xf32>
    %239 = vector.shape_cast %238 : vector<16xf32> to vector<16x1xf32>
    %240 = tpu.reciprocal %239 {approx = true} : vector<16x1xf32> -> vector<16x1xf32>
    %241 = vector.broadcast %240 : vector<16x1xf32> to vector<16x24xf32>
    %242 = arith.mulf %237, %241 : vector<16x24xf32>
    %243 = arith.truncf %242 : vector<16x24xf32> to vector<16x24xbf16>
    %244 = vector.extract_strided_slice %206 {offsets = [0, 128], sizes = [24, 128], strides = [1, 1]} : vector<24x256xbf16> to vector<24x128xbf16>
    %cst_111 = arith.constant dense<0.000000e+00> : vector<16x128xf32>
    %245 = tpu.matmul %243, %244, %cst_111 {dimension_numbers = #tpu.dot_dimension_numbers<[1], [0], [0], [1], [0, 0, 1, 1], [], []>} : vector<16x24xbf16>, vector<24x128xbf16>, vector<16x128xf32> -> vector<16x128xf32>
    %246 = arith.truncf %245 : vector<16x128xf32> to vector<16x128xbf16>
    %247 = vector.extract_strided_slice %190 {offsets = [128, 0], sizes = [128, 256], strides = [1, 1]} : vector<256x256xbf16> to vector<128x256xbf16>
    %cst_112 = arith.constant dense<0.000000e+00> : vector<16x256xf32>
    %248 = tpu.matmul %246, %247, %cst_112 {dimension_numbers = #tpu.dot_dimension_numbers<[1], [0], [0], [1], [0, 0, 1, 1], [], []>} : vector<16x128xbf16>, vector<128x256xbf16>, vector<16x256xf32> -> vector<16x256xf32>
    %249 = arith.addf %227, %248 : vector<16x256xf32>
    %250 = vector.broadcast %191 : vector<1x256xf32> to vector<16x256xf32>
    %251 = arith.addf %249, %250 : vector<16x256xf32>
    %252 = arith.addf %251, %183 : vector<16x256xf32>
    %c0_113 = arith.constant 0 : index
    %c0_114 = arith.constant 0 : index
    %253 = vector.load %arg30[%c0_113, %c0_114] : memref<1x256xf32, #tpu.memory_space<vmem>>, vector<1x256xf32>
    %c0_115 = arith.constant 0 : index
    %c0_116 = arith.constant 0 : index
    %254 = vector.load %arg31[%c0_115, %c0_116] : memref<1x256xf32, #tpu.memory_space<vmem>>, vector<1x256xf32>
    %cst_117 = arith.constant dense<0.000000e+00> : vector<16xf32>
    %255 = vector.multi_reduction <add>, %252, %cst_117 [1] : vector<16x256xf32> to vector<16xf32>
    %256 = vector.shape_cast %255 : vector<16xf32> to vector<16x1xf32>
    %cst_118 = arith.constant 2.560000e+02 : f32
    %257 = vector.broadcast %cst_118 : f32 to vector<16x1xf32>
    %258 = arith.divf %256, %257 : vector<16x1xf32>
    %259 = vector.broadcast %258 : vector<16x1xf32> to vector<16x256xf32>
    %260 = arith.subf %252, %259 : vector<16x256xf32>
    %261 = arith.mulf %260, %260 : vector<16x256xf32>
    %cst_119 = arith.constant dense<0.000000e+00> : vector<16xf32>
    %262 = vector.multi_reduction <add>, %261, %cst_119 [1] : vector<16x256xf32> to vector<16xf32>
    %263 = vector.shape_cast %262 : vector<16xf32> to vector<16x1xf32>
    %cst_120 = arith.constant 2.560000e+02 : f32
    %264 = vector.broadcast %cst_120 : f32 to vector<16x1xf32>
    %265 = arith.divf %263, %264 : vector<16x1xf32>
    %cst_121 = arith.constant 9.99999974E-6 : f32
    %266 = vector.broadcast %cst_121 : f32 to vector<16x1xf32>
    %267 = arith.addf %265, %266 : vector<16x1xf32>
    %268 = math.rsqrt %267 : vector<16x1xf32>
    %269 = vector.broadcast %268 : vector<16x1xf32> to vector<16x256xf32>
    %270 = arith.mulf %260, %269 : vector<16x256xf32>
    %271 = vector.broadcast %253 : vector<1x256xf32> to vector<16x256xf32>
    %272 = arith.mulf %270, %271 : vector<16x256xf32>
    %273 = vector.broadcast %254 : vector<1x256xf32> to vector<16x256xf32>
    %274 = arith.addf %272, %273 : vector<16x256xf32>
    %275 = arith.truncf %274 : vector<16x256xf32> to vector<16x256xbf16>
    %c0_122 = arith.constant 0 : index
    %c0_123 = arith.constant 0 : index
    %276 = vector.load %arg32[%c0_122, %c0_123] : memref<256x512xbf16, #tpu.memory_space<vmem>>, vector<256x512xbf16>
    %cst_124 = arith.constant dense<0.000000e+00> : vector<16x512xf32>
    %277 = tpu.matmul %275, %276, %cst_124 {dimension_numbers = #tpu.dot_dimension_numbers<[1], [0], [0], [1], [0, 0, 1, 1], [], []>} : vector<16x256xbf16>, vector<256x512xbf16>, vector<16x512xf32> -> vector<16x512xf32>
    %c0_125 = arith.constant 0 : index
    %c0_126 = arith.constant 0 : index
    %278 = vector.load %arg33[%c0_125, %c0_126] : memref<1x512xf32, #tpu.memory_space<vmem>>, vector<1x512xf32>
    %279 = vector.broadcast %278 : vector<1x512xf32> to vector<16x512xf32>
    %280 = arith.addf %277, %279 : vector<16x512xf32>
    %cst_127 = arith.constant 5.000000e-01 : f32
    %281 = vector.broadcast %cst_127 : f32 to vector<16x512xf32>
    %282 = arith.mulf %281, %280 : vector<16x512xf32>
    %cst_128 = arith.constant 4.471500e-02 : f32
    %283 = vector.broadcast %cst_128 : f32 to vector<16x512xf32>
    %284 = arith.mulf %283, %280 : vector<16x512xf32>
    %285 = arith.mulf %284, %280 : vector<16x512xf32>
    %286 = arith.mulf %285, %280 : vector<16x512xf32>
    %287 = arith.addf %280, %286 : vector<16x512xf32>
    %cst_129 = arith.constant 0.797884583 : f32
    %288 = vector.broadcast %cst_129 : f32 to vector<16x512xf32>
    %289 = arith.mulf %288, %287 : vector<16x512xf32>
    %290 = math.tanh %289 : vector<16x512xf32>
    %cst_130 = arith.constant 1.000000e+00 : f32
    %291 = vector.broadcast %cst_130 : f32 to vector<16x512xf32>
    %292 = arith.addf %291, %290 : vector<16x512xf32>
    %293 = arith.mulf %282, %292 : vector<16x512xf32>
    %294 = arith.truncf %293 : vector<16x512xf32> to vector<16x512xbf16>
    %c0_131 = arith.constant 0 : index
    %c0_132 = arith.constant 0 : index
    %295 = vector.load %arg34[%c0_131, %c0_132] : memref<512x256xbf16, #tpu.memory_space<vmem>>, vector<512x256xbf16>
    %cst_133 = arith.constant dense<0.000000e+00> : vector<16x256xf32>
    %296 = tpu.matmul %294, %295, %cst_133 {dimension_numbers = #tpu.dot_dimension_numbers<[1], [0], [0], [1], [0, 0, 1, 1], [], []>} : vector<16x512xbf16>, vector<512x256xbf16>, vector<16x256xf32> -> vector<16x256xf32>
    %c0_134 = arith.constant 0 : index
    %c0_135 = arith.constant 0 : index
    %297 = vector.load %arg35[%c0_134, %c0_135] : memref<1x256xf32, #tpu.memory_space<vmem>>, vector<1x256xf32>
    %298 = vector.broadcast %297 : vector<1x256xf32> to vector<16x256xf32>
    %299 = arith.addf %296, %298 : vector<16x256xf32>
    %300 = arith.addf %274, %299 : vector<16x256xf32>
    %c0_136 = arith.constant 0 : index
    %c0_137 = arith.constant 0 : index
    %301 = vector.load %arg36[%c0_136, %c0_137] : memref<1x256xf32, #tpu.memory_space<vmem>>, vector<1x256xf32>
    %c0_138 = arith.constant 0 : index
    %c0_139 = arith.constant 0 : index
    %302 = vector.load %arg37[%c0_138, %c0_139] : memref<1x256xf32, #tpu.memory_space<vmem>>, vector<1x256xf32>
    %cst_140 = arith.constant dense<0.000000e+00> : vector<16xf32>
    %303 = vector.multi_reduction <add>, %300, %cst_140 [1] : vector<16x256xf32> to vector<16xf32>
    %304 = vector.shape_cast %303 : vector<16xf32> to vector<16x1xf32>
    %cst_141 = arith.constant 2.560000e+02 : f32
    %305 = vector.broadcast %cst_141 : f32 to vector<16x1xf32>
    %306 = arith.divf %304, %305 : vector<16x1xf32>
    %307 = vector.broadcast %306 : vector<16x1xf32> to vector<16x256xf32>
    %308 = arith.subf %300, %307 : vector<16x256xf32>
    %309 = arith.mulf %308, %308 : vector<16x256xf32>
    %cst_142 = arith.constant dense<0.000000e+00> : vector<16xf32>
    %310 = vector.multi_reduction <add>, %309, %cst_142 [1] : vector<16x256xf32> to vector<16xf32>
    %311 = vector.shape_cast %310 : vector<16xf32> to vector<16x1xf32>
    %cst_143 = arith.constant 2.560000e+02 : f32
    %312 = vector.broadcast %cst_143 : f32 to vector<16x1xf32>
    %313 = arith.divf %311, %312 : vector<16x1xf32>
    %cst_144 = arith.constant 9.99999974E-6 : f32
    %314 = vector.broadcast %cst_144 : f32 to vector<16x1xf32>
    %315 = arith.addf %313, %314 : vector<16x1xf32>
    %316 = math.rsqrt %315 : vector<16x1xf32>
    %317 = vector.broadcast %316 : vector<16x1xf32> to vector<16x256xf32>
    %318 = arith.mulf %308, %317 : vector<16x256xf32>
    %319 = vector.broadcast %301 : vector<1x256xf32> to vector<16x256xf32>
    %320 = arith.mulf %318, %319 : vector<16x256xf32>
    %321 = vector.broadcast %302 : vector<1x256xf32> to vector<16x256xf32>
    %322 = arith.addf %320, %321 : vector<16x256xf32>
    %c0_145 = arith.constant 0 : index
    %c0_146 = arith.constant 0 : index
    %323 = vector.load %arg38[%c0_145, %c0_146] : memref<1x256xf32, #tpu.memory_space<vmem>>, vector<1x256xf32>
    %cst_147 = arith.constant dense<0.000000e+00> : vector<1x16xf32>
    %324 = tpu.matmul %323, %322, %cst_147 {dimension_numbers = #tpu.dot_dimension_numbers<[1], [1], [0], [0], [0, 0, 1, 0], [], []>} : vector<1x256xf32>, vector<16x256xf32>, vector<1x16xf32> -> vector<1x16xf32>
    %c0_148 = arith.constant 0 : index
    %c0_149 = arith.constant 0 : index
    %325 = vector.load %arg39[%c0_148, %c0_149] : memref<1x1xf32, #tpu.memory_space<vmem>>, vector<1x1xf32>
    %326 = vector.broadcast %325 : vector<1x1xf32> to vector<1x16xf32>
    %327 = arith.addf %324, %326 : vector<1x16xf32>
    %cst_150 = arith.constant 0.000000e+00 : f32
    %328 = vector.broadcast %cst_150 : f32 to vector<1x16xf32>
    %329 = arith.subf %328, %327 : vector<1x16xf32>
    %330 = math.exp %329 : vector<1x16xf32>
    %cst_151 = arith.constant 1.000000e+00 : f32
    %331 = vector.broadcast %cst_151 : f32 to vector<1x16xf32>
    %332 = arith.addf %331, %330 : vector<1x16xf32>
    %cst_152 = arith.constant 1.000000e+00 : f32
    %333 = vector.broadcast %cst_152 : f32 to vector<1x16xf32>
    %334 = arith.divf %333, %332 : vector<1x16xf32>
    %c0_153 = arith.constant 0 : index
    %c0_154 = arith.constant 0 : index
    %335 = vector.load %arg40[%c0_153, %c0_154] : memref<1x16xf32, #tpu.memory_space<vmem>>, vector<1x16xf32>
    tpu.vector_store %arg40[%c0_153, %c0_154], %334 {strides = array<i32>} : memref<1x16xf32, #tpu.memory_space<vmem>>, vector<1x16xf32>,
    return
  }
}

</mosaic_0001>

<bundles_post_ra>
// kernel: expander_forward.1
= control target key start
LH: loop header
LB: loop body
LE: loop exit
PB: predicated region body
PF: predicated region fallthrough
CT: control target
= control target key end

     0   :  { %s7720_s6 = smov 1   ;;  %s7721_s10 = smov 2   ;;  %s8574_s0 = inlined_call_operand.smem [shape: u32[41], index: -1, kind: input, shape index: {}] }
   0x1   :  { %s7790_s5 = sld [smem:[%s8574_s0]]   ;;  %s7722_s14 = smov 3  }
   0x2   :  { %s7795_s9 = sld [smem:[%s8574_s0 + %s7720_s6]]   ;;  %s7723_s18 = smov 4  }
   0x3   :  { %s7800_s13 = sld [smem:[%s8574_s0 + %s7721_s10]]   ;;  %s7724_s22 = smov 5  }
   0x4   :  { %s7805_s17 = sld [smem:[%s8574_s0 + %s7722_s14]]   ;;  %s7725_s26 = smov 6  }
   0x5   :  { %s7810_s21 = sld [smem:[%s8574_s0 + %s7723_s18]]   ;;  %s7726_s30 = smov 7  }
   0x6   :  { %s7815_s25 = sld [smem:[%s8574_s0 + %s7724_s22]]   ;;  %s7727_s4 = smov 8  }
   0x7   :  { %8577 = sst [smem:[#allocation36_spill]] %s7790_s5  ;;  %s7728_s10 = smov 9  }
   0x8   :  { %8578 = sst [smem:[#allocation37_spill]] %s7795_s9  ;;  %s7729_s15 = smov 10  }
   0x9   :  { %s7820_s29 = sld [smem:[%s8574_s0 + %s7725_s26]]   ;;  %s7730_s20 = smov 11  }
   0xa   :  { %8579 = sst [smem:[#allocation38_spill]] %s7805_s17  ;;  %s7731_s26 = smov 12  }
   0xb   :  { %s7825_s3 = sld [smem:[%s8574_s0 + %s7726_s30]]   ;;  %s7732_s1 = smov 13  }
   0xc   :  { %8580 = sst [smem:[#allocation39_spill]] %s7815_s25  ;;  %s7733_s7 = smov 14  }
   0xd   :  { %s7830_s8 = sld [smem:[%s8574_s0 + %s7727_s4]]   ;;  %s7735_s22 = smov 16  }
   0xe   :  { %s7835_s14 = sld [smem:[%s8574_s0 + %s7728_s10]]   ;;  %s7736_s28 = smov 17  }
   0xf   :  { %s7840_s19 = sld [smem:[%s8574_s0 + %s7729_s15]]   ;;  %s7734_s15 = smov 15  }
  0x10   :  { %s7845_s24 = sld [smem:[%s8574_s0 + %s7730_s20]]   ;;  %s7759_s23 = smov 40  }
  0x11   :  { %8581 = sst [smem:[#allocation40_spill]] %s7825_s3 }
  0x12   :  { %s7850_s30 = sld [smem:[%s8574_s0 + %s7731_s26]]  }
  0x13   :  { %s7855_s6 = sld [smem:[%s8574_s0 + %s7732_s1]]  }
  0x14   :  { %8582 = sst [smem:[#allocation41_spill]] %s7835_s14 }
  0x15   :  { %8583 = sst [smem:[#allocation42_spill]] %s7840_s19 }
  0x16   :  { %8584 = sst [smem:[#allocation43_spill]] %s7845_s24 }
  0x17   :  { %s7860_s12 = sld [smem:[%s8574_s0 + %s7733_s7]]   ;;  %s7737_s7 = smov 18  }
  0x18   :  { %s7865_s20 = sld [smem:[%s8574_s0 + %s7734_s15]]   ;;  %s7738_s15 = smov 19  }
  0x19   :  { %8585 = sst [smem:[#allocation44_spill]] %s7855_s6 }
  0x1a   :  { %s7870_s27 = sld [smem:[%s8574_s0 + %s7735_s22]]   ;;  %s7739_s22 = smov 20  }
  0x1b   :  { %s7875_s4 = sld [smem:[%s8574_s0 + %s7736_s28]]   ;;  %s7740_s28 = smov 21  }
  0x1c   :  { %s7880_s24 = sld [smem:[%s8574_s0 + %s7737_s7]]   ;;  %s7741_s7 = smov 22  }
  0x1d   :  { %s7885_s19 = sld [smem:[%s8574_s0 + %s7738_s15]]   ;;  %s7742_s15 = smov 23  }
  0x1e   :  { %8586 = sst [smem:[#allocation45_spill]] %s7865_s20 }
  0x1f   :  { %s7890_s14 = sld [smem:[%s8574_s0 + %s7739_s22]]   ;;  %s7743_s22 = smov 24  }
  0x20   :  { %s7900_s6 = sld [smem:[%s8574_s0 + %s7741_s7]]   ;;  %s7745_s7 = smov 26  }
  0x21   :  { %8587 = sst [smem:[#allocation46_spill]] %s7875_s4 }
  0x22   :  { %s7895_s4 = sld [smem:[%s8574_s0 + %s7740_s28]]   ;;  %s7744_s28 = smov 25  }
  0x23   :  { %8588 = sst [smem:[#allocation47_spill]] %s7885_s19 }
  0x24   :  { %s7905_s19 = sld [smem:[%s8574_s0 + %s7742_s15]]   ;;  %s7746_s15 = smov 27  }
  0x25   :  { %8589 = sst [smem:[#allocation48_spill]] %s7890_s14 }
  0x26   :  { %s7910_s14 = sld [smem:[%s8574_s0 + %s7743_s22]]   ;;  %s7747_s22 = smov 28  }
  0x27   :  { %s7920_s20 = sld [smem:[%s8574_s0 + %s7745_s7]]   ;;  %s7749_s7 = smov 30  }
  0x28   :  { %8590 = sst [smem:[#allocation49_spill]] %s7895_s4 }
  0x29   :  { %s7915_s4 = sld [smem:[%s8574_s0 + %s7744_s28]]   ;;  %s7748_s28 = smov 29  }
  0x2a   :  { %8591 = sst [smem:[#allocation50_spill]] %s7905_s19 }
  0x2b   :  { %s7925_s19 = sld [smem:[%s8574_s0 + %s7746_s15]]   ;;  %s7750_s15 = smov 31  }
  0x2c   :  { %s7930_s9 = sld [smem:[%s8574_s0 + %s7747_s22]]   ;;  %s7751_s22 = smov 32  }
  0x2d   :  { %s7940_s3 = sld [smem:[%s8574_s0 + %s7749_s7]]   ;;  %s7753_s7 = smov 34  }
  0x2e   :  { %s7950_s25 = sld [smem:[%s8574_s0 + %s7751_s22]]   ;;  %s7755_s22 = smov 36  }
  0x2f   :  { %8592 = sst [smem:[#allocation51_spill]] %s7915_s4 }
  0x30   :  { %s7935_s4 = sld [smem:[%s8574_s0 + %s7748_s28]]   ;;  %s7752_s28 = smov 33  }
  0x31   :  { %8593 = sst [smem:[#allocation52_spill]] %s7925_s19 }
  0x32   :  { %s7945_s19 = sld [smem:[%s8574_s0 + %s7750_s15]]   ;;  %s7754_s15 = smov 35  }
  0x33   :  { %8595 = sst [smem:[#allocation54_spill]] %s7940_s3 }
  0x34   :  { %s7960_s3 = sld [smem:[%s8574_s0 + %s7753_s7]]   ;;  %s7757_s7 = smov 38  }
  0x35   :  { %s7970_s17 = sld [smem:[%s8574_s0 + %s7755_s22]]  }
  0x36   :  { %8594 = sst [smem:[#allocation53_spill]] %s7935_s4 }
  0x37   :  { %s7955_s4 = sld [smem:[%s8574_s0 + %s7752_s28]]   ;;  %s7756_s28 = smov 37  }
  0x38   :  { %8596 = sst [smem:[#allocation55_spill]] %s7945_s19 }
  0x39   :  { %s7965_s19 = sld [smem:[%s8574_s0 + %s7754_s15]]   ;;  %s7758_s15 = smov 39  }
  0x3a   :  { %s7980_s5 = sld [smem:[%s8574_s0 + %s7757_s7]]  }
  0x3b   :  { %8599 = sst [smem:[#allocation58_spill]] %s7970_s17 }
  0x3c   :  { %s7988_s17 = sld [smem:[%s8574_s0 + %s7759_s23]]  }
  0x3d   :  { %8597 = sst [smem:[#allocation56_spill]] %s7955_s4 }
  0x3e   :  { %s7975_s4 = sld [smem:[%s8574_s0 + %s7756_s28]]  }
  0x3f   :  { %8598 = sst [smem:[#allocation57_spill]] %s7965_s19 }
  0x40   :  { %s5823_s19 = sld [smem:[%s8574_s0 + %s7758_s15]]  }
  0x46   :  { %v86_v0 = vstv %s5823_s19 }
  0x47   :  { %87 = vst [vmem:[#allocation2] sm:$0x1] %v86_v0 }
  0x48   :  { %88 = vsyncpa [#allocation4], 0 }
  0x49   :  { %89 = vsyncpa [#allocation7], 0 }
  0x4a   :  { %90 = vsyncpa [#allocation10], 0 }
  0x4b   :  { %91 = vsyncpa [#allocation13], 0 }
  0x4c   :  { %92 = vsyncpa [#allocation16], 0 }
  0x4d   :  { %93 = vsyncpa [#allocation19], 0 }
  0x4e   :  { %94 = vsyncpa [#allocation22], 0 }
  0x4f   :  { %95 = vsyncpa [#allocation25], 0 }
  0x50   :  { %96 = vsyncpa [#allocation5], 0  ;;  %s7760_s28 = smov [#allocation6]   ;;  %s7761_s2 = smov [#allocation9]  }
  0x51   :  { %s120_s1 = sshll.u32 %s7760_s28, 4  ;;  %s148_s7 = sshll.u32 %s7761_s2, 4  ;;  %s121_s1 = int_to_ptr.vmem [resolvable:$true] %s120_s1  ;;  %s149_s7 = int_to_ptr.vmem [resolvable:$true] %s148_s7 }
  0x52   :  { %s7410_s10 = scalar_lea.vmem %s121_s1, 4096  ;;  %p7415_p1 = scmp.lt.s32.totalorder %s121_s1, %s121_s1 }
  0x53   :  { %p7411_p0 = scmp.ne.s32.totalorder %s121_s1, %s7410_s10  ;;  %p7416_p2 = scmp.lt.s32.totalorder %s7410_s10, %s7410_s10 }
  0x55   :  { %p7417_p3 = por %p7416_p2, %p7415_p1 }
  0x57   :  { %p7418_p4 = pnand %p7417_p3, %p7411_p0 }
  0x59   :  { %7421 = shalt.err (!%p7418_p4)
}
  0x5a   :  { %s7762_s0 = smov 128   ;;  %s7763_s19 = smov 8  }
  0x5b   :  { %126 = dma.hbm_to_vmem [thread:$0]  %s7810_s21, 4096, %s121_s1, [#allocation7], %s7762_s0, %s7762_s0, %s7763_s19  }
  0x5c   :  { %s7430_s11 = scalar_lea.vmem %s149_s7, 4096  ;;  %p7435_p6 = scmp.lt.s32.totalorder %s149_s7, %s149_s7 }
  0x5d   :  { %p7431_p5 = scmp.ne.s32.totalorder %s149_s7, %s7430_s11  ;;  %p7436_p7 = scmp.lt.s32.totalorder %s7430_s11, %s7430_s11 }
  0x5f   :  { %p7437_p8 = por %p7436_p7, %p7435_p6 }
  0x61   :  { %p7438_p9 = pnand %p7437_p8, %p7431_p5 }
  0x63   :  { %7441 = shalt.err (!%p7438_p9)
}
  0x64   :  { %154 = dma.hbm_to_vmem [thread:$0]  %s7830_s8, 4096, %s149_s7, [#allocation10], %s7762_s0, %s7762_s0, %s7763_s19  }
  0x65   :  { %s7764_s15 = smov [#allocation12]   ;;  %s7765_s18 = smov [#allocation15]  }
  0x66   :  { %s180_s16 = sshll.u32 %s7764_s15, 4  ;;  %s208_s23 = sshll.u32 %s7765_s18, 4  ;;  %s181_s16 = int_to_ptr.vmem [resolvable:$true] %s180_s16  ;;  %s209_s23 = int_to_ptr.vmem [resolvable:$true] %s208_s23 }
  0x67   :  { %s7450_s22 = scalar_lea.vmem %s181_s16, 4096  ;;  %p7455_p11 = scmp.lt.s32.totalorder %s181_s16, %s181_s16 }
  0x68   :  { %p7451_p10 = scmp.ne.s32.totalorder %s181_s16, %s7450_s22  ;;  %p7456_p12 = scmp.lt.s32.totalorder %s7450_s22, %s7450_s22 }
  0x6a   :  { %p7457_p13 = por %p7456_p12, %p7455_p11 }
  0x6c   :  { %p7458_p0 = pnand %p7457_p13, %p7451_p10 }
  0x6e   :  { %7461 = shalt.err (!%p7458_p0)
}
  0x6f   :  { %186 = dma.hbm_to_vmem [thread:$0]  %s7860_s12, 4096, %s181_s16, [#allocation13], %s7762_s0, %s7762_s0, %s7763_s19  }
  0x70   :  { %s7470_s21 = scalar_lea.vmem %s209_s23, 4096  ;;  %p7475_p2 = scmp.lt.s32.totalorder %s209_s23, %s209_s23 }
  0x71   :  { %p7471_p1 = scmp.ne.s32.totalorder %s209_s23, %s7470_s21  ;;  %p7476_p3 = scmp.lt.s32.totalorder %s7470_s21, %s7470_s21 }
  0x73   :  { %p7477_p4 = por %p7476_p3, %p7475_p2 }
  0x75   :  { %p7478_p5 = pnand %p7477_p4, %p7471_p1 }
  0x77   :  { %7481 = shalt.err (!%p7478_p5)
}
  0x78   :  { %214 = dma.hbm_to_vmem [thread:$0]  %s7880_s24, 4096, %s209_s23, [#allocation16], %s7762_s0, %s7762_s0, %s7763_s19  }
  0x79   :  { %s7766_s8 = smov [#allocation18]   ;;  %s7767_s28 = smov [#allocation21]  }
  0x7a   :  { %s240_s26 = sshll.u32 %s7766_s8, 4  ;;  %s268_s1 = sshll.u32 %s7767_s28, 4  ;;  %s241_s26 = int_to_ptr.vmem [resolvable:$true] %s240_s26  ;;  %s269_s1 = int_to_ptr.vmem [resolvable:$true] %s268_s1 }
  0x7b   :  { %s7490_s2 = scalar_lea.vmem %s241_s26, 4096  ;;  %p7495_p7 = scmp.lt.s32.totalorder %s241_s26, %s241_s26 }
  0x7c   :  { %p7491_p6 = scmp.ne.s32.totalorder %s241_s26, %s7490_s2  ;;  %p7496_p8 = scmp.lt.s32.totalorder %s7490_s2, %s7490_s2 }
  0x7e   :  { %p7497_p9 = por %p7496_p8, %p7495_p7 }
  0x80   :  { %p7498_p10 = pnand %p7497_p9, %p7491_p6 }
  0x82   :  { %7501 = shalt.err (!%p7498_p10)
}
  0x83   :  { %246 = dma.hbm_to_vmem [thread:$0]  %s7910_s14, 4096, %s241_s26, [#allocation19], %s7762_s0, %s7762_s0, %s7763_s19  }
  0x84   :  { %s7510_s12 = scalar_lea.vmem %s269_s1, 4096  ;;  %p7515_p12 = scmp.lt.s32.totalorder %s269_s1, %s269_s1 }
  0x85   :  { %p7511_p11 = scmp.ne.s32.totalorder %s269_s1, %s7510_s12  ;;  %p7516_p13 = scmp.lt.s32.totalorder %s7510_s12, %s7510_s12 }
  0x87   :  { %p7517_p0 = por %p7516_p13, %p7515_p12 }
  0x89   :  { %p7518_p1 = pnand %p7517_p0, %p7511_p11 }
  0x8b   :  { %7521 = shalt.err (!%p7518_p1)
}
  0x8c   :  { %274 = dma.hbm_to_vmem [thread:$0]  %s7930_s9, 4096, %s269_s1, [#allocation22], %s7762_s0, %s7762_s0, %s7763_s19  }
  0x8d   :  { %s7768_s24 = smov [#allocation3]   ;;  %s7769_s10 = smov [#allocation8]  }
  0x8e   :  { %s106_s7 = sshll.u32 %s7768_s24, 4  ;;  %s134_s11 = sshll.u32 %s7769_s10, 4  ;;  %s107_s7 = int_to_ptr.vmem [resolvable:$true] %s106_s7  ;;  %s135_s11 = int_to_ptr.vmem [resolvable:$true] %s134_s11 }
  0x8f   :  { %s7530_s15 = scalar_lea.vmem %s107_s7, 4096  ;;  %p7535_p3 = scmp.lt.s32.totalorder %s107_s7, %s107_s7 }
  0x90   :  { %p7531_p2 = scmp.ne.s32.totalorder %s107_s7, %s7530_s15  ;;  %p7536_p4 = scmp.lt.s32.totalorder %s7530_s15, %s7530_s15 }
  0x92   :  { %p7537_p5 = por %p7536_p4, %p7535_p3 }
  0x94   :  { %p7538_p6 = pnand %p7537_p5, %p7531_p2 }
  0x96   :  { %7541 = shalt.err (!%p7538_p6)
}
  0x97   :  { %112 = dma.hbm_to_vmem [thread:$0]  %s7800_s13, 4096, %s107_s7, [#allocation4], %s7762_s0, %s7762_s0, %s7763_s19  }
  0x98   :  { %s7550_s14 = scalar_lea.vmem %s135_s11, 4096  ;;  %p7555_p8 = scmp.lt.s32.totalorder %s135_s11, %s135_s11 }
  0x99   :  { %p7551_p7 = scmp.ne.s32.totalorder %s135_s11, %s7550_s14  ;;  %p7556_p9 = scmp.lt.s32.totalorder %s7550_s14, %s7550_s14 }
  0x9b   :  { %p7557_p10 = por %p7556_p9, %p7555_p8 }
  0x9d   :  { %p7558_p11 = pnand %p7557_p10, %p7551_p7 }
  0x9f   :  { %7561 = shalt.err (!%p7558_p11)
}
  0xa0   :  { %140 = dma.hbm_to_vmem [thread:$0]  %s7820_s29, 4096, %s135_s11, [#allocation7], %s7762_s0, %s7762_s0, %s7763_s19  }
  0xa1   :  { %s7770_s9 = smov [#allocation11]   ;;  %s7771_s18 = smov [#allocation14]  }
  0xa2   :  { %s166_s16 = sshll.u32 %s7770_s9, 4  ;;  %s194_s23 = sshll.u32 %s7771_s18, 4  ;;  %s167_s16 = int_to_ptr.vmem [resolvable:$true] %s166_s16  ;;  %s195_s23 = int_to_ptr.vmem [resolvable:$true] %s194_s23 }
  0xa3   :  { %s7570_s22 = scalar_lea.vmem %s167_s16, 4096  ;;  %p7575_p13 = scmp.lt.s32.totalorder %s167_s16, %s167_s16 }
  0xa4   :  { %p7571_p12 = scmp.ne.s32.totalorder %s167_s16, %s7570_s22  ;;  %p7576_p0 = scmp.lt.s32.totalorder %s7570_s22, %s7570_s22 }
  0xa6   :  { %p7577_p1 = por %p7576_p0, %p7575_p13 }
  0xa8   :  { %p7578_p2 = pnand %p7577_p1, %p7571_p12 }
  0xaa   :  { %7581 = shalt.err (!%p7578_p2)
}
  0xab   :  { %172 = dma.hbm_to_vmem [thread:$0]  %s7850_s30, 4096, %s167_s16, [#allocation10], %s7762_s0, %s7762_s0, %s7763_s19  }
  0xac   :  { %s7590_s13 = scalar_lea.vmem %s195_s23, 4096  ;;  %p7595_p4 = scmp.lt.s32.totalorder %s195_s23, %s195_s23 }
  0xad   :  { %p7591_p3 = scmp.ne.s32.totalorder %s195_s23, %s7590_s13  ;;  %p7596_p5 = scmp.lt.s32.totalorder %s7590_s13, %s7590_s13 }
  0xaf   :  { %p7597_p6 = por %p7596_p5, %p7595_p4 }
  0xb1   :  { %p7598_p7 = pnand %p7597_p6, %p7591_p3 }
  0xb3   :  { %7601 = shalt.err (!%p7598_p7)
}
  0xb4   :  { %200 = dma.hbm_to_vmem [thread:$0]  %s7870_s27, 4096, %s195_s23, [#allocation13], %s7762_s0, %s7762_s0, %s7763_s19  }
  0xb5   :  { %s7772_s29 = smov [#allocation17]   ;;  %s7773_s8 = smov [#allocation20]  }
  0xb6   :  { %s226_s21 = sshll.u32 %s7772_s29, 4  ;;  %s254_s26 = sshll.u32 %s7773_s8, 4  ;;  %s227_s21 = int_to_ptr.vmem [resolvable:$true] %s226_s21  ;;  %s255_s26 = int_to_ptr.vmem [resolvable:$true] %s254_s26 }
  0xb7   :  { %s7610_s28 = scalar_lea.vmem %s227_s21, 4096  ;;  %p7615_p9 = scmp.lt.s32.totalorder %s227_s21, %s227_s21 }
  0xb8   :  { %p7611_p8 = scmp.ne.s32.totalorder %s227_s21, %s7610_s28  ;;  %p7616_p10 = scmp.lt.s32.totalorder %s7610_s28, %s7610_s28 }
  0xba   :  { %p7617_p11 = por %p7616_p10, %p7615_p9 }
  0xbc   :  { %p7618_p12 = pnand %p7617_p11, %p7611_p8 }
  0xbe   :  { %7621 = shalt.err (!%p7618_p12)
}
  0xbf   :  { %232 = dma.hbm_to_vmem [thread:$0]  %s7900_s6, 4096, %s227_s21, [#allocation16], %s7762_s0, %s7762_s0, %s7763_s19  }
  0xc0   :  { %s7630_s30 = scalar_lea.vmem %s255_s26, 4096  ;;  %p7635_p0 = scmp.lt.s32.totalorder %s255_s26, %s255_s26 }
  0xc1   :  { %p7631_p13 = scmp.ne.s32.totalorder %s255_s26, %s7630_s30  ;;  %p7636_p1 = scmp.lt.s32.totalorder %s7630_s30, %s7630_s30 }
  0xc3   :  { %p7637_p2 = por %p7636_p1, %p7635_p0 }
  0xc5   :  { %p7638_p3 = pnand %p7637_p2, %p7631_p13 }
  0xc7   :  { %7641 = shalt.err (!%p7638_p3)
}
  0xc8   :  { %260 = dma.hbm_to_vmem [thread:$0]  %s7920_s20, 4096, %s255_s26, [#allocation19], %s7762_s0, %s7762_s0, %s7763_s19  }
  0xc9   :  { %s7774_s27 = smov [#allocation23]  }
  0xca   :  { %s286_s1 = sshll.u32 %s7774_s27, 4  ;;  %s287_s1 = int_to_ptr.vmem [resolvable:$true] %s286_s1 }
  0xcb   :  { %s7650_s2 = scalar_lea.vmem %s287_s1, 8192  ;;  %p7655_p5 = scmp.lt.s32.totalorder %s287_s1, %s287_s1 }
  0xcc   :  { %p7651_p4 = scmp.ne.s32.totalorder %s287_s1, %s7650_s2  ;;  %p7656_p6 = scmp.lt.s32.totalorder %s7650_s2, %s7650_s2 }
  0xce   :  { %p7657_p7 = por %p7656_p6, %p7655_p5 }
  0xd0   :  { %p7658_p8 = pnand %p7657_p7, %p7651_p4 }
  0xd2   :  { %7661 = shalt.err (!%p7658_p8)
}
  0xd3   :  { %s7775_s6 = smov 256   ;;  %s7776_s12 = smov 16  }
  0xd4   :  { %292 = dma.hbm_to_vmem [thread:$0]  %s7950_s25, 8192, %s287_s1, [#allocation22], %s7775_s6, %s7775_s6, %s7776_s12  }
  0xd5   :  { %s7777_s24 = smov [#allocation24]  }
  0xd6   :  { %s300_s7 = sshll.u32 %s7777_s24, 4  ;;  %s301_s7 = int_to_ptr.vmem [resolvable:$true] %s300_s7 }
  0xd7   :  { %s7670_s10 = scalar_lea.vmem %s301_s7, 8192  ;;  %p7675_p10 = scmp.lt.s32.totalorder %s301_s7, %s301_s7 }
  0xd8   :  { %p7671_p9 = scmp.ne.s32.totalorder %s301_s7, %s7670_s10  ;;  %p7676_p11 = scmp.lt.s32.totalorder %s7670_s10, %s7670_s10 }
  0xda   :  { %p7677_p12 = por %p7676_p11, %p7675_p10 }
  0xdc   :  { %p7678_p13 = pnand %p7677_p12, %p7671_p9 }
  0xde   :  { %7681 = shalt.err (!%p7678_p13)
}
  0xdf   :  { %306 = dma.hbm_to_vmem [thread:$0]  %s7960_s3, 8192, %s301_s7, [#allocation25], %s7762_s0, %s7762_s0, %s7763_s19  }
  0xe0   :  { %7702 = dma.done.wait [#allocation4], 4096  }
  0xe1   :  { %7703 = vsyncadd [#allocation4], 4294963200 }
  0xe2   :  { %7704 = dma.done.wait [#allocation7], 8192  }
  0xe3   :  { %7705 = vsyncadd [#allocation7], 4294959104 }
  0xe4   :  { %7706 = dma.done.wait [#allocation10], 8192  }
  0xe5   :  { %7707 = vsyncadd [#allocation10], 4294959104 }
  0xe6   :  { %7708 = dma.done.wait [#allocation13], 8192  }
  0xe7   :  { %7709 = vsyncadd [#allocation13], 4294959104 }
  0xe8   :  { %7710 = dma.done.wait [#allocation16], 8192  }
  0xe9   :  { %7711 = vsyncadd [#allocation16], 4294959104 }
  0xea   :  { %7712 = dma.done.wait [#allocation19], 8192  }
  0xeb   :  { %7713 = vsyncadd [#allocation19], 4294959104 }
  0xec   :  { %7714 = dma.done.wait [#allocation22], 12288  }
  0xed   :  { %7715 = vsyncadd [#allocation22], 4294955008 }
  0xee   :  { %7716 = dma.done.wait [#allocation25], 8192  }
  0xef   :  { %7717 = vsyncadd [#allocation25], 4294959104  ;;  %v6534_v1 = vld [vmem:[#allocation3 + $0x74] ss:$8 sps:$4 sm:$0xff]   ;;  %v6538_v3 = vld [vmem:[#allocation3 + $0x70] ss:$8 sps:$4 sm:$0xff]  }
  0xf0   :  { %v6536_v2 = vld [vmem:[#allocation6 + $0x74] ss:$8 sps:$4 sm:$0xff]   ;;  %677 = vmatprep.subr.bf16.mxu0 %v6534_v1  ;;  %v6539_v4 = vld [vmem:[#allocation6 + $0x70] ss:$8 sps:$4 sm:$0xff]   ;;  %v6540_v5 = vld [vmem:[#allocation3 + $0x64] ss:$8 sps:$4 sm:$0xff]  }
  0xf1   :  { %899 = vmatprep.subr.bf16.mxu1 %v6536_v2  ;;  %678 = vmatpush1.bf16.msra.mxu0 %v6538_v3  ;;  %v6542_v6 = vld [vmem:[#allocation6 + $0x64] ss:$8 sps:$4 sm:$0xff]   ;;  %v6544_v7 = vld [vmem:[#allocation3 + $0x60] ss:$8 sps:$4 sm:$0xff]   ;;  %v6546_v9 = vld [vmem:[#allocation3 + $0x54] ss:$8 sps:$4 sm:$0xff]  }
  0xf2   :  { %900 = vmatpush1.bf16.msra.mxu1 %v6539_v4  ;;  %679 = vmatprep.subr.bf16.mxu0 %v6540_v5  ;;  %v6545_v8 = vld [vmem:[#allocation6 + $0x60] ss:$8 sps:$4 sm:$0xff]   ;;  %v6548_v10 = vld [vmem:[#allocation6 + $0x54] ss:$8 sps:$4 sm:$0xff]   ;;  %v6550_v11 = vld [vmem:[#allocation3 + $0x50] ss:$8 sps:$4 sm:$0xff]  }
  0xf3   :  { %901 = vmatprep.subr.bf16.mxu1 %v6542_v6  ;;  %v6551_v12 = vld [vmem:[#allocation6 + $0x50] ss:$8 sps:$4 sm:$0xff]   ;;  %v6552_v13 = vld [vmem:[#allocation3 + $0x44] ss:$8 sps:$4 sm:$0xff]   ;;  %v6556_v15 = vld [vmem:[#allocation3 + $0x40] ss:$8 sps:$4 sm:$0xff]  }
  0xf4   :  { %v6554_v14 = vld [vmem:[#allocation6 + $0x44] ss:$8 sps:$4 sm:$0xff]   ;;  %v6557_v16 = vld [vmem:[#allocation6 + $0x40] ss:$8 sps:$4 sm:$0xff]   ;;  %v6558_v17 = vld [vmem:[#allocation3 + $0x34] ss:$8 sps:$4 sm:$0xff]  }
  0xf5   :  { %680 = vmatpush1.bf16.msra.mxu0 %v6544_v7  ;;  %v6560_v18 = vld [vmem:[#allocation6 + $0x34] ss:$8 sps:$4 sm:$0xff]   ;;  %v6562_v19 = vld [vmem:[#allocation3 + $0x30] ss:$8 sps:$4 sm:$0xff]   ;;  %v6564_v21 = vld [vmem:[#allocation3 + $0x24] ss:$8 sps:$4 sm:$0xff]  }
  0xf6   :  { %902 = vmatpush1.bf16.msra.mxu1 %v6545_v8  ;;  %681 = vmatprep.subr.bf16.mxu0 %v6546_v9  ;;  %v6563_v20 = vld [vmem:[#allocation6 + $0x30] ss:$8 sps:$4 sm:$0xff]   ;;  %v6566_v22 = vld [vmem:[#allocation6 + $0x24] ss:$8 sps:$4 sm:$0xff]   ;;  %v6568_v23 = vld [vmem:[#allocation3 + $0x20] ss:$8 sps:$4 sm:$0xff]  }
  0xf7   :  { %903 = vmatprep.subr.bf16.mxu1 %v6548_v10  ;;  %v6569_v24 = vld [vmem:[#allocation6 + $0x20] ss:$8 sps:$4 sm:$0xff]   ;;  %v6570_v25 = vld [vmem:[#allocation3 + $0x14] ss:$8 sps:$4 sm:$0xff]   ;;  %v6574_v27 = vld [vmem:[#allocation3 + $0x10] ss:$8 sps:$4 sm:$0xff]  }
  0xf8   :  { %v6572_v26 = vld [vmem:[#allocation6 + $0x14] ss:$8 sps:$4 sm:$0xff]   ;;  %v6575_v28 = vld [vmem:[#allocation6 + $0x10] ss:$8 sps:$4 sm:$0xff]   ;;  %v6576_v29 = vld [vmem:[#allocation3 + $0x4] ss:$8 sps:$4 sm:$0xff]  }
  0xf9   :  { %682 = vmatpush1.bf16.msra.mxu0 %v6550_v11  ;;  %v6578_v30 = vld [vmem:[#allocation6 + $0x4] ss:$8 sps:$4 sm:$0xff]   ;;  %v6580_v31 = vld [vmem:[#allocation3] ss:$8 sps:$4 sm:$0xff]   ;;  %v6582_v33 = vld [vmem:[#allocation3 + $0xf4] ss:$8 sps:$4 sm:$0xff]  }
  0xfa   :  { %904 = vmatpush1.bf16.msra.mxu1 %v6551_v12  ;;  %683 = vmatprep.subr.bf16.mxu0 %v6552_v13  ;;  %v6581_v32 = vld [vmem:[#allocation6] ss:$8 sps:$4 sm:$0xff]   ;;  %v6584_v34 = vld [vmem:[#allocation6 + $0xf4] ss:$8 sps:$4 sm:$0xff]   ;;  %v6586_v35 = vld [vmem:[#allocation3 + $0xf0] ss:$8 sps:$4 sm:$0xff]  }
  0xfb   :  { %905 = vmatprep.subr.bf16.mxu1 %v6554_v14  ;;  %v6587_v36 = vld [vmem:[#allocation6 + $0xf0] ss:$8 sps:$4 sm:$0xff]   ;;  %v6588_v37 = vld [vmem:[#allocation3 + $0xe4] ss:$8 sps:$4 sm:$0xff]   ;;  %v6592_v39 = vld [vmem:[#allocation3 + $0xe0] ss:$8 sps:$4 sm:$0xff]  }
  0xfc   :  { %v6590_v38 = vld [vmem:[#allocation6 + $0xe4] ss:$8 sps:$4 sm:$0xff]   ;;  %s8600_s25 = sld [smem:[#allocation36_spill]]  ;;  %v6593_v40 = vld [vmem:[#allocation6 + $0xe0] ss:$8 sps:$4 sm:$0xff]   ;;  %vm1277_vm0 = vcmask 1043456  }
  0xfd   :  { %684 = vmatpush1.bf16.msra.mxu0 %v6556_v15  ;;  %v6594_v41 = vld [vmem:[#allocation3 + $0xd4] ss:$8 sps:$4 sm:$0xff]   ;;  %v6598_v43 = vld [vmem:[#allocation3 + $0xd0] ss:$8 sps:$4 sm:$0xff]   ;;  %v6600_v45 = vld [vmem:[#allocation3 + $0xc4] ss:$8 sps:$4 sm:$0xff]  }
  0xfe   :  { %906 = vmatpush1.bf16.msra.mxu1 %v6557_v16  ;;  %685 = vmatprep.subr.bf16.mxu0 %v6558_v17  ;;  %v6596_v42 = vld [vmem:[#allocation6 + $0xd4] ss:$8 sps:$4 sm:$0xff]   ;;  %v6599_v44 = vld [vmem:[#allocation6 + $0xd0] ss:$8 sps:$4 sm:$0xff]   ;;  %v6602_v46 = vld [vmem:[#allocation6 + $0xc4] ss:$8 sps:$4 sm:$0xff]  }
  0xff   :  { %907 = vmatprep.subr.bf16.mxu1 %v6560_v18  ;;  %v6604_v48 = vld [vmem:[#allocation3 + $0xc0] ss:$8 sps:$4 sm:$0xff]   ;;  %v6606_v51 = vld [vmem:[#allocation3 + $0xb4] ss:$8 sps:$4 sm:$0xff]   ;;  %v6610_v54 = vld [vmem:[#allocation3 + $0xb0] ss:$8 sps:$4 sm:$0xff]  }
 0x100   :  { %v6605_v49 = vld [vmem:[#allocation6 + $0xc0] ss:$8 sps:$4 sm:$0xff]   ;;  %v6608_v53 = vld [vmem:[#allocation6 + $0xb4] ss:$8 sps:$4 sm:$0xff]   ;;  %v6611_v55 = vld [vmem:[#allocation6 + $0xb0] ss:$8 sps:$4 sm:$0xff]  }
 0x101   :  { %686 = vmatpush1.bf16.msra.mxu0 %v6562_v19  ;;  %v6612_v56 = vld [vmem:[#allocation3 + $0xa4] ss:$8 sps:$4 sm:$0xff]   ;;  %v6616_v58 = vld [vmem:[#allocation3 + $0xa0] ss:$8 sps:$4 sm:$0xff]   ;;  %v6618_v60 = vld [vmem:[#allocation3 + $0x94] ss:$8 sps:$4 sm:$0xff]  }
 0x102   :  { %908 = vmatpush1.bf16.msra.mxu1 %v6563_v20  ;;  %687 = vmatprep.subr.bf16.mxu0 %v6564_v21  ;;  %v361_v47 = vld [vmem:[%s8600_s25 + $0x8] sm:$0xff]  ;;  %v363_v50 = vld [vmem:[%s8600_s25 + $0x18] sm:$0xff]  ;;  %v360_v4 = vld [vmem:[%s8600_s25] sm:$0xff]  ;;  %s8601_s3 = sld [smem:[#allocation38_spill]]  ;;  %vm1235_vm1 = vcmask 195584   ;;  %vm7780_vm2 = vmmov 0  }
 0x103   :  { %909 = vmatprep.subr.bf16.mxu1 %v6566_v22  ;;  %v8045_v52 = vpack.c.bf16 %v363_v50, %v361_v47  ;;  %v6614_v57 = vld [vmem:[#allocation6 + $0xa4] ss:$8 sps:$4 sm:$0xff]   ;;  %v6617_v59 = vld [vmem:[#allocation6 + $0xa0] ss:$8 sps:$4 sm:$0xff]   ;;  %v6620_v61 = vld [vmem:[#allocation6 + $0x94] ss:$8 sps:$4 sm:$0xff]  }
 0x104   :  { %v6622_v62 = vld [vmem:[#allocation3 + $0x90] ss:$8 sps:$4 sm:$0xff]   ;;  %v6624_v0 = vld [vmem:[#allocation3 + $0x84] ss:$8 sps:$4 sm:$0xff]   ;;  %v6628_v2 = vld [vmem:[#allocation3 + $0x80] ss:$8 sps:$4 sm:$0xff]  }
 0x105   :  { %688 = vmatpush1.bf16.msra.mxu0 %v6568_v23  ;;  %931 = vmatprep.mubr.bf16.mxu1 %v8045_v52  ;;  %v6623_v63 = vld [vmem:[#allocation6 + $0x90] ss:$8 sps:$4 sm:$0xff]   ;;  %v6626_v1 = vld [vmem:[#allocation6 + $0x84] ss:$8 sps:$4 sm:$0xff]   ;;  %v6629_v3 = vld [vmem:[#allocation6 + $0x80] ss:$8 sps:$4 sm:$0xff]  }
 0x106   :  { %910 = vmatpush1.bf16.msra.mxu1 %v6569_v24  ;;  %689 = vmatprep.subr.bf16.mxu0 %v6570_v25  ;;  %v362_v5 = vld [vmem:[%s8600_s25 + $0x10] sm:$0xff]  ;;  %v365_v7 = vld [vmem:[%s8600_s25 + $0x28] sm:$0xff]  ;;  %v364_v13 = vld [vmem:[%s8600_s25 + $0x20] sm:$0xff]  ;;  %s8602_s20 = sld [smem:[#allocation39_spill]]  ;;  %vm2671_vm3 = vcmask 130048   ;;  %vm5761_vm4 = vcmask 122880  }
 0x107   :  { %911 = vmatprep.subr.bf16.mxu1 %v6572_v26  ;;  %709 = vmatprep.mubr.bf16.mxu0 %v8045_v52  ;;  %v6632_v6 = vld [vmem:[#allocation8 + $0x74] ss:$8 sps:$4 sm:$0xff]   ;;  %v8052_v8 = vpack.c.bf16 %v362_v5, %v360_v4  ;;  %v6630_v9 = vld [vmem:[#allocation8 + $0x70] ss:$8 sps:$4 sm:$0xff]   ;;  %v8054_v10 = vpack.c.bf16 %v365_v7, %v365_v7  ;;  %v6635_v11 = vld [vmem:[#allocation8 + $0x64] ss:$8 sps:$4 sm:$0xff]   ;;  %v504_v16 = vpack.c.bf16 %v364_v13, %v364_v13 }
 0x108   :  { %v6633_v12 = vld [vmem:[#allocation8 + $0x60] ss:$8 sps:$4 sm:$0xff]   ;;  %v6638_v14 = vld [vmem:[#allocation8 + $0x54] ss:$8 sps:$4 sm:$0xff]   ;;  %v6636_v15 = vld [vmem:[#allocation8 + $0x50] ss:$8 sps:$4 sm:$0xff]  }
 0x109   :  { %690 = vmatpush1.bf16.msra.mxu0 %v6574_v27  ;;  %v6641_v17 = vld [vmem:[#allocation8 + $0x44] ss:$8 sps:$4 sm:$0xff]   ;;  %v6639_v18 = vld [vmem:[#allocation8 + $0x40] ss:$8 sps:$4 sm:$0xff]   ;;  %v6644_v19 = vld [vmem:[#allocation8 + $0x34] ss:$8 sps:$4 sm:$0xff]  }
 0x10a   :  { %912 = vmatpush1.bf16.msra.mxu1 %v6575_v28  ;;  %691 = vmatprep.subr.bf16.mxu0 %v6576_v29  ;;  %v6642_v20 = vld [vmem:[#allocation8 + $0x30] ss:$8 sps:$4 sm:$0xff]   ;;  %v6647_v21 = vld [vmem:[#allocation8 + $0x24] ss:$8 sps:$4 sm:$0xff]   ;;  %v6645_v22 = vld [vmem:[#allocation8 + $0x20] ss:$8 sps:$4 sm:$0xff]  }
 0x10b   :  { %913 = vmatprep.subr.bf16.mxu1 %v6578_v30  ;;  %v6650_v23 = vld [vmem:[#allocation8 + $0x14] ss:$8 sps:$4 sm:$0xff]   ;;  %v6648_v24 = vld [vmem:[#allocation8 + $0x10] ss:$8 sps:$4 sm:$0xff]   ;;  %v6653_v25 = vld [vmem:[#allocation8 + $0x4] ss:$8 sps:$4 sm:$0xff]  }
 0x10c   :  { %v6651_v26 = vld [vmem:[#allocation8] ss:$8 sps:$4 sm:$0xff]   ;;  %v6656_v27 = vld [vmem:[#allocation8 + $0xf4] ss:$8 sps:$4 sm:$0xff]   ;;  %v6654_v28 = vld [vmem:[#allocation8 + $0xf0] ss:$8 sps:$4 sm:$0xff]  }
 0x10d   :  { %692 = vmatpush1.bf16.msra.mxu0 %v6580_v31  ;;  %v6659_v29 = vld [vmem:[#allocation8 + $0xe4] ss:$8 sps:$4 sm:$0xff]   ;;  %v6657_v30 = vld [vmem:[#allocation8 + $0xe0] ss:$8 sps:$4 sm:$0xff]   ;;  %v6662_v31 = vld [vmem:[#allocation8 + $0xd4] ss:$8 sps:$4 sm:$0xff]  }
 0x10e   :  { %914 = vmatpush1.bf16.msra.mxu1 %v6581_v32  ;;  %693 = vmatprep.subr.bf16.mxu0 %v6582_v33  ;;  %v6660_v32 = vld [vmem:[#allocation8 + $0xd0] ss:$8 sps:$4 sm:$0xff]   ;;  %v6665_v33 = vld [vmem:[#allocation8 + $0xc4] ss:$8 sps:$4 sm:$0xff]   ;;  %s8603_s0 = sld [smem:[#allocation40_spill]] }
 0x10f   :  { %915 = vmatprep.subr.bf16.mxu1 %v6584_v34  ;;  %v6663_v34 = vld [vmem:[#allocation8 + $0xc0] ss:$8 sps:$4 sm:$0xff]   ;;  %s8604_s19 = sld [smem:[#allocation37_spill]] }
 0x110   :  { %s8605_s11 = sld [smem:[#allocation45_spill]] }
 0x111   :  { %694 = vmatpush2.bf16.msra.mxu0 %v6586_v35  ;;  %v6668_v35 = vld [vmem:[#allocation8 + $0xb4] ss:$8 sps:$4 sm:$0xff]   ;;  %s8606_s15 = sld [smem:[#allocation44_spill]] }
 0x112   :  { %916 = vmatpush2.bf16.msra.mxu1 %v6587_v36  ;;  %695 = vmatprep.subr.bf16.mxu0 %v6588_v37  ;;  %v6666_v36 = vld [vmem:[#allocation8 + $0xb0] ss:$8 sps:$4 sm:$0xff]   ;;  %v6671_v37 = vld [vmem:[#allocation8 + $0xa4] ss:$8 sps:$4 sm:$0xff]   ;;  %s8607_s14 = sld [smem:[#allocation46_spill]] }
 0x113   :  { %917 = vmatprep.subr.bf16.mxu1 %v6590_v38  ;;  %v6669_v38 = vld [vmem:[#allocation8 + $0xa0] ss:$8 sps:$4 sm:$0xff]   ;;  %s8608_s9 = sld [smem:[#allocation41_spill]] }
 0x114   :  { %s8609_s16 = sld [smem:[#allocation47_spill]] }
 0x115   :  { %696 = vmatpush2.bf16.msra.mxu0 %v6592_v39  ;;  %v6674_v39 = vld [vmem:[#allocation8 + $0x94] ss:$8 sps:$4 sm:$0xff]   ;;  %s8610_s18 = sld [smem:[#allocation42_spill]] }
 0x116   :  { %918 = vmatpush2.bf16.msra.mxu1 %v6593_v40  ;;  %697 = vmatprep.subr.bf16.mxu0 %v6594_v41  ;;  %v6672_v40 = vld [vmem:[#allocation8 + $0x90] ss:$8 sps:$4 sm:$0xff]   ;;  %v6677_v41 = vld [vmem:[#allocation8 + $0x84] ss:$8 sps:$4 sm:$0xff]   ;;  %s8611_s23 = sld [smem:[#allocation43_spill]] }
 0x117   :  { %919 = vmatprep.subr.bf16.mxu1 %v6596_v42  ;;  %v6675_v42 = vld [vmem:[#allocation8 + $0x80] ss:$8 sps:$4 sm:$0xff]   ;;  %s8612_s22 = sld [smem:[#allocation48_spill]] }
 0x118   :  { %s8613_s13 = sld [smem:[#allocation49_spill]] }
 0x119   :  { %698 = vmatpush2.bf16.msra.mxu0 %v6598_v43  ;;  %v507_v43 = vlaneseq  ;;  %s8614_s29 = sld [smem:[#allocation51_spill]] }
 0x11a   :  { %920 = vmatpush2.bf16.msra.mxu1 %v6599_v44  ;;  %699 = vmatprep.subr.bf16.mxu0 %v6600_v45  ;;  %s8615_s21 = sld [smem:[#allocation50_spill]] }
 0x11b   :  { %921 = vmatprep.subr.bf16.mxu1 %v6602_v46  ;;  %v8064_v44 = vshrl.u32 %v507_v43, 7  ;;  %v402_v46 = vld [vmem:[%s8601_s3] sm:$0x3]  ;;  %s8616_s8 = sld [smem:[#allocation52_spill]] }
 0x11c   :  { %s8617_s26 = sld [smem:[#allocation53_spill]] }
 0x11d   :  { %700 = vmatpush2.bf16.msra.mxu0 %v6604_v48  ;;  %v8067_v45 = vsub.s32 1, %v8064_v44  ;;  %v8071_v47 = vsub.s32 0, %v8064_v44  ;;  %v435_v48 = vld [vmem:[%s8602_s20] sm:$0x3]  ;;  %s8618_s28 = sld [smem:[#allocation54_spill]] }
 0x11e   :  { %922 = vmatpush2.bf16.msra.mxu1 %v6605_v49  ;;  %701 = vmatprep.subr.bf16.mxu0 %v6606_v51  ;;  %s8619_s30 = sld [smem:[#allocation55_spill]] }
 0x11f   :  { %923 = vmatprep.subr.bf16.mxu1 %v6608_v53  ;;  %v736_v49 = vrot.slane %v435_v48, %v8067_v45  ;;  %v510_v50 = vrot.slane %v402_v46, %v8071_v47  ;;  %v514_v51 = vrot.slane %v402_v46, %v8067_v45  ;;  %s8620_s27 = sld [smem:[#allocation56_spill]] }
 0x120   :  { %s8621_s1 = sld [smem:[#allocation57_spill]] }
 0x121   :  { %702 = vmatpush2.bf16.msra.mxu0 %v6610_v54  ;;  %s8622_s2 = sld [smem:[#allocation58_spill]] }
 0x122   :  { %924 = vmatpush2.bf16.msra.mxu1 %v6611_v55  ;;  %703 = vmatprep.subr.bf16.mxu0 %v6612_v56 }
 0x123   :  { %925 = vmatprep.subr.bf16.mxu1 %v6614_v57 }
 0x125   :  { %704 = vmatpush2.bf16.msra.mxu0 %v6616_v58 }
 0x126   :  { %926 = vmatpush2.bf16.msra.mxu1 %v6617_v59  ;;  %705 = vmatprep.subr.bf16.mxu0 %v6618_v60 }
 0x127   :  { %927 = vmatprep.subr.bf16.mxu1 %v6620_v61 }
 0x129   :  { %706 = vmatpush2.bf16.msra.mxu0 %v6622_v62 }
 0x12a   :  { %928 = vmatpush2.bf16.msra.mxu1 %v6623_v63  ;;  %707 = vmatprep.subr.bf16.mxu0 %v6624_v0  ;;  %v732_v0 = vrot.slane %v435_v48, %v8071_v47 }
 0x12b   :  { %929 = vmatprep.subr.bf16.mxu1 %v6626_v1 }
 0x12d   :  { %708 = vmatpush2.bf16.msra.mxu0 %v6628_v2 }
 0x12e   :  { %930 = vmatpush2.bf16.msra.mxu1 %v6629_v3  ;;  %1121 = vmatprep.subr.bf16.mxu0 %v6632_v6 }
 0x130   :  { %710 = vmatmul.mubr.bf16.vlgmr.msra.gmra.mxu0 %v8052_v8 }
 0x131   :  { %932 = vmatmul.mubr.bf16.vlgmr.msra.gmra.mxu1 %v8052_v8  ;;  %1122 = vmatpush1.bf16.msra.mxu0 %v6630_v9 }
 0x132   :  { %941 = vmatprep.mubr.bf16.mxu1 %v8054_v10  ;;  %1123 = vmatprep.subr.bf16.mxu0 %v6635_v11 }
 0x133   :  { %719 = vmatprep.mubr.bf16.mxu0 %v8054_v10 }
 0x135   :  { %1124 = vmatpush1.bf16.msra.mxu0 %v6633_v12 }
 0x136   :  { %1125 = vmatprep.subr.bf16.mxu0 %v6638_v14 }
 0x138   :  { %720 = vmatmul.mubr.bf16.gmra.mxu0 %v504_v16 }
 0x139   :  { %942 = vmatmul.mubr.bf16.gmra.mxu1 %v504_v16  ;;  %1126 = vmatpush1.bf16.msra.mxu0 %v6636_v15 }
 0x13a   :  { %1153 = vmatprep.mubr.bf16.mxu0 %v8045_v52  ;;  %1127 = vmatprep.subr.bf16.mxu0 %v6641_v17 }
 0x13d   :  { %1128 = vmatpush1.bf16.msra.mxu0 %v6639_v18 }
 0x13e   :  { %1129 = vmatprep.subr.bf16.mxu0 %v6644_v19 }
 0x141   :  { %1130 = vmatpush1.bf16.msra.mxu0 %v6642_v20 }
 0x142   :  { %1131 = vmatprep.subr.bf16.mxu0 %v6647_v21 }
 0x145   :  { %1132 = vmatpush1.bf16.msra.mxu0 %v6645_v22  ;;  %v468_v22 = vld [vmem:[%s8603_s0] sm:$0x3] }
 0x146   :  { %1133 = vmatprep.subr.bf16.mxu0 %v6650_v23  ;;  %v958_v23 = vrot.slane %v468_v22, %v8067_v45 }
 0x149   :  { %1134 = vmatpush1.bf16.msra.mxu0 %v6648_v24 }
 0x14a   :  { %1135 = vmatprep.subr.bf16.mxu0 %v6653_v25 }
 0x14d   :  { %1136 = vmatpush1.bf16.msra.mxu0 %v6651_v26 }
 0x14e   :  { %1137 = vmatprep.subr.bf16.mxu0 %v6656_v27 }
 0x151   :  { %1138 = vmatpush2.bf16.msra.mxu0 %v6654_v28  ;;  %v954_v28 = vrot.slane %v468_v22, %v8071_v47  ;;  %v6692_v22 = vld [vmem:[#allocation9 + $0x34] ss:$8 sps:$4 sm:$0xff]  }
 0x152   :  { %1139 = vmatprep.subr.bf16.mxu0 %v6659_v29 }
 0x155   :  { %1140 = vmatpush2.bf16.msra.mxu0 %v6657_v30 }
 0x156   :  { %1141 = vmatprep.subr.bf16.mxu0 %v6662_v31 }
 0x159   :  { %1142 = vmatpush2.bf16.msra.mxu0 %v6660_v32 }
 0x15a   :  { %1143 = vmatprep.subr.bf16.mxu0 %v6665_v33 }
 0x15d   :  { %1144 = vmatpush2.bf16.msra.mxu0 %v6663_v34 }
 0x15e   :  { %1145 = vmatprep.subr.bf16.mxu0 %v6668_v35 }
 0x161   :  { %1146 = vmatpush2.bf16.msra.mxu0 %v6666_v36 }
 0x162   :  { %1147 = vmatprep.subr.bf16.mxu0 %v6671_v37 }
 0x165   :  { %1148 = vmatpush2.bf16.msra.mxu0 %v6669_v38 }
 0x166   :  { %1149 = vmatprep.subr.bf16.mxu0 %v6674_v39 }
 0x169   :  { %1150 = vmatpush2.bf16.msra.mxu0 %v6672_v40 }
 0x16a   :  { %1151 = vmatprep.subr.bf16.mxu0 %v6677_v41 }
 0x16d   :  { %1152 = vmatpush2.bf16.msra.mxu0 %v6675_v42 }
 0x170   :  { %1154 = vmatmul.mubr.bf16.vlgmr.msra.gmra.mxu0 %v8052_v8 }
 0x171   :  { %1163 = vmatprep.mubr.bf16.mxu0 %v8054_v10 }
 0x178   :  { %1164 = vmatmul.mubr.bf16.gmra.mxu0 %v504_v16 }
 0x1f0   :  { %v711_v53 = vpop.f32.mrf.mxu0 }
 0x1f1   :  { %v933_v52 = vpop.f32.mrf.mxu1  ;;  %v712_v57 = vadd.f32 %v711_v53, %v510_v50 }
 0x1f2   :  { %v713_v55 = vpop.f32.mrf.mxu0  ;;  %v934_v12 = vadd.f32 %v933_v52, %v732_v0 }
 0x1f3   :  { %v935_v54 = vpop.f32.mrf.mxu1  ;;  %v8077_v58 = vadd.f32 %v713_v55, %v514_v51 }
 0x1f4   :  { %v936_v56 = vadd.f32 %v935_v54, %v736_v49  ;;  %v715_v60 = vpop.f32.mrf.mxu0 }
 0x1f5   :  { %v937_v59 = vpop.f32.mrf.mxu1  ;;  %v716_v61 = vadd.f32 %v715_v60, %v510_v50 }
 0x1f6   :  { %v717_v63 = vpop.f32.mrf.mxu0  ;;  %v938_v6 = vadd.f32 %v937_v59, %v732_v0 }
 0x1f7   :  { %v939_v62 = vpop.f32.mrf.mxu1  ;;  %v1172_v2 = vpack.c.bf16 %v716_v61, %v712_v57  ;;  %v8080_v3 = vadd.f32 %v717_v63, %v514_v51 }
 0x1f8   :  { %v940_v1 = vadd.f32 %v939_v62, %v736_v49  ;;  %v721_v5 = vpop.f32.mrf.mxu0  ;;  %v1176_v17 = vpack.c.bf16 %v938_v6, %v934_v12 }
 0x1f9   :  { %v943_v4 = vpop.f32.mrf.mxu1  ;;  %v1173_v9 = vpack.c.bf16 %v8080_v3, %v8077_v58  ;;  %6385 = vmatprep.mubr.bf16.mxu1 %v1172_v2  ;;  %v722_v20 = vadd.f32 %v721_v5, %v510_v50  ;;  %v6698_v58 = vld [vmem:[#allocation9 + $0x14] ss:$8 sps:$4 sm:$0xff]   ;;  %v6696_v3 = vld [vmem:[#allocation9 + $0x10] ss:$8 sps:$4 sm:$0xff]  }
 0x1fa   :  { %v8082_v7 = vpack.c.bf16 %v940_v1, %v936_v56  ;;  %v944_v8 = vadd.f32 %v943_v4, %v732_v0  ;;  %v723_v11 = vpop.f32.mrf.mxu0 }
 0x1fb   :  { %v945_v10 = vpop.f32.mrf.mxu1  ;;  %v8086_v14 = vadd.f32 %v723_v11, %v514_v51  ;;  %v1174_v21 = vpack.c.bf16 %v722_v20, %v722_v20  ;;  %v6689_v20 = vld [vmem:[#allocation9 + $0x44] ss:$8 sps:$4 sm:$0xff]  }
 0x1fc   :  { %v1178_v13 = vpack.c.bf16 %v944_v8, %v944_v8  ;;  %v725_v16 = vpop.f32.mrf.mxu0  ;;  %v946_v38 = vadd.f32 %v945_v10, %v736_v49 }
 0x1fd   :  { %v947_v15 = vpop.f32.mrf.mxu1  ;;  %v6683_v16 = vld [vmem:[#allocation9 + $0x64] ss:$8 sps:$4 sm:$0xff]  }
 0x1fe   :  { %6381 = vmatprep.subr.bf16.mxu1 %v1178_v13  ;;  %v726_v19 = vpop.f32.mrf.mxu0  ;;  %v8095_v40 = vpack.c.bf16 %v946_v38, %v946_v38  ;;  %v6680_v15 = vld [vmem:[#allocation9 + $0x74] ss:$8 sps:$4 sm:$0xff]  }
 0x1ff   :  { %v948_v18 = vpop.f32.mrf.mxu1  ;;  %6382 = vmatpush3.bf16.xpose.msra.mxu1 %v1178_v13  ;;  %v6678_v13 = vld [vmem:[#allocation9 + $0x70] ss:$8 sps:$4 sm:$0xff]   ;;  %1687 = vmatprep.subr.bf16.mxu0 %v6680_v15 }
 0x200   :  { %6383 = vmatprep.subr.bf16.mxu1 %v1176_v17  ;;  %1688 = vmatpush1.bf16.msra.mxu0 %v6678_v13  ;;  %v6686_v18 = vld [vmem:[#allocation9 + $0x54] ss:$8 sps:$4 sm:$0xff]   ;;  %v6684_v19 = vld [vmem:[#allocation9 + $0x50] ss:$8 sps:$4 sm:$0xff]  }
 0x201   :  { %1689 = vmatprep.subr.bf16.mxu0 %v6683_v16 }
 0x207   :  { %6384 = vmatpush3.bf16.xpose.msra.mxu1 %v1176_v17  ;;  %v6681_v17 = vld [vmem:[#allocation9 + $0x60] ss:$8 sps:$4 sm:$0xff]  }
 0x208   :  { %1690 = vmatpush1.bf16.msra.mxu0 %v6681_v17 }
 0x209   :  { %1691 = vmatprep.subr.bf16.mxu0 %v6686_v18 }
 0x20c   :  { %1692 = vmatpush1.bf16.msra.mxu0 %v6684_v19 }
 0x20d   :  { %1693 = vmatprep.subr.bf16.mxu0 %v6689_v20 }
 0x20e   :  { %6386 = vmatmul.mubr.bf16.vlgmr.msra.gmra.mxu1 %v1174_v21  ;;  %v6687_v21 = vld [vmem:[#allocation9 + $0x40] ss:$8 sps:$4 sm:$0xff]  }
 0x210   :  { %1694 = vmatpush1.bf16.msra.mxu0 %v6687_v21 }
 0x211   :  { %1695 = vmatprep.subr.bf16.mxu0 %v6692_v22  ;;  %v6704_v22 = vld [vmem:[#allocation9 + $0xf4] ss:$8 sps:$4 sm:$0xff]  }
 0x230   :  { %v1155_v24 = vpop.f32.mrf.mxu0 }
 0x231   :  { %v1156_v30 = vadd.f32 %v1155_v24, %v954_v28  ;;  %v6695_v24 = vld [vmem:[#allocation9 + $0x24] ss:$8 sps:$4 sm:$0xff]  }
 0x232   :  { %v1157_v25 = vpop.f32.mrf.mxu0 }
 0x233   :  { %v1158_v26 = vadd.f32 %v1157_v25, %v958_v23  ;;  %v6693_v25 = vld [vmem:[#allocation9 + $0x20] ss:$8 sps:$4 sm:$0xff]  }
 0x234   :  { %v1159_v27 = vpop.f32.mrf.mxu0 }
 0x235   :  { %v1160_v31 = vadd.f32 %v1159_v27, %v954_v28 }
 0x236   :  { %v1161_v29 = vpop.f32.mrf.mxu0 }
 0x237   :  { %v1162_v32 = vadd.f32 %v1161_v29, %v958_v23  ;;  %v1180_v36 = vpack.c.bf16 %v1160_v31, %v1156_v30 }
 0x238   :  { %v1165_v33 = vpop.f32.mrf.mxu0 }
 0x239   :  { %v8091_v34 = vpack.c.bf16 %v1162_v32, %v1158_v26  ;;  %v1166_v35 = vadd.f32 %v1165_v33, %v954_v28 }
 0x23a   :  { %v1167_v8 = vpop.f32.mrf.mxu0 }
 0x23b   :  { %v1182_v37 = vpack.c.bf16 %v1166_v35, %v1166_v35  ;;  %v1168_v10 = vadd.f32 %v1167_v8, %v958_v23  ;;  %v6690_v23 = vld [vmem:[#allocation9 + $0x30] ss:$8 sps:$4 sm:$0xff]  }
 0x23c   :  { %v1169_v11 = vpop.f32.mrf.mxu0  ;;  %1696 = vmatpush1.bf16.msra.mxu0 %v6690_v23 }
 0x23d   :  { %v1279_v39 = vsel %vm1277_vm0, %v1182_v37, 0  ;;  %6469 = vmatprep.subr.msk.bf16.mxu1 %vm1277_vm0, %v1182_v37  ;;  %1697 = vmatprep.subr.bf16.mxu0 %v6695_v24  ;;  %v1183_v38 = vpack.c.bf16 %v1168_v10, %v1168_v10  ;;  %v6717_v24 = vld [vmem:[#allocation12 + $0x70] ss:$8 sps:$4 sm:$0xff]  }
 0x23e   :  { %6390 = vmatpush3.bf16.msra.mxu1 %v1279_v39  ;;  %v1170_v12 = vpop.f32.mrf.mxu0  ;;  %v1175_v39 = vpack.c.bf16 %v8086_v14, %v8086_v14 }
 0x23f   :  { %6391 = vmatprep.subr.bf16.mxu1 %v1180_v36 }
 0x240   :  { %1698 = vmatpush1.bf16.msra.mxu0 %v6693_v25  ;;  %v6719_v25 = vld [vmem:[#allocation12 + $0x74] ss:$8 sps:$4 sm:$0xff]  }
 0x241   :  { %1699 = vmatprep.subr.bf16.mxu0 %v6698_v58  ;;  %v6707_v58 = vld [vmem:[#allocation9 + $0xe4] ss:$8 sps:$4 sm:$0xff]  }
 0x242   :  { %6392 = vmatpush3.bf16.msra.mxu1 %v1180_v36 }
 0x243   :  { %6397 = vmatprep.subr.bf16.mxu1 %v8095_v40 }
 0x244   :  { %1700 = vmatpush1.bf16.msra.mxu0 %v6696_v3  ;;  %v6705_v3 = vld [vmem:[#allocation9 + $0xe0] ss:$8 sps:$4 sm:$0xff]  }
 0x2ce   :  { %v6387_v41 = vpop.f32.mrf.mxu1 }
 0x2cf   :  { %v1234_v42 = vmul.f32 0.088388346, %v6387_v41  ;;  %v1424_v41 = vsel %vm1277_vm0, %v1183_v38, 0 }
 0x2d0   :  { %v1218_v43 = vpop.f32.mrf.mxu1 }
 0x2d1   :  { %v1232_v46 = vmul.f32 0.088388346, %v1218_v43  ;;  %v1242_v48 = vsel %vm1235_vm1, %v1234_v42, -inf }
 0x2d2   :  { %1243 = vmax.xlane.f32.xlu1 %v1242_v48  ;;  %v6388_v49 = vpop.f32.mrf.mxu1 }
 0x2d3   :  { %v1236_v50 = vsel %vm1235_vm1, %v1232_v46, -inf }
 0x2d4   :  { %1237 = vmax.xlane.f32.xlu0 %v1236_v50  ;;  %v1221_v51 = vpop.f32.mrf.mxu1 }
 0x2d5   :  { %v1233_v52 = vmul.f32 0.088388346, %v1221_v51 }
 0x2d7   :  { %v1239_v53 = vsel %vm1235_vm1, %v1233_v52, -inf }
 0x2d8   :  { %1240 = vmax.xlane.f32.xlu0 %v1239_v53 }
 0x35b   :  { %v1244_v54 = vpop.xlane.xlu1 %1243 }
 0x35c   :  { %v1247_v55 = vsub.f32 %v1234_v42, %v1244_v54 }
 0x35d   :  { %v1238_v56 = vpop.xlane.xlu0 %1237 }
 0x35e   :  { %v1245_v57 = vsub.f32 %v1232_v46, %v1238_v56  ;;  %v1252_v59 = vmul.f32 1.442695, %v1247_v55 }
 0x360   :  { %v1248_v60 = vmul.f32 1.442695, %v1245_v57 }
 0x361   :  { %v1241_v61 = vpop.xlane.xlu0 %1240 }
 0x362   :  { %7302 = vpow2.f32 %v1248_v60  ;;  %v1246_v62 = vsub.f32 %v1233_v52, %v1241_v61 }
 0x363   :  { %7304 = vpow2.f32 %v1252_v59 }
 0x364   :  { %v1250_v63 = vmul.f32 1.442695, %v1246_v62 }
 0x366   :  { %7306 = vpow2.f32 %v1250_v63 }
 0x36f   :  { %v7303_v0 = vpop.eup %7302 }
 0x370   :  { %v1254_v1 = vsel %vm1235_vm1, %v7303_v0, 0.0  ;;  %v7305_v2 = vpop.eup %7304 }
 0x371   :  { %1255 = vadd.xlane.f32.xlu1 %v1254_v1  ;;  %v1260_v5 = vsel %vm1235_vm1, %v7305_v2, 0.0 }
 0x373   :  { %v7307_v4 = vpop.eup %7306 }
 0x374   :  { %v1257_v6 = vsel %vm1235_vm1, %v7307_v4, 0.0 }
 0x375   :  { %1261 = vadd.xlane.f32.xlu1 %v1260_v5  ;;  %1258 = vadd.xlane.f32.xlu0 %v1257_v6 }
 0x3fa   :  { %v1256_v26 = vpop.xlane.xlu1 %1255 }
 0x3fb   :  { %7308 = vrcp.f32 %v1256_v26  ;;  %v6723_v26 = vld [vmem:[#allocation12 + $0x60] ss:$8 sps:$4 sm:$0xff]  }
 0x3fe   :  { %v1262_v27 = vpop.xlane.xlu1 %1261  ;;  %v1259_v28 = vpop.xlane.xlu0 %1258 }
 0x3ff   :  { %7310 = vrcp.f32 %v1262_v27  ;;  %v6725_v27 = vld [vmem:[#allocation12 + $0x64] ss:$8 sps:$4 sm:$0xff]  }
 0x400   :  { %7312 = vrcp.f32 %v1259_v28 }
 0x408   :  { %v7309_v29 = vpop.eup %7308 }
 0x409   :  { %v1266_v33 = vmul.f32 %v7309_v29, %v7303_v0 }
 0x40c   :  { %v7311_v30 = vpop.eup %7310 }
 0x40d   :  { %v7313_v31 = vpop.eup %7312  ;;  %v1268_v32 = vmul.f32 %v7311_v30, %v7305_v2 }
 0x40e   :  { %v1267_v35 = vmul.f32 %v7313_v31, %v7307_v4 }
 0x40f   :  { %v1270_v36 = vpack.c.bf16 %v1268_v32, %v1268_v32 }
 0x410   :  { %v1269_v37 = vpack.c.bf16 %v1267_v35, %v1266_v33 }
 0x412   :  { %6393 = vmatprep.mubr.msk.bf16.mxu1 %vm1235_vm1, %v1269_v37 }
 0x413   :  { %6394 = vmatmul.mubr.msk.bf16.vlgmr.msra.gmra.mxu1 %vm1235_vm1, %v1270_v36 }
 0x414   :  { %6398 = vmatpush3.bf16.xpose.msra.mxu1 %v8095_v40  ;;  %6401 = vmatprep.mubr.bf16.mxu1 %v1173_v9  ;;  %v6699_v9 = vld [vmem:[#allocation9] ss:$8 sps:$4 sm:$0xff]   ;;  %v6701_v40 = vld [vmem:[#allocation9 + $0x4] ss:$8 sps:$4 sm:$0xff]  }
 0x415   :  { %6399 = vmatprep.subr.bf16.mxu1 %v8082_v7  ;;  %1701 = vmatprep.subr.bf16.mxu0 %v6701_v40  ;;  %v6708_v40 = vld [vmem:[#allocation9 + $0xd0] ss:$8 sps:$4 sm:$0xff]  }
 0x416   :  { %1702 = vmatpush1.bf16.msra.mxu0 %v6699_v9  ;;  %v6710_v9 = vld [vmem:[#allocation9 + $0xd4] ss:$8 sps:$4 sm:$0xff]  }
 0x417   :  { %2365 = vmatprep.subr.bf16.mxu0 %v6719_v25  ;;  %v6801_v25 = vld [vmem:[#allocation12 + $0x90] ss:$8 sps:$4 sm:$0xff]  }
 0x41c   :  { %6400 = vmatpush3.bf16.xpose.msra.mxu1 %v8082_v7  ;;  %v7778_v7 = vmov 0  }
 0x41d   :  { %6470 = vmatprep.subr.msk.bf16.mxu1 %vm1277_vm0, %v1183_v38  ;;  %1719 = vmatprep.mubr.bf16.mxu0 %v7778_v7 }
 0x41e   :  { %6533 = vset.pattern.permute.xlu0 %v7778_v7 }
 0x423   :  { %6402 = vmatmul.mubr.bf16.vlgmr.msra.gmra.mxu1 %v1175_v39 }
 0x424   :  { %6406 = vmatpush3.bf16.msra.mxu1 %v1424_v41  ;;  %v6702_v41 = vld [vmem:[#allocation9 + $0xf0] ss:$8 sps:$4 sm:$0xff]  }
 0x425   :  { %6407 = vmatprep.subr.bf16.mxu1 %v8091_v34 }
 0x428   :  { %6408 = vmatpush3.bf16.msra.mxu1 %v8091_v34 }
 0x429   :  { %1556 = vmatprep.subr.bf16.mxu1 %v6704_v22  ;;  %v6791_v22 = vld [vmem:[#allocation12 + $0xb4] ss:$8 sps:$4 sm:$0xff]  }
 0x4d3   :  { %v6395_v14 = vpop.f32.mrf.mxu1 }
 0x4d4   :  { %v1330_v34 = vpack.c.bf16 %v6395_v14, %v6395_v14  ;;  %v6713_v14 = vld [vmem:[#allocation9 + $0xc4] ss:$8 sps:$4 sm:$0xff]  }
 0x4d5   :  { %v1315_v42 = vpop.f32.mrf.mxu1 }
 0x4d7   :  { %v6396_v43 = vpop.f32.mrf.mxu1 }
 0x4d8   :  { %v6716_v43 = vld [vmem:[#allocation9 + $0xb4] ss:$8 sps:$4 sm:$0xff]  }
 0x4d9   :  { %v1318_v46 = vpop.f32.mrf.mxu1 }
 0x4da   :  { %v1329_v48 = vpack.c.bf16 %v1318_v46, %v1315_v42  ;;  %v6711_v42 = vld [vmem:[#allocation9 + $0xc0] ss:$8 sps:$4 sm:$0xff]   ;;  %v6714_v46 = vld [vmem:[#allocation9 + $0xb0] ss:$8 sps:$4 sm:$0xff]  }
 0x4dc   :  { %1720 = vmatmul.mubr.bf16.vlgmr.msra.gmra.mxu0 %v1329_v48  ;;  %v6722_v48 = vld [vmem:[#allocation9 + $0xa4] ss:$8 sps:$4 sm:$0xff]  }
 0x4dd   :  { %1729 = vmatprep.mubr.bf16.mxu0 %v7778_v7  ;;  %2366 = vmatpush1.bf16.msra.mxu0 %v6717_v24  ;;  %v6797_v24 = vld [vmem:[#allocation12 + $0xa4] ss:$8 sps:$4 sm:$0xff]  }
 0x4de   :  { %2367 = vmatprep.subr.bf16.mxu0 %v6725_v27  ;;  %v6807_v27 = vld [vmem:[#allocation12 + $0x80] ss:$8 sps:$4 sm:$0xff]  }
 0x4e1   :  { %2368 = vmatpush1.bf16.msra.mxu0 %v6723_v26  ;;  %v6803_v26 = vld [vmem:[#allocation12 + $0x94] ss:$8 sps:$4 sm:$0xff]  }
 0x4e3   :  { %v6403_v49 = vpop.f32.mrf.mxu1 }
 0x4e4   :  { %1730 = vmatmul.mubr.bf16.gmra.mxu0 %v1330_v34  ;;  %v1381_v53 = vmul.f32 0.088388346, %v6403_v49  ;;  %v6720_v34 = vld [vmem:[#allocation9 + $0xa0] ss:$8 sps:$4 sm:$0xff]   ;;  %v6728_v49 = vld [vmem:[#allocation9 + $0x94] ss:$8 sps:$4 sm:$0xff]  }
 0x4e5   :  { %v1365_v50 = vpop.f32.mrf.mxu1 }
 0x4e6   :  { %v1379_v51 = vmul.f32 0.088388346, %v1365_v50  ;;  %v1388_v57 = vsel %vm1235_vm1, %v1381_v53, -inf  ;;  %v6726_v50 = vld [vmem:[#allocation9 + $0x90] ss:$8 sps:$4 sm:$0xff]  }
 0x4e7   :  { %v6404_v52 = vpop.f32.mrf.mxu1 }
 0x4e8   :  { %v1382_v54 = vsel %vm1235_vm1, %v1379_v51, -inf  ;;  %v6729_v52 = vld [vmem:[#allocation12 + $0x50] ss:$8 sps:$4 sm:$0xff]  }
 0x4e9   :  { %1383 = vmax.xlane.f32.xlu0 %v1382_v54  ;;  %v1368_v55 = vpop.f32.mrf.mxu1  ;;  %v6732_v54 = vld [vmem:[#allocation9 + $0x80] ss:$8 sps:$4 sm:$0xff]  }
 0x4ea   :  { %v1380_v56 = vmul.f32 0.088388346, %v1368_v55  ;;  %v6737_v55 = vld [vmem:[#allocation12 + $0x44] ss:$8 sps:$4 sm:$0xff]  }
 0x4ec   :  { %v1385_v59 = vsel %vm1235_vm1, %v1380_v56, -inf }
 0x4ed   :  { %1389 = vmax.xlane.f32.xlu0 %v1388_v57  ;;  %1386 = vmax.xlane.f32.xlu1 %v1385_v59  ;;  %v6740_v57 = vld [vmem:[#allocation11 + $0x74] ss:$8 sps:$4 sm:$0xff]   ;;  %v6741_v59 = vld [vmem:[#allocation12 + $0x30] ss:$8 sps:$4 sm:$0xff]  }
 0x572   :  { %v1384_v60 = vpop.xlane.xlu0 %1383 }
 0x573   :  { %v1391_v61 = vsub.f32 %v1379_v51, %v1384_v60  ;;  %v6731_v51 = vld [vmem:[#allocation12 + $0x54] ss:$8 sps:$4 sm:$0xff]  }
 0x574   :  { %2369 = vmatprep.subr.bf16.mxu0 %v6731_v51  ;;  %v6743_v60 = vld [vmem:[#allocation12 + $0x34] ss:$8 sps:$4 sm:$0xff]  }
 0x575   :  { %v1394_v62 = vmul.f32 1.442695, %v1391_v61  ;;  %2370 = vmatpush1.bf16.msra.mxu0 %v6729_v52  ;;  %v6747_v61 = vld [vmem:[#allocation12 + $0x20] ss:$8 sps:$4 sm:$0xff]   ;;  %v6776_v51 = vld [vmem:[#allocation11 + $0x14] ss:$8 sps:$4 sm:$0xff]  }
 0x576   :  { %v1390_v63 = vpop.xlane.xlu0 %1389  ;;  %v1387_v0 = vpop.xlane.xlu1 %1386  ;;  %2371 = vmatprep.subr.bf16.mxu0 %v6737_v55  ;;  %v6774_v52 = vld [vmem:[#allocation11 + $0x10] ss:$8 sps:$4 sm:$0xff]   ;;  %v6788_v55 = vld [vmem:[#allocation11 + $0xf4] ss:$8 sps:$4 sm:$0xff]  }
 0x577   :  { %7314 = vpow2.f32 %v1394_v62  ;;  %v1393_v1 = vsub.f32 %v1381_v53, %v1390_v63  ;;  %v1392_v2 = vsub.f32 %v1380_v56, %v1387_v0  ;;  %v6734_v53 = vld [vmem:[#allocation9 + $0x84] ss:$8 sps:$4 sm:$0xff]   ;;  %v6735_v56 = vld [vmem:[#allocation12 + $0x40] ss:$8 sps:$4 sm:$0xff]   ;;  %v6753_v63 = vld [vmem:[#allocation12 + $0x10] ss:$8 sps:$4 sm:$0xff]  }
 0x578   :  { %v6749_v62 = vld [vmem:[#allocation12 + $0x24] ss:$8 sps:$4 sm:$0xff]   ;;  %v6755_v0 = vld [vmem:[#allocation12 + $0x14] ss:$8 sps:$4 sm:$0xff]  }
 0x579   :  { %v1398_v4 = vmul.f32 1.442695, %v1393_v1  ;;  %v1396_v5 = vmul.f32 1.442695, %v1392_v2  ;;  %2372 = vmatpush1.bf16.msra.mxu0 %v6735_v56  ;;  %v6759_v1 = vld [vmem:[#allocation12] ss:$8 sps:$4 sm:$0xff]  }
 0x57a   :  { %2373 = vmatprep.subr.bf16.mxu0 %v6743_v60  ;;  %v6761_v2 = vld [vmem:[#allocation12 + $0x4] ss:$8 sps:$4 sm:$0xff]   ;;  %v6786_v56 = vld [vmem:[#allocation11 + $0xf0] ss:$8 sps:$4 sm:$0xff]   ;;  %v6800_v60 = vld [vmem:[#allocation11 + $0xd4] ss:$8 sps:$4 sm:$0xff]  }
 0x57b   :  { %7316 = vpow2.f32 %v1398_v4  ;;  %v6765_v4 = vld [vmem:[#allocation12 + $0xf0] ss:$8 sps:$4 sm:$0xff]  }
 0x57c   :  { %7318 = vpow2.f32 %v1396_v5  ;;  %v6767_v5 = vld [vmem:[#allocation12 + $0xf4] ss:$8 sps:$4 sm:$0xff]  }
 0x57d   :  { %2374 = vmatpush1.bf16.msra.mxu0 %v6741_v59  ;;  %v6792_v59 = vld [vmem:[#allocation11 + $0xe0] ss:$8 sps:$4 sm:$0xff]  }
 0x57e   :  { %2375 = vmatprep.subr.bf16.mxu0 %v6749_v62  ;;  %v6806_v62 = vld [vmem:[#allocation11 + $0xc4] ss:$8 sps:$4 sm:$0xff]  }
 0x581   :  { %2376 = vmatpush1.bf16.msra.mxu0 %v6747_v61  ;;  %v6798_v61 = vld [vmem:[#allocation11 + $0xd0] ss:$8 sps:$4 sm:$0xff]  }
 0x582   :  { %2377 = vmatprep.subr.bf16.mxu0 %v6755_v0  ;;  %v6812_v0 = vld [vmem:[#allocation11 + $0xb4] ss:$8 sps:$4 sm:$0xff]  }
 0x584   :  { %v7315_v6 = vpop.eup %7314 }
 0x585   :  { %v1400_v8 = vsel %vm1235_vm1, %v7315_v6, 0.0  ;;  %2378 = vmatpush1.bf16.msra.mxu0 %v6753_v63  ;;  %v6804_v63 = vld [vmem:[#allocation11 + $0xc0] ss:$8 sps:$4 sm:$0xff]  }
 0x586   :  { %1401 = vadd.xlane.f32.xlu1 %v1400_v8  ;;  %2379 = vmatprep.subr.bf16.mxu0 %v6761_v2  ;;  %v6773_v8 = vld [vmem:[#allocation12 + $0xe4] ss:$8 sps:$4 sm:$0xff]  }
 0x587   :  { %v6815_v2 = vld [vmem:[#allocation11 + $0xa4] ss:$8 sps:$4 sm:$0xff]  }
 0x588   :  { %v7317_v10 = vpop.eup %7316 }
 0x589   :  { %v7319_v11 = vpop.eup %7318  ;;  %v1406_v12 = vsel %vm1235_vm1, %v7317_v10, 0.0  ;;  %2380 = vmatpush1.bf16.msra.mxu0 %v6759_v1  ;;  %v6810_v1 = vld [vmem:[#allocation11 + $0xb0] ss:$8 sps:$4 sm:$0xff]  }
 0x58a   :  { %1407 = vadd.xlane.f32.xlu1 %v1406_v12  ;;  %v1403_v13 = vsel %vm1235_vm1, %v7319_v11, 0.0  ;;  %2381 = vmatprep.subr.bf16.mxu0 %v6767_v5  ;;  %v6783_v12 = vld [vmem:[#allocation12 + $0xc0] ss:$8 sps:$4 sm:$0xff]   ;;  %v6818_v5 = vld [vmem:[#allocation11 + $0x94] ss:$8 sps:$4 sm:$0xff]  }
 0x58b   :  { %1404 = vadd.xlane.f32.xlu0 %v1403_v13  ;;  %v6785_v13 = vld [vmem:[#allocation12 + $0xc4] ss:$8 sps:$4 sm:$0xff]  }
 0x58d   :  { %2382 = vmatpush2.bf16.msra.mxu0 %v6765_v4  ;;  %v6813_v4 = vld [vmem:[#allocation11 + $0xa0] ss:$8 sps:$4 sm:$0xff]  }
 0x58e   :  { %2383 = vmatprep.subr.bf16.mxu0 %v6773_v8  ;;  %v6821_v8 = vld [vmem:[#allocation11 + $0x84] ss:$8 sps:$4 sm:$0xff]  }
 0x59c   :  { %v8127_v15 = vpop.f32.mrf.mxu0 }
 0x59e   :  { %v8129_v16 = vpop.f32.mrf.mxu0 }
 0x5a0   :  { %v8131_v17 = vpop.f32.mrf.mxu0 }
 0x5a2   :  { %v8133_v18 = vpop.f32.mrf.mxu0 }
 0x5a4   :  { %v8135_v19 = vpop.f32.mrf.mxu0 }
 0x5a6   :  { %v8137_v20 = vpop.f32.mrf.mxu0 }
 0x5a8   :  { %v1735_v21 = vpop.f32.mrf.mxu0 }
 0x5a9   :  { %v6789_v21 = vld [vmem:[#allocation12 + $0xb0] ss:$8 sps:$4 sm:$0xff]  }
 0x5aa   :  { %v1736_v23 = vpop.f32.mrf.mxu0 }
 0x5ab   :  { %v6795_v23 = vld [vmem:[#allocation12 + $0xa0] ss:$8 sps:$4 sm:$0xff]  }
 0x60f   :  { %v1402_v28 = vpop.xlane.xlu1 %1401 }
 0x610   :  { %7320 = vrcp.f32 %v1402_v28  ;;  %v6809_v28 = vld [vmem:[#allocation12 + $0x84] ss:$8 sps:$4 sm:$0xff]  }
 0x613   :  { %v1408_v29 = vpop.xlane.xlu1 %1407 }
 0x614   :  { %v1405_v30 = vpop.xlane.xlu0 %1404  ;;  %7322 = vrcp.f32 %v1408_v29  ;;  %v8143_v29 = vld [vmem:[%s8604_s19 + $0x8] sm:$0xff] }
 0x615   :  { %7324 = vrcp.f32 %v1405_v30  ;;  %v8146_v30 = vld [vmem:[%s8604_s19 + $0x18] sm:$0xff] }
 0x61d   :  { %v7321_v31 = vpop.eup %7320 }
 0x61e   :  { %v1412_v36 = vmul.f32 %v7321_v31, %v7315_v6  ;;  %v6771_v6 = vld [vmem:[#allocation12 + $0xe0] ss:$8 sps:$4 sm:$0xff]   ;;  %v8150_v31 = vpack.c.bf16 %v8146_v30, %v8143_v29 }
 0x61f   :  { %2384 = vmatpush2.bf16.msra.mxu0 %v6771_v6  ;;  %v6816_v6 = vld [vmem:[#allocation11 + $0x90] ss:$8 sps:$4 sm:$0xff]  }
 0x620   :  { %2397 = vmatprep.mubr.bf16.mxu0 %v8150_v31 }
 0x621   :  { %v7323_v32 = vpop.eup %7322 }
 0x622   :  { %v7325_v33 = vpop.eup %7324  ;;  %v1414_v35 = vmul.f32 %v7323_v32, %v7317_v10  ;;  %v6777_v10 = vld [vmem:[#allocation12 + $0xd0] ss:$8 sps:$4 sm:$0xff]   ;;  %v8153_v32 = vld [vmem:[%s8604_s19] sm:$0xff] }
 0x623   :  { %v1413_v37 = vmul.f32 %v7325_v33, %v7319_v11  ;;  %v6779_v11 = vld [vmem:[#allocation12 + $0xd4] ss:$8 sps:$4 sm:$0xff]  }
 0x624   :  { %v1416_v38 = vpack.c.bf16 %v1414_v35, %v1414_v35  ;;  %2385 = vmatprep.subr.bf16.mxu0 %v6779_v11  ;;  %v8156_v33 = vld [vmem:[%s8604_s19 + $0x10] sm:$0xff]  ;;  %v7779_v11 = vmov 0.0  }
 0x625   :  { %v1415_v39 = vpack.c.bf16 %v1413_v37, %v1412_v36  ;;  %2386 = vmatpush2.bf16.msra.mxu0 %v6777_v10  ;;  %v8160_v35 = vpack.c.bf16 %v8156_v33, %v8153_v32  ;;  %v6819_v10 = vld [vmem:[#allocation11 + $0x80] ss:$8 sps:$4 sm:$0xff]  }
 0x626   :  { %2387 = vmatprep.subr.bf16.mxu0 %v6785_v13 }
 0x627   :  { %6409 = vmatprep.mubr.msk.bf16.mxu1 %vm1235_vm1, %v1415_v39 }
 0x628   :  { %6410 = vmatmul.mubr.msk.bf16.vlgmr.msra.gmra.mxu1 %vm1235_vm1, %v1416_v38 }
 0x629   :  { %1557 = vmatpush1.bf16.msra.mxu1 %v6702_v41  ;;  %1588 = vmatprep.mubr.bf16.mxu1 %v7778_v7  ;;  %v6738_v41 = vld [vmem:[#allocation11 + $0x70] ss:$8 sps:$4 sm:$0xff]  }
 0x62a   :  { %1558 = vmatprep.subr.bf16.mxu1 %v6707_v58  ;;  %2388 = vmatpush2.bf16.msra.mxu0 %v6783_v12  ;;  %v1911_v12 = vld [vmem:[%s8605_s11] sm:$0x3] }
 0x62b   :  { %2389 = vmatprep.subr.bf16.mxu0 %v6791_v22  ;;  %v2198_v13 = vrot.slane %v1911_v12, %v8071_v47 }
 0x62d   :  { %1559 = vmatpush1.bf16.msra.mxu1 %v6705_v3  ;;  %v6746_v3 = vld [vmem:[#allocation11 + $0x64] ss:$8 sps:$4 sm:$0xff]  }
 0x62e   :  { %1560 = vmatprep.subr.bf16.mxu1 %v6710_v9  ;;  %2390 = vmatpush2.bf16.msra.mxu0 %v6789_v21  ;;  %v6744_v9 = vld [vmem:[#allocation11 + $0x60] ss:$8 sps:$4 sm:$0xff]   ;;  %v2202_v21 = vrot.slane %v1911_v12, %v8067_v45  ;;  %v6845_v12 = vld [vmem:[#allocation14 + $0x4] ss:$8 sps:$4 sm:$0xff]  }
 0x62f   :  { %2391 = vmatprep.subr.bf16.mxu0 %v6797_v24 }
 0x631   :  { %1561 = vmatpush1.bf16.msra.mxu1 %v6708_v40  ;;  %v6752_v40 = vld [vmem:[#allocation11 + $0x54] ss:$8 sps:$4 sm:$0xff]  }
 0x632   :  { %1562 = vmatprep.subr.bf16.mxu1 %v6713_v14  ;;  %2392 = vmatpush2.bf16.msra.mxu0 %v6795_v23  ;;  %v6750_v14 = vld [vmem:[#allocation11 + $0x50] ss:$8 sps:$4 sm:$0xff]  }
 0x633   :  { %2393 = vmatprep.subr.bf16.mxu0 %v6803_v26 }
 0x635   :  { %1563 = vmatpush1.bf16.msra.mxu1 %v6711_v42 }
 0x636   :  { %1564 = vmatprep.subr.bf16.mxu1 %v6716_v43  ;;  %2394 = vmatpush2.bf16.msra.mxu0 %v6801_v25  ;;  %v6758_v43 = vld [vmem:[#allocation11 + $0x44] ss:$8 sps:$4 sm:$0xff]  }
 0x637   :  { %2395 = vmatprep.subr.bf16.mxu0 %v6809_v28 }
 0x639   :  { %1565 = vmatpush1.bf16.msra.mxu1 %v6714_v46  ;;  %v6756_v46 = vld [vmem:[#allocation11 + $0x40] ss:$8 sps:$4 sm:$0xff]  }
 0x63a   :  { %1566 = vmatprep.subr.bf16.mxu1 %v6722_v48  ;;  %2396 = vmatpush2.bf16.msra.mxu0 %v6807_v27  ;;  %v6764_v48 = vld [vmem:[#allocation11 + $0x34] ss:$8 sps:$4 sm:$0xff]  }
 0x63b   :  { %6413 = vmatprep.subr.bf16.mxu0 %v7779_v11 }
 0x63d   :  { %1567 = vmatpush1.bf16.msra.mxu1 %v6720_v34  ;;  %2398 = vmatmul.mubr.bf16.vlgmr.msra.gmra.mxu0 %v8160_v35  ;;  %v6762_v34 = vld [vmem:[#allocation11 + $0x30] ss:$8 sps:$4 sm:$0xff]  }
 0x63e   :  { %1568 = vmatprep.subr.bf16.mxu1 %v6728_v49  ;;  %v6770_v49 = vld [vmem:[#allocation11 + $0x24] ss:$8 sps:$4 sm:$0xff]   ;;  %6415 = vmatprep.mubr.msk.bf16.mxu0 %vm7780_vm2, %v7779_v11 }
 0x641   :  { %1569 = vmatpush1.bf16.msra.mxu1 %v6726_v50  ;;  %v6768_v50 = vld [vmem:[#allocation11 + $0x20] ss:$8 sps:$4 sm:$0xff]  }
 0x642   :  { %1570 = vmatprep.subr.bf16.mxu1 %v6734_v53  ;;  %v6782_v53 = vld [vmem:[#allocation11 + $0x4] ss:$8 sps:$4 sm:$0xff]  }
 0x645   :  { %1571 = vmatpush1.bf16.msra.mxu1 %v6732_v54  ;;  %v6780_v54 = vld [vmem:[#allocation11] ss:$8 sps:$4 sm:$0xff]  }
 0x646   :  { %2151 = vmatprep.subr.bf16.mxu1 %v6740_v57  ;;  %v6794_v57 = vld [vmem:[#allocation11 + $0xe4] ss:$8 sps:$4 sm:$0xff]  }
 0x6e8   :  { %v6411_v36 = vpop.f32.mrf.mxu1 }
 0x6e9   :  { %v1475_v42 = vpack.c.bf16 %v6411_v36, %v6411_v36 }
 0x6ea   :  { %v1460_v37 = vpop.f32.mrf.mxu1 }
 0x6ec   :  { %v6412_v38 = vpop.f32.mrf.mxu1 }
 0x6ee   :  { %v1463_v39 = vpop.f32.mrf.mxu1 }
 0x6ef   :  { %v1474_v58 = vpack.c.bf16 %v1463_v39, %v1460_v37 }
 0x6f1   :  { %1589 = vmatmul.mubr.bf16.vlgmr.msra.gmra.mxu1 %v1474_v58 }
 0x6f2   :  { %2152 = vmatpush1.bf16.msra.mxu1 %v6738_v41  ;;  %1598 = vmatprep.mubr.bf16.mxu1 %v7778_v7 }
 0x6f3   :  { %2153 = vmatprep.subr.bf16.mxu1 %v6746_v3 }
 0x6f6   :  { %2154 = vmatpush1.bf16.msra.mxu1 %v6744_v9 }
 0x6f7   :  { %2155 = vmatprep.subr.bf16.mxu1 %v6752_v40 }
 0x6f9   :  { %1599 = vmatmul.mubr.bf16.gmra.mxu1 %v1475_v42  ;;  %v1878_v42 = vld [vmem:[%s8606_s15] sm:$0x3] }
 0x6fa   :  { %2156 = vmatpush1.bf16.msra.mxu1 %v6750_v14  ;;  %2183 = vmatprep.mubr.bf16.mxu1 %v8150_v31 }
 0x6fb   :  { %2157 = vmatprep.subr.bf16.mxu1 %v6758_v43  ;;  %v1988_v43 = vrot.slane %v1878_v42, %v8067_v45 }
 0x6fd   :  { %v2399_v22 = vpop.f32.mrf.mxu0 }
 0x6fe   :  { %2158 = vmatpush1.bf16.msra.mxu1 %v6756_v46  ;;  %v2400_v24 = vadd.f32 %v2399_v22, %v2198_v13  ;;  %v6846_v22 = vld [vmem:[#allocation14 + $0xf0] ss:$8 sps:$4 sm:$0xff]  }
 0x6ff   :  { %2159 = vmatprep.subr.bf16.mxu1 %v6764_v48  ;;  %v2401_v23 = vpop.f32.mrf.mxu0  ;;  %v1984_v48 = vrot.slane %v1878_v42, %v8071_v47  ;;  %v6863_v42 = vld [vmem:[#allocation14 + $0xa4] ss:$8 sps:$4 sm:$0xff]  }
 0x700   :  { %v8172_v25 = vadd.f32 %v2401_v23, %v2202_v21  ;;  %v6851_v23 = vld [vmem:[#allocation14 + $0xe4] ss:$8 sps:$4 sm:$0xff]  }
 0x701   :  { %v2403_v26 = vpop.f32.mrf.mxu0 }
 0x702   :  { %2160 = vmatpush1.bf16.msra.mxu1 %v6762_v34  ;;  %v2404_v27 = vadd.f32 %v2403_v26, %v2198_v13  ;;  %v6843_v13 = vld [vmem:[#allocation14] ss:$8 sps:$4 sm:$0xff]   ;;  %v6854_v26 = vld [vmem:[#allocation14 + $0xd4] ss:$8 sps:$4 sm:$0xff]  }
 0x703   :  { %2161 = vmatprep.subr.bf16.mxu1 %v6770_v49  ;;  %v2405_v28 = vpop.f32.mrf.mxu0 }
 0x704   :  { %v2624_v36 = vpack.c.bf16 %v2404_v27, %v2400_v24  ;;  %v8174_v37 = vadd.f32 %v2405_v28, %v2202_v21  ;;  %v6848_v21 = vld [vmem:[#allocation14 + $0xf4] ss:$8 sps:$4 sm:$0xff]   ;;  %v6849_v24 = vld [vmem:[#allocation14 + $0xe0] ss:$8 sps:$4 sm:$0xff]   ;;  %v6852_v27 = vld [vmem:[#allocation14 + $0xd0] ss:$8 sps:$4 sm:$0xff]  }
 0x705   :  { %v6857_v28 = vld [vmem:[#allocation14 + $0xc4] ss:$8 sps:$4 sm:$0xff]  }
 0x706   :  { %2162 = vmatpush1.bf16.msra.mxu1 %v6768_v50  ;;  %6414 = vmatpush3.bf16.xpose.msra.mxu0 %v2624_v36  ;;  %v6855_v36 = vld [vmem:[#allocation14 + $0xc0] ss:$8 sps:$4 sm:$0xff]  }
 0x707   :  { %2163 = vmatprep.subr.bf16.mxu1 %v6776_v51  ;;  %6419 = vmatprep.subr.bf16.mxu0 %v7779_v11 }
 0x70a   :  { %2164 = vmatpush1.bf16.msra.mxu1 %v6774_v52 }
 0x70b   :  { %2165 = vmatprep.subr.bf16.mxu1 %v6782_v53 }
 0x70e   :  { %2166 = vmatpush1.bf16.msra.mxu1 %v6780_v54 }
 0x70f   :  { %2167 = vmatprep.subr.bf16.mxu1 %v6788_v55 }
 0x712   :  { %2168 = vmatpush2.bf16.msra.mxu1 %v6786_v56 }
 0x713   :  { %2169 = vmatprep.subr.bf16.mxu1 %v6794_v57  ;;  %v6822_v57 = vld [vmem:[#allocation14 + $0x70] ss:$8 sps:$4 sm:$0xff]  }
 0x716   :  { %2170 = vmatpush2.bf16.msra.mxu1 %v6792_v59  ;;  %v6824_v59 = vld [vmem:[#allocation14 + $0x74] ss:$8 sps:$4 sm:$0xff]  }
 0x717   :  { %2171 = vmatprep.subr.bf16.mxu1 %v6800_v60  ;;  %v6827_v60 = vld [vmem:[#allocation14 + $0x64] ss:$8 sps:$4 sm:$0xff]  }
 0x71a   :  { %2172 = vmatpush2.bf16.msra.mxu1 %v6798_v61  ;;  %v6825_v61 = vld [vmem:[#allocation14 + $0x60] ss:$8 sps:$4 sm:$0xff]  }
 0x71b   :  { %2173 = vmatprep.subr.bf16.mxu1 %v6806_v62  ;;  %v6830_v62 = vld [vmem:[#allocation14 + $0x54] ss:$8 sps:$4 sm:$0xff]  }
 0x71e   :  { %2174 = vmatpush2.bf16.msra.mxu1 %v6804_v63  ;;  %v6828_v63 = vld [vmem:[#allocation14 + $0x50] ss:$8 sps:$4 sm:$0xff]  }
 0x71f   :  { %2175 = vmatprep.subr.bf16.mxu1 %v6812_v0  ;;  %v6833_v0 = vld [vmem:[#allocation14 + $0x44] ss:$8 sps:$4 sm:$0xff]  }
 0x722   :  { %2176 = vmatpush2.bf16.msra.mxu1 %v6810_v1  ;;  %v6831_v1 = vld [vmem:[#allocation14 + $0x40] ss:$8 sps:$4 sm:$0xff]  }
 0x723   :  { %2177 = vmatprep.subr.bf16.mxu1 %v6815_v2  ;;  %v6836_v2 = vld [vmem:[#allocation14 + $0x34] ss:$8 sps:$4 sm:$0xff]  }
 0x726   :  { %2178 = vmatpush2.bf16.msra.mxu1 %v6813_v4  ;;  %v6834_v4 = vld [vmem:[#allocation14 + $0x30] ss:$8 sps:$4 sm:$0xff]  }
 0x727   :  { %2179 = vmatprep.subr.bf16.mxu1 %v6818_v5  ;;  %v6839_v5 = vld [vmem:[#allocation14 + $0x24] ss:$8 sps:$4 sm:$0xff]  }
 0x72a   :  { %2180 = vmatpush2.bf16.msra.mxu1 %v6816_v6  ;;  %v6837_v6 = vld [vmem:[#allocation14 + $0x20] ss:$8 sps:$4 sm:$0xff]  }
 0x72b   :  { %2181 = vmatprep.subr.bf16.mxu1 %v6821_v8  ;;  %v6842_v8 = vld [vmem:[#allocation14 + $0x14] ss:$8 sps:$4 sm:$0xff]  }
 0x72e   :  { %2182 = vmatpush2.bf16.msra.mxu1 %v6819_v10  ;;  %v6840_v10 = vld [vmem:[#allocation14 + $0x10] ss:$8 sps:$4 sm:$0xff]  }
 0x72f   :  { %2579 = vmatprep.subr.bf16.mxu1 %v6824_v59 }
 0x731   :  { %2184 = vmatmul.mubr.bf16.vlgmr.msra.gmra.mxu1 %v8160_v35 }
 0x732   :  { %2611 = vmatprep.mubr.bf16.mxu1 %v8150_v31  ;;  %v2625_v31 = vpack.c.bf16 %v8174_v37, %v8172_v25  ;;  %2580 = vmatpush1.bf16.msra.mxu1 %v6822_v57 }
 0x733   :  { %2581 = vmatprep.subr.bf16.mxu1 %v6827_v60 }
 0x736   :  { %2582 = vmatpush1.bf16.msra.mxu1 %v6825_v61 }
 0x737   :  { %2583 = vmatprep.subr.bf16.mxu1 %v6830_v62 }
 0x73a   :  { %2584 = vmatpush1.bf16.msra.mxu1 %v6828_v63 }
 0x73b   :  { %2585 = vmatprep.subr.bf16.mxu1 %v6833_v0 }
 0x73e   :  { %2586 = vmatpush1.bf16.msra.mxu1 %v6831_v1 }
 0x73f   :  { %2587 = vmatprep.subr.bf16.mxu1 %v6836_v2 }
 0x742   :  { %2588 = vmatpush1.bf16.msra.mxu1 %v6834_v4 }
 0x743   :  { %2589 = vmatprep.subr.bf16.mxu1 %v6839_v5 }
 0x746   :  { %2590 = vmatpush1.bf16.msra.mxu1 %v6837_v6 }
 0x747   :  { %2591 = vmatprep.subr.bf16.mxu1 %v6842_v8 }
 0x74a   :  { %2592 = vmatpush1.bf16.msra.mxu1 %v6840_v10  ;;  %v1944_v10 = vld [vmem:[%s8607_s14] sm:$0x3] }
 0x74b   :  { %2593 = vmatprep.subr.bf16.mxu1 %v6845_v12 }
 0x74e   :  { %2594 = vmatpush1.bf16.msra.mxu1 %v6843_v13  ;;  %v2412_v13 = vrot.slane %v1944_v10, %v8071_v47 }
 0x74f   :  { %2595 = vmatprep.subr.bf16.mxu1 %v6848_v21  ;;  %v2416_v21 = vrot.slane %v1944_v10, %v8067_v45 }
 0x752   :  { %2596 = vmatpush2.bf16.msra.mxu1 %v6846_v22 }
 0x753   :  { %2597 = vmatprep.subr.bf16.mxu1 %v6851_v23 }
 0x756   :  { %2598 = vmatpush2.bf16.msra.mxu1 %v6849_v24 }
 0x757   :  { %2599 = vmatprep.subr.bf16.mxu1 %v6854_v26 }
 0x75a   :  { %2600 = vmatpush2.bf16.msra.mxu1 %v6852_v27 }
 0x75b   :  { %2601 = vmatprep.subr.bf16.mxu1 %v6857_v28 }
 0x75e   :  { %2602 = vmatpush2.bf16.msra.mxu1 %v6855_v36 }
 0x7b1   :  { %v8181_v38 = vpop.f32.mrf.mxu1 }
 0x7b3   :  { %v8183_v39 = vpop.f32.mrf.mxu1 }
 0x7b5   :  { %v8185_v41 = vpop.f32.mrf.mxu1 }
 0x7b7   :  { %v8187_v58 = vpop.f32.mrf.mxu1 }
 0x7b9   :  { %v8189_v3 = vpop.f32.mrf.mxu1 }
 0x7bb   :  { %v8191_v9 = vpop.f32.mrf.mxu1 }
 0x7bd   :  { %v1604_v40 = vpop.f32.mrf.mxu1 }
 0x7be   :  { %v6860_v40 = vld [vmem:[#allocation14 + $0xb4] ss:$8 sps:$4 sm:$0xff]  }
 0x7bf   :  { %v1605_v14 = vpop.f32.mrf.mxu1  ;;  %2603 = vmatprep.subr.bf16.mxu1 %v6860_v40 }
 0x7c0   :  { %v6858_v14 = vld [vmem:[#allocation14 + $0xb0] ss:$8 sps:$4 sm:$0xff]  }
 0x7c1   :  { %2604 = vmatpush2.bf16.msra.mxu1 %v6858_v14 }
 0x7c2   :  { %2605 = vmatprep.subr.bf16.mxu1 %v6863_v42  ;;  %v6870_v42 = vld [vmem:[#allocation15 + $0x70] ss:$8 sps:$4 sm:$0xff]  }
 0x7f1   :  { %v2185_v46 = vpop.f32.mrf.mxu1 }
 0x7f2   :  { %v2186_v51 = vadd.f32 %v2185_v46, %v1984_v48  ;;  %v6866_v46 = vld [vmem:[#allocation14 + $0x94] ss:$8 sps:$4 sm:$0xff]  }
 0x7f3   :  { %v2187_v34 = vpop.f32.mrf.mxu1 }
 0x7f4   :  { %v8196_v49 = vadd.f32 %v2187_v34, %v1988_v43  ;;  %v6869_v34 = vld [vmem:[#allocation14 + $0x84] ss:$8 sps:$4 sm:$0xff]  }
 0x7f5   :  { %v2189_v50 = vpop.f32.mrf.mxu1 }
 0x7f6   :  { %v2190_v52 = vadd.f32 %v2189_v50, %v1984_v48  ;;  %v6864_v48 = vld [vmem:[#allocation14 + $0x90] ss:$8 sps:$4 sm:$0xff]   ;;  %v6867_v50 = vld [vmem:[#allocation14 + $0x80] ss:$8 sps:$4 sm:$0xff]  }
 0x7f7   :  { %v2191_v53 = vpop.f32.mrf.mxu1 }
 0x7f8   :  { %v2622_v54 = vpack.c.bf16 %v2190_v52, %v2186_v51  ;;  %v8198_v55 = vadd.f32 %v2191_v53, %v1988_v43  ;;  %v6861_v43 = vld [vmem:[#allocation14 + $0xa0] ss:$8 sps:$4 sm:$0xff]  }
 0x7f9   :  { %2606 = vmatpush2.bf16.msra.mxu1 %v6861_v43  ;;  %v6872_v43 = vld [vmem:[#allocation15 + $0x74] ss:$8 sps:$4 sm:$0xff]  }
 0x7fa   :  { %v2623_v56 = vpack.c.bf16 %v8198_v55, %v8196_v49  ;;  %6416 = vmatmul.mubr.bf16.vlgmr.msra.gmra.mxu0 %v2622_v54  ;;  %2607 = vmatprep.subr.bf16.mxu1 %v6866_v46  ;;  %v6875_v46 = vld [vmem:[#allocation15 + $0x64] ss:$8 sps:$4 sm:$0xff]  }
 0x7fb   :  { %6421 = vmatprep.mubr.msk.bf16.mxu0 %vm7780_vm2, %v7779_v11 }
 0x7fd   :  { %2608 = vmatpush2.bf16.msra.mxu1 %v6864_v48  ;;  %v6873_v48 = vld [vmem:[#allocation15 + $0x60] ss:$8 sps:$4 sm:$0xff]  }
 0x7fe   :  { %2609 = vmatprep.subr.bf16.mxu1 %v6869_v34  ;;  %v6878_v34 = vld [vmem:[#allocation15 + $0x54] ss:$8 sps:$4 sm:$0xff]  }
 0x801   :  { %2610 = vmatpush2.bf16.msra.mxu1 %v6867_v50  ;;  %v6876_v50 = vld [vmem:[#allocation15 + $0x50] ss:$8 sps:$4 sm:$0xff]  }
 0x802   :  { %3054 = vmatprep.subr.bf16.mxu1 %v6872_v43 }
 0x804   :  { %2612 = vmatmul.mubr.bf16.vlgmr.msra.gmra.mxu1 %v8160_v35 }
 0x805   :  { %3086 = vmatprep.mubr.bf16.mxu1 %v7778_v7  ;;  %3055 = vmatpush1.bf16.msra.mxu1 %v6870_v42  ;;  %v1724_v42 = vadd.f32 %v8129_v16, %v8183_v39  ;;  %v1726_v16 = vadd.f32 %v8131_v17, %v8185_v41  ;;  %v1732_v39 = vadd.f32 %v8135_v19, %v8189_v3  ;;  %v7398_v41 = vld [vmem:[%s8600_s25 + $0x18] sm:$0xff] }
 0x806   :  { %3056 = vmatprep.subr.bf16.mxu1 %v6875_v46  ;;  %v1722_v46 = vadd.f32 %v8127_v15, %v8181_v38 }
 0x809   :  { %3057 = vmatpush1.bf16.msra.mxu1 %v6873_v48 }
 0x80a   :  { %3058 = vmatprep.subr.bf16.mxu1 %v6878_v34 }
 0x80d   :  { %3059 = vmatpush1.bf16.msra.mxu1 %v6876_v50  ;;  %v1728_v50 = vadd.f32 %v8133_v18, %v8187_v58 }
 0x8ba   :  { %v2662_v51 = vpop.f32.mrf.mxu0 }
 0x8bb   :  { %v2669_v52 = vmul.f32 0.088388346, %v2662_v51  ;;  %v6881_v51 = vld [vmem:[#allocation15 + $0x44] ss:$8 sps:$4 sm:$0xff]  }
 0x8bc   :  { %v6417_v53 = vpop.f32.mrf.mxu0  ;;  %3060 = vmatprep.subr.bf16.mxu1 %v6881_v51  ;;  %v1734_v51 = vadd.f32 %v8137_v20, %v8191_v9  ;;  %v7397_v9 = vld [vmem:[%s8600_s25] sm:$0xff] }
 0x8bd   :  { %v2672_v54 = vsel %vm2671_vm3, %v2669_v52, -inf  ;;  %v6884_v53 = vld [vmem:[#allocation15 + $0x34] ss:$8 sps:$4 sm:$0xff]  }
 0x8be   :  { %2673 = vmax.xlane.f32.xlu0 %v2672_v54  ;;  %v2665_v57 = vpop.f32.mrf.mxu0  ;;  %v6882_v54 = vld [vmem:[#allocation15 + $0x30] ss:$8 sps:$4 sm:$0xff]  }
 0x8bf   :  { %v2670_v59 = vmul.f32 0.088388346, %v2665_v57  ;;  %v6887_v57 = vld [vmem:[#allocation15 + $0x24] ss:$8 sps:$4 sm:$0xff]  }
 0x8c0   :  { %v6418_v60 = vpop.f32.mrf.mxu0 }
 0x8c1   :  { %v2675_v61 = vsel %vm2671_vm3, %v2670_v59, -inf  ;;  %v6890_v60 = vld [vmem:[#allocation15 + $0x14] ss:$8 sps:$4 sm:$0xff]  }
 0x8c2   :  { %2676 = vmax.xlane.f32.xlu1 %v2675_v61  ;;  %v6888_v61 = vld [vmem:[#allocation15 + $0x10] ss:$8 sps:$4 sm:$0xff]  }
 0x8c4   :  { %v2613_v12 = vpop.f32.mrf.mxu1 }
 0x8c5   :  { %v2614_v23 = vadd.f32 %v2613_v12, %v2412_v13 }
 0x8c6   :  { %v2615_v22 = vpop.f32.mrf.mxu1 }
 0x8c7   :  { %v2616_v24 = vadd.f32 %v2615_v22, %v2416_v21 }
 0x8c8   :  { %v2617_v26 = vpop.f32.mrf.mxu1 }
 0x8c9   :  { %v2618_v27 = vadd.f32 %v2617_v26, %v2412_v13 }
 0x8ca   :  { %v2619_v28 = vpop.f32.mrf.mxu1 }
 0x8cb   :  { %v2626_v36 = vpack.c.bf16 %v2618_v27, %v2614_v23  ;;  %v2620_v40 = vadd.f32 %v2619_v28, %v2416_v21 }
 0x8cd   :  { %v2627_v14 = vpack.c.bf16 %v2620_v40, %v2616_v24  ;;  %6420 = vmatpush3.bf16.msra.mxu0 %v2626_v36 }
 0x8ce   :  { %6425 = vmatprep.subr.bf16.mxu0 %v7779_v11 }
 0x947   :  { %v2674_v62 = vpop.xlane.xlu0 %2673 }
 0x948   :  { %v2678_v63 = vsub.f32 %v2669_v52, %v2674_v62  ;;  %v6879_v52 = vld [vmem:[#allocation15 + $0x40] ss:$8 sps:$4 sm:$0xff]  }
 0x949   :  { %3061 = vmatpush1.bf16.msra.mxu1 %v6879_v52 }
 0x94a   :  { %v2680_v0 = vmul.f32 1.442695, %v2678_v63  ;;  %3062 = vmatprep.subr.bf16.mxu1 %v6884_v53 }
 0x94b   :  { %v2677_v35 = vpop.xlane.xlu1 %2676 }
 0x94c   :  { %7326 = vpow2.f32 %v2680_v0  ;;  %v2679_v1 = vsub.f32 %v2670_v59, %v2677_v35  ;;  %v6885_v59 = vld [vmem:[#allocation15 + $0x20] ss:$8 sps:$4 sm:$0xff]  }
 0x94d   :  { %3063 = vmatpush1.bf16.msra.mxu1 %v6882_v54  ;;  %v7396_v54 = vld [vmem:[%s8600_s25 + $0x8] sm:$0xff] }
 0x94e   :  { %v2682_v2 = vmul.f32 1.442695, %v2679_v1  ;;  %3064 = vmatprep.subr.bf16.mxu1 %v6887_v57 }
 0x950   :  { %7328 = vpow2.f32 %v2682_v2 }
 0x951   :  { %3065 = vmatpush1.bf16.msra.mxu1 %v6885_v59 }
 0x952   :  { %3066 = vmatprep.subr.bf16.mxu1 %v6890_v60  ;;  %v7399_v60 = vld [vmem:[%s8600_s25 + $0x28] sm:$0xff] }
 0x955   :  { %3067 = vmatpush1.bf16.msra.mxu1 %v6888_v61 }
 0x959   :  { %v7327_v4 = vpop.eup %7326 }
 0x95a   :  { %v2684_v5 = vsel %vm2671_vm3, %v7327_v4, 0.0 }
 0x95b   :  { %2685 = vadd.xlane.f32.xlu0 %v2684_v5 }
 0x95d   :  { %v7329_v6 = vpop.eup %7328 }
 0x95e   :  { %v2687_v8 = vsel %vm2671_vm3, %v7329_v6, 0.0 }
 0x95f   :  { %2688 = vadd.xlane.f32.xlu1 %v2687_v8 }
 0x9e4   :  { %v2686_v62 = vpop.xlane.xlu0 %2685 }
 0x9e5   :  { %7330 = vrcp.f32 %v2686_v62 }
 0x9e8   :  { %v2689_v63 = vpop.xlane.xlu1 %2688 }
 0x9e9   :  { %7332 = vrcp.f32 %v2689_v63  ;;  %v7400_v63 = vld [vmem:[%s8600_s25 + $0x10] sm:$0xff] }
 0x9f2   :  { %v7331_v0 = vpop.eup %7330 }
 0x9f3   :  { %v2692_v1 = vmul.f32 %v7331_v0, %v7327_v4  ;;  %v6891_v4 = vld [vmem:[#allocation15] ss:$8 sps:$4 sm:$0xff]  }
 0x9f6   :  { %v7333_v35 = vpop.eup %7332 }
 0x9f7   :  { %v2693_v2 = vmul.f32 %v7333_v35, %v7329_v6  ;;  %v6893_v6 = vld [vmem:[#allocation15 + $0x4] ss:$8 sps:$4 sm:$0xff]  }
 0x9f8   :  { %3068 = vmatprep.subr.bf16.mxu1 %v6893_v6  ;;  %v7401_v35 = vld [vmem:[%s8600_s25 + $0x20] sm:$0xff] }
 0x9f9   :  { %v2694_v5 = vpack.c.bf16 %v2693_v2, %v2692_v1  ;;  %3069 = vmatpush1.bf16.msra.mxu1 %v6891_v4  ;;  %v6896_v4 = vld [vmem:[#allocation15 + $0xf4] ss:$8 sps:$4 sm:$0xff]  }
 0x9fb   :  { %6422 = vmatmul.mubr.msk.bf16.vlgmr.msra.gmra.mxu0 %vm2671_vm3, %v2694_v5 }
 0x9fc   :  { %6426 = vmatpush3.bf16.xpose.msra.mxu0 %v2625_v31  ;;  %6427 = vmatprep.mubr.msk.bf16.mxu0 %vm7780_vm2, %v7779_v11 }
 0x9fd   :  { %6431 = vmatprep.subr.bf16.mxu0 %v7779_v11 }
 0xa03   :  { %6428 = vmatmul.mubr.bf16.vlgmr.msra.gmra.mxu0 %v2623_v56 }
 0xa04   :  { %6432 = vmatpush3.bf16.msra.mxu0 %v2627_v14  ;;  %6433 = vmatprep.mubr.msk.bf16.mxu0 %vm7780_vm2, %v7779_v11  ;;  %v501_v14 = vld [vmem:[%s8608_s9] sm:$0x3] }
 0xa05   :  { %v1746_v43 = vrot.slane %v501_v14, %v8067_v45  ;;  %v1742_v48 = vrot.slane %v501_v14, %v8071_v47  ;;  %2931 = vmatprep.subr.bf16.mxu0 %v6896_v4  ;;  %v6915_v14 = vld [vmem:[#allocation15 + $0x80] ss:$8 sps:$4 sm:$0xff]  }
 0xa07   :  { %v1750_v34 = vadd.f32 %v1746_v43, %v1724_v42  ;;  %v1749_v52 = vadd.f32 %v1742_v48, %v1722_v46  ;;  %v1752_v38 = vadd.f32 %v1746_v43, %v1728_v50  ;;  %v1754_v53 = vadd.f32 %v1746_v43, %v1734_v51  ;;  %v6917_v42 = vld [vmem:[#allocation15 + $0x84] ss:$8 sps:$4 sm:$0xff]   ;;  %v6918_v51 = vld [vmem:[#allocation18 + $0x70] ss:$8 sps:$4 sm:$0xff]  }
 0xa08   :  { %v1751_v58 = vadd.f32 %v1742_v48, %v1726_v16  ;;  %v1753_v20 = vadd.f32 %v1742_v48, %v1732_v39  ;;  %v6923_v16 = vld [vmem:[#allocation18 + $0x64] ss:$8 sps:$4 sm:$0xff]   ;;  %v6921_v39 = vld [vmem:[#allocation18 + $0x60] ss:$8 sps:$4 sm:$0xff]  }
 0xa09   :  { %v8244_v57 = vadd.f32 %v7396_v54, %v1750_v34  ;;  %v8248_v59 = vadd.f32 %v7397_v9, %v1749_v52  ;;  %v8253_v3 = vadd.f32 %v7398_v41, %v1752_v38  ;;  %v8256_v61 = vadd.f32 %v7399_v60, %v1754_v53  ;;  %v6920_v52 = vld [vmem:[#allocation18 + $0x74] ss:$8 sps:$4 sm:$0xff]   ;;  %v6924_v38 = vld [vmem:[#allocation18 + $0x50] ss:$8 sps:$4 sm:$0xff]   ;;  %v6929_v53 = vld [vmem:[#allocation18 + $0x44] ss:$8 sps:$4 sm:$0xff]  }
 0xa0a   :  { %v8260_v0 = vadd.f32 %v7400_v63, %v1751_v58  ;;  %v8263_v1 = vadd.f32 %v7401_v35, %v1753_v20  ;;  %3703 = vmatprep.subr.bf16.mxu1 %v6920_v52  ;;  %v6927_v54 = vld [vmem:[#allocation18 + $0x40] ss:$8 sps:$4 sm:$0xff]   ;;  %v6930_v58 = vld [vmem:[#allocation18 + $0x30] ss:$8 sps:$4 sm:$0xff]   ;;  %v6935_v20 = vld [vmem:[#allocation18 + $0x24] ss:$8 sps:$4 sm:$0xff]  }
 0xa0b   :  { %v1763_v19 = vadd.f32 %v8244_v57, %v8248_v59  ;;  %v6933_v9 = vld [vmem:[#allocation18 + $0x20] ss:$8 sps:$4 sm:$0xff]   ;;  %v6941_v41 = vld [vmem:[#allocation18 + $0x4] ss:$8 sps:$4 sm:$0xff]  }
 0xa0c   :  { %v1766_v2 = vadd.f32 %v8253_v3, %v8260_v0  ;;  %v1769_v5 = vadd.f32 %v8256_v61, %v8263_v1  ;;  %v6939_v60 = vld [vmem:[#allocation18] ss:$8 sps:$4 sm:$0xff]  }
 0xa0d   :  { %v1977_v35 = vld [vmem:[%s8609_s16] sm:$0x3] }
 0xabb   :  { %v2732_v8 = vpop.f32.mrf.mxu0 }
 0xabd   :  { %v6423_v25 = vpop.f32.mrf.mxu0 }
 0xabf   :  { %v2735_v37 = vpop.f32.mrf.mxu0 }
 0xac0   :  { %v2739_v31 = vpack.c.bf16 %v2735_v37, %v2732_v8 }
 0xac1   :  { %v6424_v10 = vpop.f32.mrf.mxu0 }
 0xac2   :  { %3087 = vmatmul.mubr.bf16.vlgmr.msra.gmra.mxu1 %v2739_v31 }
 0xac3   :  { %v2774_v12 = vpop.f32.mrf.mxu0  ;;  %3704 = vmatpush1.bf16.msra.mxu1 %v6918_v51 }
 0xac4   :  { %v2781_v13 = vmul.f32 0.088388346, %v2774_v12  ;;  %v6894_v12 = vld [vmem:[#allocation15 + $0xf0] ss:$8 sps:$4 sm:$0xff]   ;;  %3705 = vmatprep.subr.bf16.mxu1 %v6923_v16 }
 0xac5   :  { %v6429_v21 = vpop.f32.mrf.mxu0 }
 0xac6   :  { %v2783_v49 = vsel %vm2671_vm3, %v2781_v13, -inf  ;;  %v6899_v21 = vld [vmem:[#allocation15 + $0xe4] ss:$8 sps:$4 sm:$0xff]  }
 0xac7   :  { %2784 = vmax.xlane.f32.xlu0 %v2783_v49  ;;  %v2777_v55 = vpop.f32.mrf.mxu0  ;;  %v6897_v49 = vld [vmem:[#allocation15 + $0xe0] ss:$8 sps:$4 sm:$0xff]   ;;  %3706 = vmatpush1.bf16.msra.mxu1 %v6921_v39  ;;  %v6942_v39 = vld [vmem:[#allocation18 + $0xf0] ss:$8 sps:$4 sm:$0xff]  }
 0xac8   :  { %v2782_v56 = vmul.f32 0.088388346, %v2777_v55  ;;  %v6902_v55 = vld [vmem:[#allocation15 + $0xd4] ss:$8 sps:$4 sm:$0xff]  }
 0xac9   :  { %v6430_v22 = vpop.f32.mrf.mxu0 }
 0xaca   :  { %v2786_v23 = vsel %vm2671_vm3, %v2782_v56, -inf  ;;  %v6905_v22 = vld [vmem:[#allocation15 + $0xc4] ss:$8 sps:$4 sm:$0xff]  }
 0xacb   :  { %2787 = vmax.xlane.f32.xlu1 %v2786_v23  ;;  %v6903_v23 = vld [vmem:[#allocation15 + $0xc0] ss:$8 sps:$4 sm:$0xff]  }
 0xb50   :  { %v2785_v24 = vpop.xlane.xlu0 %2784 }
 0xb51   :  { %v2789_v26 = vsub.f32 %v2781_v13, %v2785_v24  ;;  %v6908_v24 = vld [vmem:[#allocation15 + $0xb4] ss:$8 sps:$4 sm:$0xff]  }
 0xb53   :  { %v2791_v27 = vmul.f32 1.442695, %v2789_v26  ;;  %v6906_v26 = vld [vmem:[#allocation15 + $0xb0] ss:$8 sps:$4 sm:$0xff]  }
 0xb54   :  { %v2788_v28 = vpop.xlane.xlu1 %2787 }
 0xb55   :  { %7334 = vpow2.f32 %v2791_v27  ;;  %v2790_v36 = vsub.f32 %v2782_v56, %v2788_v28  ;;  %v6900_v56 = vld [vmem:[#allocation15 + $0xd0] ss:$8 sps:$4 sm:$0xff]   ;;  %v6911_v27 = vld [vmem:[#allocation15 + $0xa4] ss:$8 sps:$4 sm:$0xff]   ;;  %v6909_v28 = vld [vmem:[#allocation15 + $0xa0] ss:$8 sps:$4 sm:$0xff]  }
 0xb57   :  { %v2793_v40 = vmul.f32 1.442695, %v2790_v36  ;;  %v6914_v36 = vld [vmem:[#allocation15 + $0x94] ss:$8 sps:$4 sm:$0xff]  }
 0xb59   :  { %7336 = vpow2.f32 %v2793_v40  ;;  %v6912_v40 = vld [vmem:[#allocation15 + $0x90] ss:$8 sps:$4 sm:$0xff]  }
 0xb62   :  { %v7335_v15 = vpop.eup %7334 }
 0xb63   :  { %v2795_v18 = vsel %vm2671_vm3, %v7335_v15, 0.0 }
 0xb64   :  { %2796 = vadd.xlane.f32.xlu0 %v2795_v18  ;;  %v6932_v18 = vld [vmem:[#allocation18 + $0x34] ss:$8 sps:$4 sm:$0xff]  }
 0xb66   :  { %v7337_v17 = vpop.eup %7336 }
 0xb67   :  { %v2798_v62 = vsel %vm2671_vm3, %v7337_v17, 0.0 }
 0xb68   :  { %2799 = vadd.xlane.f32.xlu1 %v2798_v62  ;;  %1764 = vadd.xlane.f32.xlu0 %v1763_v19  ;;  %v6936_v19 = vld [vmem:[#allocation18 + $0x10] ss:$8 sps:$4 sm:$0xff]  }
 0xb6c   :  { %1767 = vadd.xlane.f32.xlu1 %v1766_v2  ;;  %1770 = vadd.xlane.f32.xlu0 %v1769_v5  ;;  %v3101_v5 = vrot.slane %v1977_v35, %v8071_v47 }
 0xb82   :  { %v3088_v62 = vpop.f32.mrf.mxu1 }
 0xb84   :  { %v3090_v2 = vpop.f32.mrf.mxu1 }
 0xbed   :  { %v2797_v6 = vpop.xlane.xlu0 %2796 }
 0xbee   :  { %7338 = vrcp.f32 %v2797_v6 }
 0xbf1   :  { %v2800_v8 = vpop.xlane.xlu1 %2799  ;;  %v1765_v63 = vpop.xlane.xlu0 %1764 }
 0xbf2   :  { %7340 = vrcp.f32 %v2800_v8  ;;  %v1773_v4 = vmul.f32 0.00390625, %v1765_v63  ;;  %v3092_v8 = vpop.f32.mrf.mxu1  ;;  %v6965_v63 = vld [vmem:[#allocation18 + $0x84] ss:$8 sps:$4 sm:$0xff]  }
 0xbfb   :  { %v7339_v25 = vpop.eup %7338 }
 0xbfc   :  { %v2803_v31 = vmul.f32 %v7339_v25, %v7335_v15  ;;  %v6926_v15 = vld [vmem:[#allocation18 + $0x54] ss:$8 sps:$4 sm:$0xff]   ;;  %v1768_v25 = vpop.xlane.xlu1 %1767 }
 0xbfd   :  { %3707 = vmatprep.subr.bf16.mxu1 %v6926_v15  ;;  %v6944_v15 = vld [vmem:[#allocation18 + $0xf4] ss:$8 sps:$4 sm:$0xff]  }
 0xbfe   :  { %3708 = vmatpush1.bf16.msra.mxu1 %v6924_v38  ;;  %v6947_v38 = vld [vmem:[#allocation18 + $0xe4] ss:$8 sps:$4 sm:$0xff]  }
 0xbff   :  { %v7341_v37 = vpop.eup %7340  ;;  %3709 = vmatprep.subr.bf16.mxu1 %v6929_v53  ;;  %v6945_v53 = vld [vmem:[#allocation18 + $0xe0] ss:$8 sps:$4 sm:$0xff]  }
 0xc00   :  { %v2804_v10 = vmul.f32 %v7341_v37, %v7337_v17  ;;  %v6938_v17 = vld [vmem:[#allocation18 + $0x14] ss:$8 sps:$4 sm:$0xff]  }
 0xc02   :  { %v2805_v13 = vpack.c.bf16 %v2804_v10, %v2803_v31  ;;  %3710 = vmatpush1.bf16.msra.mxu1 %v6927_v54  ;;  %v3105_v31 = vrot.slane %v1977_v35, %v8067_v45  ;;  %v1771_v10 = vpop.xlane.xlu0 %1770  ;;  %v6950_v54 = vld [vmem:[#allocation18 + $0xd4] ss:$8 sps:$4 sm:$0xff]   ;;  %v6963_v35 = vld [vmem:[#allocation18 + $0x80] ss:$8 sps:$4 sm:$0xff]  }
 0xc03   :  { %3711 = vmatprep.subr.bf16.mxu1 %v6932_v18  ;;  %v6948_v18 = vld [vmem:[#allocation18 + $0xd0] ss:$8 sps:$4 sm:$0xff]  }
 0xc04   :  { %6434 = vmatmul.mubr.msk.bf16.vlgmr.msra.gmra.mxu0 %vm2671_vm3, %v2805_v13 }
 0xc05   :  { %2932 = vmatpush1.bf16.msra.mxu0 %v6894_v12  ;;  %2963 = vmatprep.mubr.bf16.mxu0 %v7778_v7 }
 0xc06   :  { %2933 = vmatprep.subr.bf16.mxu0 %v6899_v21  ;;  %3712 = vmatpush1.bf16.msra.mxu1 %v6930_v58  ;;  %v6951_v58 = vld [vmem:[#allocation18 + $0xc0] ss:$8 sps:$4 sm:$0xff]  }
 0xc07   :  { %3713 = vmatprep.subr.bf16.mxu1 %v6935_v20  ;;  %v6953_v20 = vld [vmem:[#allocation18 + $0xc4] ss:$8 sps:$4 sm:$0xff]  }
 0xc09   :  { %2934 = vmatpush1.bf16.msra.mxu0 %v6897_v49  ;;  %v8275_v49 = vsub.f32 %v8248_v59, %v1773_v4 }
 0xc0a   :  { %2935 = vmatprep.subr.bf16.mxu0 %v6902_v55  ;;  %3714 = vmatpush1.bf16.msra.mxu1 %v6933_v9  ;;  %v8278_v55 = vsub.f32 %v8244_v57, %v1773_v4  ;;  %v6956_v9 = vld [vmem:[#allocation18 + $0xb4] ss:$8 sps:$4 sm:$0xff]   ;;  %v6971_v4 = vld [vmem:[#allocation17 + $0x64] ss:$8 sps:$4 sm:$0xff]  }
 0xc0b   :  { %3715 = vmatprep.subr.bf16.mxu1 %v6938_v17  ;;  %v6954_v17 = vld [vmem:[#allocation18 + $0xb0] ss:$8 sps:$4 sm:$0xff]  }
 0xc0d   :  { %2936 = vmatpush1.bf16.msra.mxu0 %v6900_v56  ;;  %v1774_v56 = vmul.f32 0.00390625, %v1768_v25  ;;  %v6972_v25 = vld [vmem:[#allocation17 + $0x50] ss:$8 sps:$4 sm:$0xff]  }
 0xc0e   :  { %2937 = vmatprep.subr.bf16.mxu0 %v6905_v22  ;;  %3716 = vmatpush1.bf16.msra.mxu1 %v6936_v19  ;;  %v6959_v19 = vld [vmem:[#allocation18 + $0xa4] ss:$8 sps:$4 sm:$0xff]  }
 0xc0f   :  { %3717 = vmatprep.subr.bf16.mxu1 %v6941_v41  ;;  %v8287_v59 = vsub.f32 %v8260_v0, %v1774_v56  ;;  %v8290_v57 = vsub.f32 %v8253_v3, %v1774_v56  ;;  %v6957_v41 = vld [vmem:[#allocation18 + $0xa0] ss:$8 sps:$4 sm:$0xff]   ;;  %v6986_v56 = vld [vmem:[#allocation17 + $0x14] ss:$8 sps:$4 sm:$0xff]  }
 0xc11   :  { %2938 = vmatpush1.bf16.msra.mxu0 %v6903_v23  ;;  %v1775_v23 = vmul.f32 0.00390625, %v1771_v10  ;;  %v1784_v51 = vmul.f32 %v8287_v59, %v8287_v59  ;;  %v6980_v10 = vld [vmem:[#allocation17 + $0x34] ss:$8 sps:$4 sm:$0xff]  }
 0xc12   :  { %2939 = vmatprep.subr.bf16.mxu0 %v6908_v24  ;;  %3718 = vmatpush1.bf16.msra.mxu1 %v6939_v60  ;;  %v6962_v60 = vld [vmem:[#allocation18 + $0x94] ss:$8 sps:$4 sm:$0xff]  }
 0xc13   :  { %3719 = vmatprep.subr.bf16.mxu1 %v6944_v15 }
 0xc15   :  { %2940 = vmatpush1.bf16.msra.mxu0 %v6906_v26 }
 0xc16   :  { %2941 = vmatprep.subr.bf16.mxu0 %v6911_v27  ;;  %v3094_v27 = vpop.f32.mrf.mxu1  ;;  %3720 = vmatpush2.bf16.msra.mxu1 %v6942_v39 }
 0xc17   :  { %3721 = vmatprep.subr.bf16.mxu1 %v6947_v38 }
 0xc19   :  { %2942 = vmatpush1.bf16.msra.mxu0 %v6909_v28 }
 0xc1a   :  { %2943 = vmatprep.subr.bf16.mxu0 %v6914_v36  ;;  %3722 = vmatpush2.bf16.msra.mxu1 %v6945_v53 }
 0xc1b   :  { %3723 = vmatprep.subr.bf16.mxu1 %v6950_v54 }
 0xc1d   :  { %2944 = vmatpush1.bf16.msra.mxu0 %v6912_v40 }
 0xc1e   :  { %2945 = vmatprep.subr.bf16.mxu0 %v6917_v42  ;;  %3724 = vmatpush2.bf16.msra.mxu1 %v6948_v18  ;;  %v6995_v18 = vld [vmem:[#allocation17 + $0xe4] ss:$8 sps:$4 sm:$0xff]  }
 0xc1f   :  { %3725 = vmatprep.subr.bf16.mxu1 %v6953_v20 }
 0xc21   :  { %2946 = vmatpush1.bf16.msra.mxu0 %v6915_v14 }
 0xc22   :  { %3726 = vmatpush2.bf16.msra.mxu1 %v6951_v58  ;;  %v6993_v58 = vld [vmem:[#allocation17 + $0xe0] ss:$8 sps:$4 sm:$0xff]  }
 0xc23   :  { %3727 = vmatprep.subr.bf16.mxu1 %v6956_v9 }
 0xc26   :  { %3728 = vmatpush2.bf16.msra.mxu1 %v6954_v17 }
 0xc27   :  { %3729 = vmatprep.subr.bf16.mxu1 %v6959_v19  ;;  %v1762_v19 = vld [vmem:[%s8611_s23] sm:$0x3] }
 0xc2a   :  { %3730 = vmatpush2.bf16.msra.mxu1 %v6957_v41 }
 0xc2b   :  { %3731 = vmatprep.subr.bf16.mxu1 %v6962_v60 }
 0xcc4   :  { %v2843_v43 = vpop.f32.mrf.mxu0 }
 0xcc6   :  { %v6435_v46 = vpop.f32.mrf.mxu0 }
 0xcc7   :  { %v1783_v46 = vmul.f32 %v8278_v55, %v8278_v55 }
 0xcc8   :  { %v2846_v48 = vpop.f32.mrf.mxu0 }
 0xcc9   :  { %v2850_v34 = vpack.c.bf16 %v2846_v48, %v2843_v43  ;;  %v1782_v43 = vmul.f32 %v8275_v49, %v8275_v49  ;;  %v8297_v48 = vsub.f32 %v8263_v1, %v1775_v23 }
 0xcca   :  { %v6436_v50 = vpop.f32.mrf.mxu0 }
 0xccb   :  { %2964 = vmatmul.mubr.bf16.vlgmr.msra.gmra.mxu0 %v2850_v34  ;;  %v1788_v50 = vadd.f32 %v1783_v46, %v1782_v43  ;;  %v1786_v52 = vmul.f32 %v8297_v48, %v8297_v48 }
 0xd8b   :  { %v2965_v6 = vpop.f32.mrf.mxu0 }
 0xd8c   :  { %v3089_v37 = vadd.f32 %v3088_v62, %v2965_v6  ;;  %v6960_v62 = vld [vmem:[#allocation18 + $0x90] ss:$8 sps:$4 sm:$0xff]   ;;  %v6969_v6 = vld [vmem:[#allocation17 + $0x60] ss:$8 sps:$4 sm:$0xff]  }
 0xd8d   :  { %v2967_v12 = vpop.f32.mrf.mxu0  ;;  %3732 = vmatpush2.bf16.msra.mxu1 %v6960_v62  ;;  %v6998_v62 = vld [vmem:[#allocation17 + $0xd4] ss:$8 sps:$4 sm:$0xff]  }
 0xd8e   :  { %v3108_v13 = vadd.f32 %v3101_v5, %v3089_v37  ;;  %v3091_v21 = vadd.f32 %v3090_v2, %v2967_v12  ;;  %3733 = vmatprep.subr.bf16.mxu1 %v6965_v63  ;;  %v6966_v2 = vld [vmem:[#allocation17 + $0x70] ss:$8 sps:$4 sm:$0xff]   ;;  %v6977_v37 = vld [vmem:[#allocation17 + $0x44] ss:$8 sps:$4 sm:$0xff]  }
 0xd8f   :  { %v2969_v22 = vpop.f32.mrf.mxu0  ;;  %v6978_v12 = vld [vmem:[#allocation17 + $0x30] ss:$8 sps:$4 sm:$0xff]  }
 0xd90   :  { %v3109_v24 = vadd.f32 %v3105_v31, %v3091_v21  ;;  %v3093_v26 = vadd.f32 %v3092_v8, %v2969_v22  ;;  %v8281_v14 = vadd.f32 %v3108_v13, %v8153_v32  ;;  %v8300_v32 = vsub.f32 %v8256_v61, %v1775_v23  ;;  %v6974_v8 = vld [vmem:[#allocation17 + $0x54] ss:$8 sps:$4 sm:$0xff]   ;;  %v6983_v13 = vld [vmem:[#allocation17 + $0x24] ss:$8 sps:$4 sm:$0xff]   ;;  %v6981_v21 = vld [vmem:[#allocation17 + $0x20] ss:$8 sps:$4 sm:$0xff]  }
 0xd91   :  { %v2971_v28 = vpop.f32.mrf.mxu0  ;;  %v1785_v61 = vmul.f32 %v8290_v57, %v8290_v57  ;;  %3734 = vmatpush2.bf16.msra.mxu1 %v6963_v35  ;;  %v6984_v22 = vld [vmem:[#allocation17 + $0x10] ss:$8 sps:$4 sm:$0xff]   ;;  %v6989_v23 = vld [vmem:[#allocation17 + $0x4] ss:$8 sps:$4 sm:$0xff]  }
 0xd92   :  { %v3110_v36 = vadd.f32 %v3101_v5, %v3093_v26  ;;  %v3095_v40 = vadd.f32 %v3094_v27, %v2971_v28  ;;  %v8284_v42 = vadd.f32 %v3109_v24, %v8143_v29  ;;  %6437 = vmatprep.subr.bf16.mxu1 %v7779_v11  ;;  %v6968_v5 = vld [vmem:[#allocation17 + $0x74] ss:$8 sps:$4 sm:$0xff]   ;;  %v6987_v24 = vld [vmem:[#allocation17] ss:$8 sps:$4 sm:$0xff]   ;;  %v6990_v27 = vld [vmem:[#allocation17 + $0xf0] ss:$8 sps:$4 sm:$0xff]  }
 0xd93   :  { %3485 = vmatprep.subr.bf16.mxu0 %v6968_v5  ;;  %v6992_v26 = vld [vmem:[#allocation17 + $0xf4] ss:$8 sps:$4 sm:$0xff]   ;;  %v6996_v63 = vld [vmem:[#allocation17 + $0xd0] ss:$8 sps:$4 sm:$0xff]  }
 0xd94   :  { %v3111_v29 = vadd.f32 %v3105_v31, %v3095_v40  ;;  %v3118_v0 = vadd.f32 %v8284_v42, %v8281_v14  ;;  %v8305_v3 = vadd.f32 %v3110_v36, %v8156_v33  ;;  %v1787_v33 = vmul.f32 %v8300_v32, %v8300_v32  ;;  %3486 = vmatpush1.bf16.msra.mxu0 %v6966_v2  ;;  %v6975_v31 = vld [vmem:[#allocation17 + $0x40] ss:$8 sps:$4 sm:$0xff]  }
 0xd95   :  { %3487 = vmatprep.subr.bf16.mxu0 %v6971_v4  ;;  %v1837_v4 = vrot.slane %v1762_v19, %v8067_v45 }
 0xd96   :  { %3119 = vadd.xlane.f32.xlu1 %v3118_v0  ;;  %v8308_v34 = vadd.f32 %v3111_v29, %v8146_v30  ;;  %v1791_v30 = vadd.f32 %v1785_v61, %v1784_v51  ;;  %v1794_v16 = vadd.f32 %v1787_v33, %v1786_v52 }
 0xd98   :  { %v3121_v1 = vadd.f32 %v8308_v34, %v8305_v3  ;;  %3488 = vmatpush1.bf16.msra.mxu0 %v6969_v6 }
 0xd99   :  { %3489 = vmatprep.subr.bf16.mxu0 %v6974_v8  ;;  %v1833_v8 = vrot.slane %v1762_v19, %v8071_v47 }
 0xd9a   :  { %3122 = vadd.xlane.f32.xlu0 %v3121_v1  ;;  %1789 = vadd.xlane.f32.xlu1 %v1788_v50 }
 0xd9c   :  { %3490 = vmatpush1.bf16.msra.mxu0 %v6972_v25 }
 0xd9d   :  { %3491 = vmatprep.subr.bf16.mxu0 %v6977_v37 }
 0xd9e   :  { %1792 = vadd.xlane.f32.xlu0 %v1791_v30  ;;  %1795 = vadd.xlane.f32.xlu1 %v1794_v16 }
 0xda0   :  { %3492 = vmatpush1.bf16.msra.mxu0 %v6975_v31  ;;  %v6999_v31 = vld [vmem:[#allocation17 + $0xc0] ss:$8 sps:$4 sm:$0xff]  }
 0xda1   :  { %3493 = vmatprep.subr.bf16.mxu0 %v6980_v10 }
 0xda4   :  { %3494 = vmatpush1.bf16.msra.mxu0 %v6978_v12  ;;  %v7004_v12 = vld [vmem:[#allocation17 + $0xb4] ss:$8 sps:$4 sm:$0xff]  }
 0xda5   :  { %3495 = vmatprep.subr.bf16.mxu0 %v6983_v13 }
 0xda8   :  { %3496 = vmatpush1.bf16.msra.mxu0 %v6981_v21 }
 0xda9   :  { %3497 = vmatprep.subr.bf16.mxu0 %v6986_v56 }
 0xdac   :  { %3498 = vmatpush1.bf16.msra.mxu0 %v6984_v22 }
 0xdad   :  { %3499 = vmatprep.subr.bf16.mxu0 %v6989_v23 }
 0xdb0   :  { %3500 = vmatpush1.bf16.msra.mxu0 %v6987_v24 }
 0xdb1   :  { %3501 = vmatprep.subr.bf16.mxu0 %v6992_v26 }
 0xdb4   :  { %3502 = vmatpush2.bf16.msra.mxu0 %v6990_v27  ;;  %v7007_v27 = vld [vmem:[#allocation17 + $0xa4] ss:$8 sps:$4 sm:$0xff]  }
 0xdb5   :  { %3503 = vmatprep.subr.bf16.mxu0 %v6995_v18 }
 0xdb8   :  { %3504 = vmatpush2.bf16.msra.mxu0 %v6993_v58 }
 0xdb9   :  { %3505 = vmatprep.subr.bf16.mxu0 %v6998_v62 }
 0xdbc   :  { %3506 = vmatpush2.bf16.msra.mxu0 %v6996_v63 }
 0xe1f   :  { %v3120_v28 = vpop.xlane.xlu1 %3119 }
 0xe20   :  { %v3124_v36 = vmul.f32 0.00390625, %v3120_v28 }
 0xe22   :  { %v8322_v40 = vsub.f32 %v8281_v14, %v3124_v36  ;;  %v8325_v43 = vsub.f32 %v8284_v42, %v3124_v36 }
 0xe23   :  { %v1790_v46 = vpop.xlane.xlu1 %1789  ;;  %v3123_v29 = vpop.xlane.xlu0 %3122 }
 0xe24   :  { %v1797_v0 = vmul.f32 0.00390625, %v1790_v46  ;;  %v3125_v50 = vmul.f32 0.00390625, %v3123_v29  ;;  %v3130_v51 = vmul.f32 %v8322_v40, %v8322_v40  ;;  %v3131_v1 = vmul.f32 %v8325_v43, %v8325_v43  ;;  %v7005_v46 = vld [vmem:[#allocation17 + $0xa0] ss:$8 sps:$4 sm:$0xff]  }
 0xe26   :  { %v1800_v61 = vadd.f32 1e-05, %v1797_v0  ;;  %v8332_v52 = vsub.f32 %v8305_v3, %v3125_v50  ;;  %v8335_v14 = vsub.f32 %v8308_v34, %v3125_v50  ;;  %v3134_v42 = vadd.f32 %v3131_v1, %v3130_v51  ;;  %v1761_v34 = vld [vmem:[%s8610_s18] sm:$0x3]  ;;  %v7008_v50 = vld [vmem:[#allocation17 + $0x90] ss:$8 sps:$4 sm:$0xff]  }
 0xe27   :  { %v1796_v33 = vpop.xlane.xlu1 %1795  ;;  %v1793_v30 = vpop.xlane.xlu0 %1792  ;;  %v1820_v17 = vrot.slane %v1761_v34, %v8067_v45  ;;  %v1816_v41 = vrot.slane %v1761_v34, %v8071_v47  ;;  %v7010_v0 = vld [vmem:[#allocation17 + $0x94] ss:$8 sps:$4 sm:$0xff]   ;;  %v7013_v51 = vld [vmem:[#allocation17 + $0x84] ss:$8 sps:$4 sm:$0xff]  }
 0xe28   :  { %7342 = vrsqrt.f32 %v1800_v61  ;;  %v1799_v16 = vmul.f32 0.00390625, %v1796_v33  ;;  %v1798_v39 = vmul.f32 0.00390625, %v1793_v30  ;;  %3135 = vadd.xlane.f32.xlu0 %v3134_v42  ;;  %v3132_v15 = vmul.f32 %v8332_v52, %v8332_v52  ;;  %v7011_v61 = vld [vmem:[#allocation17 + $0x80] ss:$8 sps:$4 sm:$0xff]   ;;  %v7016_v42 = vld [vmem:[#allocation20 + $0x74] ss:$8 sps:$4 sm:$0xff]  }
 0xe29   :  { %v3133_v38 = vmul.f32 %v8335_v14, %v8335_v14 }
 0xe2a   :  { %v1802_v3 = vadd.f32 1e-05, %v1799_v16  ;;  %v1801_v53 = vadd.f32 1e-05, %v1798_v39 }
 0xe2b   :  { %v3137_v54 = vadd.f32 %v3133_v38, %v3132_v15 }
 0xe2c   :  { %7344 = vrsqrt.f32 %v1802_v3  ;;  %v3116_v3 = vld [vmem:[%s8612_s22] sm:$0x3] }
 0xe2d   :  { %7346 = vrsqrt.f32 %v1801_v53  ;;  %3138 = vadd.xlane.f32.xlu1 %v3137_v54  ;;  %v3117_v54 = vld [vmem:[%s8613_s13] sm:$0x3]  ;;  %v3154_v18 = vrot.slane %v3116_v3, %v8071_v47  ;;  %v3158_v58 = vrot.slane %v3116_v3, %v8067_v45 }
 0xe2e   :  { %v3173_v19 = vrot.slane %v3117_v54, %v8067_v45 }
 0xe35   :  { %v7343_v20 = vpop.eup %7342 }
 0xe36   :  { %v1807_v9 = vmul.f32 %v7343_v20, %v8278_v55  ;;  %v1806_v60 = vmul.f32 %v7343_v20, %v8275_v49  ;;  %v7001_v49 = vld [vmem:[#allocation17 + $0xc4] ss:$8 sps:$4 sm:$0xff]  }
 0xe37   :  { %3507 = vmatprep.subr.bf16.mxu0 %v7001_v49  ;;  %v7023_v49 = vld [vmem:[#allocation20 + $0x40] ss:$8 sps:$4 sm:$0xff]  }
 0xe38   :  { %v1824_v5 = vmul.f32 %v1820_v17, %v1807_v9  ;;  %v1823_v37 = vmul.f32 %v1816_v41, %v1806_v60  ;;  %3508 = vmatpush2.bf16.msra.mxu0 %v6999_v31  ;;  %v7025_v31 = vld [vmem:[#allocation20 + $0x44] ss:$8 sps:$4 sm:$0xff]  }
 0xe39   :  { %v7345_v35 = vpop.eup %7344  ;;  %3509 = vmatprep.subr.bf16.mxu0 %v7004_v12  ;;  %v7026_v12 = vld [vmem:[#allocation20 + $0x30] ss:$8 sps:$4 sm:$0xff]  }
 0xe3a   :  { %v7347_v2 = vpop.eup %7346  ;;  %v1811_v6 = vmul.f32 %v7345_v35, %v8300_v32  ;;  %v1841_v56 = vadd.f32 %v1837_v4, %v1824_v5  ;;  %v1810_v22 = vmul.f32 %v7345_v35, %v8297_v48  ;;  %v7002_v32 = vld [vmem:[#allocation17 + $0xb0] ss:$8 sps:$4 sm:$0xff]   ;;  %v1840_v24 = vadd.f32 %v1833_v8, %v1823_v37 }
 0xe3b   :  { %v1809_v55 = vmul.f32 %v7347_v2, %v8290_v57  ;;  %v1808_v25 = vmul.f32 %v7347_v2, %v8287_v59  ;;  %v7020_v37 = vld [vmem:[#allocation20 + $0x50] ss:$8 sps:$4 sm:$0xff]  }
 0xe3c   :  { %v1828_v10 = vmul.f32 %v1820_v17, %v1811_v6  ;;  %v1827_v36 = vmul.f32 %v1816_v41, %v1810_v22  ;;  %3510 = vmatpush2.bf16.msra.mxu0 %v7002_v32  ;;  %v7032_v22 = vld [vmem:[#allocation20 + $0x10] ss:$8 sps:$4 sm:$0xff]   ;;  %v7037_v32 = vld [vmem:[#allocation20 + $0x4] ss:$8 sps:$4 sm:$0xff]  }
 0xe3d   :  { %v1826_v13 = vmul.f32 %v1820_v17, %v1809_v55  ;;  %v1825_v21 = vmul.f32 %v1816_v41, %v1808_v25  ;;  %3511 = vmatprep.subr.bf16.mxu0 %v7007_v27  ;;  %v3169_v17 = vrot.slane %v3117_v54, %v8071_v47  ;;  %v7014_v55 = vld [vmem:[#allocation20 + $0x70] ss:$8 sps:$4 sm:$0xff]   ;;  %v7022_v25 = vld [vmem:[#allocation20 + $0x54] ss:$8 sps:$4 sm:$0xff]   ;;  %v7041_v27 = vld [vmem:[#allocation20 + $0xe0] ss:$8 sps:$4 sm:$0xff]  }
 0xe3e   :  { %v1845_v26 = vadd.f32 %v1837_v4, %v1828_v10  ;;  %v1844_v48 = vadd.f32 %v1833_v8, %v1827_v36  ;;  %v7028_v10 = vld [vmem:[#allocation20 + $0x34] ss:$8 sps:$4 sm:$0xff]   ;;  %v7044_v36 = vld [vmem:[#allocation20 + $0xd0] ss:$8 sps:$4 sm:$0xff]  }
 0xe3f   :  { %v1843_v23 = vadd.f32 %v1837_v4, %v1826_v13  ;;  %v1842_v57 = vadd.f32 %v1833_v8, %v1825_v21  ;;  %v7019_v8 = vld [vmem:[#allocation20 + $0x64] ss:$8 sps:$4 sm:$0xff]   ;;  %v7029_v21 = vld [vmem:[#allocation20 + $0x20] ss:$8 sps:$4 sm:$0xff]  }
 0xe40   :  { %v8355_v29 = vpack.c.bf16 %v1845_v26, %v1845_v26  ;;  %3512 = vmatpush2.bf16.msra.mxu0 %v7005_v46  ;;  %v8359_v1 = vpack.c.bf16 %v1844_v48, %v1844_v48  ;;  %v7031_v13 = vld [vmem:[#allocation20 + $0x24] ss:$8 sps:$4 sm:$0xff]   ;;  %v7052_v48 = vld [vmem:[#allocation20 + $0xb4] ss:$8 sps:$4 sm:$0xff]  }
 0xe41   :  { %v3529_v59 = vpack.c.bf16 %v1843_v23, %v1841_v56  ;;  %v8353_v28 = vpack.c.bf16 %v1842_v57, %v1840_v24  ;;  %3513 = vmatprep.subr.bf16.mxu0 %v7010_v0  ;;  %v7034_v56 = vld [vmem:[#allocation20 + $0x14] ss:$8 sps:$4 sm:$0xff]   ;;  %v7035_v23 = vld [vmem:[#allocation20] ss:$8 sps:$4 sm:$0xff]   ;;  %v7038_v57 = vld [vmem:[#allocation20 + $0xf0] ss:$8 sps:$4 sm:$0xff]  }
 0xe42   :  { %v7040_v24 = vld [vmem:[#allocation20 + $0xf4] ss:$8 sps:$4 sm:$0xff]   ;;  %v7043_v26 = vld [vmem:[#allocation20 + $0xe4] ss:$8 sps:$4 sm:$0xff]   ;;  %v7047_v0 = vld [vmem:[#allocation20 + $0xc0] ss:$8 sps:$4 sm:$0xff]  }
 0xe43   :  { %3735 = vmatprep.mubr.bf16.mxu1 %v3529_v59  ;;  %v7049_v46 = vld [vmem:[#allocation20 + $0xc4] ss:$8 sps:$4 sm:$0xff]  }
 0xe44   :  { %3736 = vmatmul.mubr.bf16.vlgmr.msra.gmra.mxu1 %v8353_v28  ;;  %3514 = vmatpush2.bf16.msra.mxu0 %v7008_v50  ;;  %v7050_v50 = vld [vmem:[#allocation20 + $0xb0] ss:$8 sps:$4 sm:$0xff]  }
 0xe45   :  { %3745 = vmatprep.mubr.bf16.mxu1 %v8355_v29  ;;  %3515 = vmatprep.subr.bf16.mxu0 %v7013_v51  ;;  %v7055_v51 = vld [vmem:[#allocation20 + $0xa4] ss:$8 sps:$4 sm:$0xff]  }
 0xe48   :  { %3516 = vmatpush2.bf16.msra.mxu0 %v7011_v61  ;;  %v3245_v61 = vld [vmem:[%s8614_s29] sm:$0x3] }
 0xe49   :  { %3925 = vmatprep.subr.bf16.mxu0 %v7016_v42  ;;  %v7053_v42 = vld [vmem:[#allocation20 + $0xa0] ss:$8 sps:$4 sm:$0xff]  }
 0xe4c   :  { %3746 = vmatmul.mubr.bf16.gmra.mxu1 %v8359_v1 }
 0xe4d   :  { %6441 = vmatprep.mubr.msk.bf16.mxu1 %vm7780_vm2, %v7779_v11 }
 0xeb1   :  { %v3136_v33 = vpop.xlane.xlu0 %3135 }
 0xeb2   :  { %v3140_v30 = vmul.f32 0.00390625, %v3136_v33  ;;  %v3540_v33 = vrot.slane %v3245_v61, %v8067_v45 }
 0xeb4   :  { %v3142_v16 = vadd.f32 1e-05, %v3140_v30 }
 0xeb6   :  { %7348 = vrsqrt.f32 %v3142_v16  ;;  %v3139_v39 = vpop.xlane.xlu1 %3138  ;;  %v7058_v16 = vld [vmem:[#allocation20 + $0x94] ss:$8 sps:$4 sm:$0xff]  }
 0xeb7   :  { %v3141_v15 = vmul.f32 0.00390625, %v3139_v39 }
 0xeb9   :  { %v3143_v38 = vadd.f32 1e-05, %v3141_v15 }
 0xebb   :  { %7350 = vrsqrt.f32 %v3143_v38  ;;  %v7056_v38 = vld [vmem:[#allocation20 + $0x90] ss:$8 sps:$4 sm:$0xff]  }
 0xec3   :  { %v7349_v53 = vpop.eup %7348 }
 0xec4   :  { %v3147_v34 = vmul.f32 %v7349_v53, %v8325_v43  ;;  %v3146_v20 = vmul.f32 %v7349_v53, %v8322_v40  ;;  %v7061_v53 = vld [vmem:[#allocation20 + $0x84] ss:$8 sps:$4 sm:$0xff]  }
 0xec6   :  { %v3162_v60 = vmul.f32 %v3158_v58, %v3147_v34  ;;  %v3161_v63 = vmul.f32 %v3154_v18, %v3146_v20  ;;  %v3536_v34 = vrot.slane %v3245_v61, %v8071_v47 }
 0xec8   :  { %v7351_v9 = vpop.eup %7350  ;;  %v8374_v43 = vadd.f32 %v3173_v19, %v3162_v60  ;;  %v8378_v4 = vadd.f32 %v3169_v17, %v3161_v63 }
 0xec9   :  { %v3149_v41 = vmul.f32 %v7351_v9, %v8335_v14  ;;  %v3148_v62 = vmul.f32 %v7351_v9, %v8332_v52  ;;  %v7017_v52 = vld [vmem:[#allocation20 + $0x60] ss:$8 sps:$4 sm:$0xff]  }
 0xecb   :  { %v3164_v35 = vmul.f32 %v3158_v58, %v3149_v41  ;;  %v3163_v2 = vmul.f32 %v3154_v18, %v3148_v62  ;;  %v7059_v58 = vld [vmem:[#allocation20 + $0x80] ss:$8 sps:$4 sm:$0xff]  }
 0xecd   :  { %v8376_v5 = vadd.f32 %v3173_v19, %v3164_v35  ;;  %v8380_v40 = vadd.f32 %v3169_v17, %v3163_v2 }
 0xecf   :  { %v3313_v6 = vpack.c.bf16 %v8376_v5, %v8374_v43  ;;  %v3312_v14 = vpack.c.bf16 %v8380_v40, %v8378_v4 }
 0xed1   :  { %3517 = vmatprep.mubr.bf16.mxu0 %v3313_v6 }
 0xed2   :  { %3518 = vmatmul.mubr.bf16.vlgmr.msra.gmra.mxu0 %v3312_v14 }
 0xed3   :  { %3926 = vmatpush1.bf16.msra.mxu0 %v7014_v55  ;;  %3957 = vmatprep.mubr.bf16.mxu0 %v3529_v59  ;;  %v7046_v59 = vld [vmem:[#allocation20 + $0xd4] ss:$8 sps:$4 sm:$0xff]  }
 0xed4   :  { %3927 = vmatprep.subr.bf16.mxu0 %v7019_v8  ;;  %v3212_v55 = vld [vmem:[%s8615_s21] sm:$0x3] }
 0xed7   :  { %3928 = vmatpush1.bf16.msra.mxu0 %v7017_v52  ;;  %v3322_v52 = vrot.slane %v3212_v55, %v8067_v45 }
 0xed8   :  { %3929 = vmatprep.subr.bf16.mxu0 %v7022_v25 }
 0xedb   :  { %3930 = vmatpush1.bf16.msra.mxu0 %v7020_v37 }
 0xedc   :  { %3931 = vmatprep.subr.bf16.mxu0 %v7025_v31 }
 0xedf   :  { %3932 = vmatpush1.bf16.msra.mxu0 %v7023_v49 }
 0xee0   :  { %3933 = vmatprep.subr.bf16.mxu0 %v7028_v10 }
 0xee3   :  { %3934 = vmatpush1.bf16.msra.mxu0 %v7026_v12 }
 0xee4   :  { %3935 = vmatprep.subr.bf16.mxu0 %v7031_v13  ;;  %v3278_v13 = vld [vmem:[%s8616_s8] sm:$0x3] }
 0xee7   :  { %3936 = vmatpush1.bf16.msra.mxu0 %v7029_v21  ;;  %v3762_v21 = vrot.slane %v3278_v13, %v8067_v45 }
 0xee8   :  { %3937 = vmatprep.subr.bf16.mxu0 %v7034_v56 }
 0xeeb   :  { %3938 = vmatpush1.bf16.msra.mxu0 %v7032_v22 }
 0xeec   :  { %3939 = vmatprep.subr.bf16.mxu0 %v7037_v32 }
 0xeef   :  { %3940 = vmatpush1.bf16.msra.mxu0 %v7035_v23 }
 0xef0   :  { %3941 = vmatprep.subr.bf16.mxu0 %v7040_v24 }
 0xef3   :  { %3942 = vmatpush2.bf16.msra.mxu0 %v7038_v57  ;;  %v3758_v57 = vrot.slane %v3278_v13, %v8071_v47 }
 0xef4   :  { %3943 = vmatprep.subr.bf16.mxu0 %v7043_v26 }
 0xef7   :  { %3944 = vmatpush2.bf16.msra.mxu0 %v7041_v27 }
 0xef8   :  { %3945 = vmatprep.subr.bf16.mxu0 %v7046_v59 }
 0xefb   :  { %3946 = vmatpush2.bf16.msra.mxu0 %v7044_v36 }
 0xefc   :  { %3947 = vmatprep.subr.bf16.mxu0 %v7049_v46 }
 0xeff   :  { %3948 = vmatpush2.bf16.msra.mxu0 %v7047_v0 }
 0xf00   :  { %3949 = vmatprep.subr.bf16.mxu0 %v7052_v48 }
 0xf03   :  { %3950 = vmatpush2.bf16.msra.mxu0 %v7050_v50 }
 0xf04   :  { %v3737_v30 = vpop.f32.mrf.mxu1  ;;  %3951 = vmatprep.subr.bf16.mxu0 %v7055_v51 }
 0xf05   :  { %v3738_v2 = vadd.f32 %v3737_v30, %v3536_v34 }
 0xf06   :  { %v3739_v39 = vpop.f32.mrf.mxu1 }
 0xf07   :  { %v8388_v15 = vadd.f32 %v3739_v39, %v3540_v33  ;;  %3952 = vmatpush2.bf16.msra.mxu0 %v7053_v42 }
 0xf08   :  { %v3741_v3 = vpop.f32.mrf.mxu1  ;;  %3953 = vmatprep.subr.bf16.mxu0 %v7058_v16 }
 0xf09   :  { %v3742_v35 = vadd.f32 %v3741_v3, %v3536_v34 }
 0xf0a   :  { %v3743_v54 = vpop.f32.mrf.mxu1 }
 0xf0b   :  { %v8391_v18 = vadd.f32 %v3743_v54, %v3540_v33  ;;  %3954 = vmatpush2.bf16.msra.mxu0 %v7056_v38  ;;  %v3978_v6 = vpack.c.bf16 %v3742_v35, %v3738_v2 }
 0xf0c   :  { %v3747_v20 = vpop.f32.mrf.mxu1  ;;  %3955 = vmatprep.subr.bf16.mxu0 %v7061_v53 }
 0xf0d   :  { %v3979_v9 = vpack.c.bf16 %v8391_v18, %v8388_v15  ;;  %v3748_v17 = vadd.f32 %v3747_v20, %v3536_v34 }
 0xf0e   :  { %v3749_v19 = vpop.f32.mrf.mxu1 }
 0xf0f   :  { %v3980_v41 = vpack.c.bf16 %v3748_v17, %v3748_v17  ;;  %v8395_v60 = vadd.f32 %v3749_v19, %v3540_v33  ;;  %3956 = vmatpush2.bf16.msra.mxu0 %v7059_v58 }
 0xf10   :  { %v3751_v62 = vpop.f32.mrf.mxu1 }
 0xf11   :  { %6438 = vmatpush3.bf16.xpose.msra.mxu1 %v3980_v41 }
 0xf12   :  { %3958 = vmatmul.mubr.bf16.vlgmr.msra.gmra.mxu0 %v8353_v28  ;;  %v3752_v63 = vpop.f32.mrf.mxu1  ;;  %6439 = vmatprep.subr.bf16.mxu1 %v7779_v11  ;;  %v3318_v28 = vrot.slane %v3212_v55, %v8071_v47 }
 0xf13   :  { %3967 = vmatprep.mubr.bf16.mxu0 %v8355_v29 }
 0xf19   :  { %6440 = vmatpush3.bf16.xpose.msra.mxu1 %v3978_v6 }
 0xf1a   :  { %3968 = vmatmul.mubr.bf16.gmra.mxu0 %v8359_v1  ;;  %6445 = vmatprep.subr.bf16.mxu1 %v7779_v11 }
 0xf1b   :  { %4326 = vmatprep.mubr.bf16.mxu0 %v7778_v7 }
 0xf92   :  { %v3519_v14 = vpop.f32.mrf.mxu0 }
 0xf93   :  { %v3520_v37 = vadd.f32 %v3519_v14, %v3318_v28 }
 0xf94   :  { %v3521_v8 = vpop.f32.mrf.mxu0 }
 0xf95   :  { %v8406_v49 = vadd.f32 %v3521_v8, %v3322_v52 }
 0xf96   :  { %v3523_v25 = vpop.f32.mrf.mxu0 }
 0xf97   :  { %v3524_v29 = vadd.f32 %v3523_v25, %v3318_v28 }
 0xf98   :  { %v3525_v31 = vpop.f32.mrf.mxu0 }
 0xf99   :  { %v3976_v10 = vpack.c.bf16 %v3524_v29, %v3520_v37  ;;  %v8408_v1 = vadd.f32 %v3525_v31, %v3322_v52  ;;  %v3981_v31 = vpack.c.bf16 %v8395_v60, %v8395_v60 }
 0xf9b   :  { %v3977_v12 = vpack.c.bf16 %v8408_v1, %v8406_v49  ;;  %6442 = vmatmul.mubr.bf16.vlgmr.msra.gmra.mxu1 %v3976_v10 }
 0xf9c   :  { %6449 = vmatprep.mubr.msk.bf16.mxu1 %vm7780_vm2, %v7779_v11 }
 0xfd2   :  { %v3959_v56 = vpop.f32.mrf.mxu0 }
 0xfd3   :  { %v3960_v42 = vadd.f32 %v3959_v56, %v3758_v57 }
 0xfd4   :  { %v3961_v22 = vpop.f32.mrf.mxu0 }
 0xfd5   :  { %v8416_v32 = vadd.f32 %v3961_v22, %v3762_v21 }
 0xfd6   :  { %v3963_v23 = vpop.f32.mrf.mxu0 }
 0xfd7   :  { %v3964_v50 = vadd.f32 %v3963_v23, %v3758_v57 }
 0xfd8   :  { %v3965_v24 = vpop.f32.mrf.mxu0 }
 0xfd9   :  { %v8419_v26 = vadd.f32 %v3965_v24, %v3762_v21  ;;  %v3982_v30 = vpack.c.bf16 %v3964_v50, %v3960_v42  ;;  %v7088_v42 = vld [vmem:[#allocation21 + $0xf4] ss:$8 sps:$4 sm:$0xff]  }
 0xfda   :  { %v3969_v27 = vpop.f32.mrf.mxu0  ;;  %4294 = vmatprep.subr.bf16.mxu0 %v7088_v42 }
 0xfdb   :  { %v3983_v59 = vpack.c.bf16 %v8419_v26, %v8416_v32  ;;  %v3970_v36 = vadd.f32 %v3969_v27, %v3758_v57 }
 0xfdc   :  { %v3971_v46 = vpop.f32.mrf.mxu0 }
 0xfdd   :  { %v3984_v0 = vpack.c.bf16 %v3970_v36, %v3970_v36  ;;  %v3972_v48 = vadd.f32 %v3971_v46, %v3762_v21 }
 0xfde   :  { %v3973_v51 = vpop.f32.mrf.mxu0 }
 0xfdf   :  { %v4056_v61 = vsel %vm1277_vm0, %v3984_v0, 0  ;;  %v3985_v10 = vpack.c.bf16 %v3972_v48, %v3972_v48  ;;  %v7064_v51 = vld [vmem:[#allocation21 + $0x74] ss:$8 sps:$4 sm:$0xff]  }
 0xfe0   :  { %v3974_v33 = vpop.f32.mrf.mxu0  ;;  %6446 = vmatpush3.bf16.msra.mxu1 %v4056_v61  ;;  %v7086_v61 = vld [vmem:[#allocation21 + $0xf0] ss:$8 sps:$4 sm:$0xff]  }
 0xfe1   :  { %6447 = vmatprep.subr.bf16.mxu1 %v7779_v11  ;;  %v4170_v13 = vsel %vm1277_vm0, %v3985_v10, 0  ;;  %v7091_v33 = vld [vmem:[#allocation21 + $0xe4] ss:$8 sps:$4 sm:$0xff]   ;;  %4295 = vmatpush1.bf16.msra.mxu0 %v7086_v61 }
 0xfe2   :  { %4296 = vmatprep.subr.bf16.mxu0 %v7091_v33  ;;  %v7079_v10 = vld [vmem:[#allocation21 + $0x24] ss:$8 sps:$4 sm:$0xff]  }
 0xfe4   :  { %6448 = vmatpush3.bf16.msra.mxu1 %v3982_v30  ;;  %v7089_v30 = vld [vmem:[#allocation21 + $0xe0] ss:$8 sps:$4 sm:$0xff]  }
 0xfe5   :  { %6453 = vmatprep.subr.bf16.mxu1 %v7779_v11  ;;  %4297 = vmatpush1.bf16.msra.mxu0 %v7089_v30 }
0x105b   :  { %v4020_v16 = vpop.f32.mrf.mxu1 }
0x105c   :  { %v4027_v39 = vmul.f32 0.088388346, %v4020_v16  ;;  %v7094_v16 = vld [vmem:[#allocation21 + $0xd4] ss:$8 sps:$4 sm:$0xff]  }
0x105d   :  { %v6443_v38 = vpop.f32.mrf.mxu1  ;;  %4298 = vmatprep.subr.bf16.mxu0 %v7094_v16 }
0x105e   :  { %v4029_v3 = vsel %vm1235_vm1, %v4027_v39, -inf  ;;  %v7097_v38 = vld [vmem:[#allocation21 + $0xc4] ss:$8 sps:$4 sm:$0xff]  }
0x105f   :  { %4030 = vmax.xlane.f32.xlu0 %v4029_v3  ;;  %v4023_v53 = vpop.f32.mrf.mxu1  ;;  %v7095_v3 = vld [vmem:[#allocation21 + $0xc0] ss:$8 sps:$4 sm:$0xff]  }
0x1060   :  { %v4028_v54 = vmul.f32 0.088388346, %v4023_v53  ;;  %v7100_v53 = vld [vmem:[#allocation21 + $0xb4] ss:$8 sps:$4 sm:$0xff]  }
0x1061   :  { %v6444_v34 = vpop.f32.mrf.mxu1 }
0x1062   :  { %v4032_v58 = vsel %vm1235_vm1, %v4028_v54, -inf  ;;  %v7103_v34 = vld [vmem:[#allocation21 + $0xa4] ss:$8 sps:$4 sm:$0xff]  }
0x1063   :  { %4033 = vmax.xlane.f32.xlu1 %v4032_v58  ;;  %v7101_v58 = vld [vmem:[#allocation21 + $0xa0] ss:$8 sps:$4 sm:$0xff]  }
0x10e8   :  { %v4031_v20 = vpop.xlane.xlu0 %4030 }
0x10e9   :  { %v4035_v17 = vsub.f32 %v4027_v39, %v4031_v20  ;;  %v7092_v39 = vld [vmem:[#allocation21 + $0xd0] ss:$8 sps:$4 sm:$0xff]   ;;  %v7106_v20 = vld [vmem:[#allocation21 + $0x94] ss:$8 sps:$4 sm:$0xff]  }
0x10ea   :  { %4299 = vmatpush1.bf16.msra.mxu0 %v7092_v39 }
0x10eb   :  { %v4037_v19 = vmul.f32 1.442695, %v4035_v17  ;;  %4300 = vmatprep.subr.bf16.mxu0 %v7097_v38  ;;  %v7104_v17 = vld [vmem:[#allocation21 + $0x90] ss:$8 sps:$4 sm:$0xff]  }
0x10ec   :  { %v4034_v41 = vpop.xlane.xlu1 %4033 }
0x10ed   :  { %7352 = vpow2.f32 %v4037_v19  ;;  %v4036_v62 = vsub.f32 %v4028_v54, %v4034_v41  ;;  %v7098_v54 = vld [vmem:[#allocation21 + $0xb0] ss:$8 sps:$4 sm:$0xff]  }
0x10ee   :  { %4301 = vmatpush1.bf16.msra.mxu0 %v7095_v3 }
0x10ef   :  { %v4039_v63 = vmul.f32 1.442695, %v4036_v62  ;;  %4302 = vmatprep.subr.bf16.mxu0 %v7100_v53 }
0x10f1   :  { %7354 = vpow2.f32 %v4039_v63 }
0x10f2   :  { %4303 = vmatpush1.bf16.msra.mxu0 %v7098_v54 }
0x10f3   :  { %4304 = vmatprep.subr.bf16.mxu0 %v7103_v34 }
0x10f6   :  { %4305 = vmatpush1.bf16.msra.mxu0 %v7101_v58  ;;  %v7112_v58 = vld [vmem:[#allocation23 + $0xe4] ss:$16 sps:$4 sm:$0xff]  }
0x10f7   :  { %4306 = vmatprep.subr.bf16.mxu0 %v7106_v20  ;;  %v7113_v20 = vld [vmem:[#allocation23 + $0xe8] ss:$16 sps:$4 sm:$0xff]  }
0x10fa   :  { %v7353_v35 = vpop.eup %7352  ;;  %4307 = vmatpush1.bf16.msra.mxu0 %v7104_v17  ;;  %v7118_v17 = vld [vmem:[#allocation23 + $0xc4] ss:$16 sps:$4 sm:$0xff]  }
0x10fb   :  { %v4041_v2 = vsel %vm1235_vm1, %v7353_v35, 0.0 }
0x10fc   :  { %4042 = vadd.xlane.f32.xlu0 %v4041_v2 }
0x10fe   :  { %v7355_v6 = vpop.eup %7354 }
0x10ff   :  { %v4044_v55 = vsel %vm1235_vm1, %v7355_v6, 0.0 }
0x1100   :  { %4045 = vadd.xlane.f32.xlu1 %v4044_v55 }
0x1185   :  { %v4043_v14 = vpop.xlane.xlu0 %4042 }
0x1186   :  { %7356 = vrcp.f32 %v4043_v14  ;;  %v7067_v14 = vld [vmem:[#allocation21 + $0x64] ss:$8 sps:$4 sm:$0xff]  }
0x1189   :  { %v4046_v28 = vpop.xlane.xlu1 %4045 }
0x118a   :  { %7358 = vrcp.f32 %v4046_v28  ;;  %v7065_v28 = vld [vmem:[#allocation21 + $0x60] ss:$8 sps:$4 sm:$0xff]  }
0x1193   :  { %v7357_v8 = vpop.eup %7356 }
0x1194   :  { %v4049_v25 = vmul.f32 %v7357_v8, %v7353_v35  ;;  %v7070_v8 = vld [vmem:[#allocation21 + $0x54] ss:$8 sps:$4 sm:$0xff]  }
0x1197   :  { %v7359_v52 = vpop.eup %7358 }
0x1198   :  { %v4050_v37 = vmul.f32 %v7359_v52, %v7355_v6  ;;  %v7062_v6 = vld [vmem:[#allocation21 + $0x70] ss:$8 sps:$4 sm:$0xff]  }
0x1199   :  { %v7068_v52 = vld [vmem:[#allocation21 + $0x50] ss:$8 sps:$4 sm:$0xff]  }
0x119a   :  { %v4051_v29 = vpack.c.bf16 %v4050_v37, %v4049_v25  ;;  %v7073_v25 = vld [vmem:[#allocation21 + $0x44] ss:$8 sps:$4 sm:$0xff]   ;;  %v7071_v37 = vld [vmem:[#allocation21 + $0x40] ss:$8 sps:$4 sm:$0xff]  }
0x119c   :  { %6450 = vmatmul.mubr.msk.bf16.vlgmr.msra.gmra.mxu1 %vm1235_vm1, %v4051_v29  ;;  %v7076_v29 = vld [vmem:[#allocation21 + $0x34] ss:$8 sps:$4 sm:$0xff]  }
0x119d   :  { %6454 = vmatpush3.bf16.xpose.msra.mxu1 %v3981_v31  ;;  %6457 = vmatprep.mubr.msk.bf16.mxu1 %vm7780_vm2, %v7779_v11  ;;  %v7074_v31 = vld [vmem:[#allocation21 + $0x30] ss:$8 sps:$4 sm:$0xff]  }
0x119e   :  { %6455 = vmatprep.subr.bf16.mxu1 %v7779_v11 }
0x11a5   :  { %6456 = vmatpush3.bf16.xpose.msra.mxu1 %v3979_v9 }
0x11a6   :  { %6461 = vmatprep.subr.bf16.mxu1 %v7779_v11 }
0x11ac   :  { %6458 = vmatmul.mubr.bf16.vlgmr.msra.gmra.mxu1 %v3977_v12 }
0x11ad   :  { %6462 = vmatpush3.bf16.msra.mxu1 %v4170_v13  ;;  %6465 = vmatprep.mubr.msk.bf16.mxu1 %vm7780_vm2, %v7779_v11  ;;  %v7077_v13 = vld [vmem:[#allocation21 + $0x20] ss:$8 sps:$4 sm:$0xff]  }
0x11ae   :  { %6463 = vmatprep.subr.bf16.mxu1 %v7779_v11 }
0x11b1   :  { %6464 = vmatpush3.bf16.msra.mxu1 %v3983_v59 }
0x11b2   :  { %4417 = vmatprep.subr.bf16.mxu1 %v7064_v51 }
0x125c   :  { %v8447_v60 = vpop.f32.mrf.mxu1 }
0x125e   :  { %v6451_v15 = vpop.f32.mrf.mxu1 }
0x125f   :  { %v7082_v15 = vld [vmem:[#allocation21 + $0x14] ss:$8 sps:$4 sm:$0xff]  }
0x1260   :  { %v8449_v18 = vpop.f32.mrf.mxu1 }
0x1261   :  { %v4099_v9 = vpack.c.bf16 %v8449_v18, %v8447_v60 }
0x1262   :  { %v6452_v21 = vpop.f32.mrf.mxu1 }
0x1263   :  { %v7085_v21 = vld [vmem:[#allocation21 + $0x4] ss:$8 sps:$4 sm:$0xff]  }
0x126c   :  { %v4134_v56 = vpop.f32.mrf.mxu1 }
0x126d   :  { %v4141_v22 = vmul.f32 0.088388346, %v4134_v56  ;;  %v7083_v56 = vld [vmem:[#allocation21] ss:$8 sps:$4 sm:$0xff]  }
0x126e   :  { %v6459_v49 = vpop.f32.mrf.mxu1 }
0x126f   :  { %v4143_v1 = vsel %vm1235_vm1, %v4141_v22, -inf  ;;  %v7109_v49 = vld [vmem:[#allocation21 + $0x84] ss:$8 sps:$4 sm:$0xff]  }
0x1270   :  { %4144 = vmax.xlane.f32.xlu0 %v4143_v1  ;;  %v4137_v12 = vpop.f32.mrf.mxu1  ;;  %4308 = vmatprep.subr.bf16.mxu0 %v7109_v49  ;;  %v7152_v49 = vld [vmem:[#allocation23] ss:$16 sps:$4 sm:$0xff]  }
0x1271   :  { %v4142_v32 = vmul.f32 0.088388346, %v4137_v12 }
0x1272   :  { %v6460_v23 = vpop.f32.mrf.mxu1 }
0x1273   :  { %v4146_v11 = vsel %vm1235_vm1, %v4142_v32, -inf }
0x1274   :  { %4147 = vmax.xlane.f32.xlu1 %v4146_v11 }
0x12f9   :  { %v4145_v24 = vpop.xlane.xlu0 %4144 }
0x12fa   :  { %v4149_v57 = vsub.f32 %v4141_v22, %v4145_v24  ;;  %v7107_v22 = vld [vmem:[#allocation21 + $0x80] ss:$8 sps:$4 sm:$0xff]  }
0x12fb   :  { %4309 = vmatpush1.bf16.msra.mxu0 %v7107_v22  ;;  %v7157_v22 = vld [vmem:[#allocation23 + $0xc] ss:$16 sps:$4 sm:$0xff]  }
0x12fc   :  { %v4151_v26 = vmul.f32 1.442695, %v4149_v57  ;;  %v3311_v57 = vld [vmem:[%s8617_s26] sm:$0x3]  ;;  %4951 = vmatprep.subr.bf16.mxu0 %v7112_v58  ;;  %v7184_v58 = vld [vmem:[#allocation23 + $0x164] ss:$16 sps:$4 sm:$0xff]  }
0x12fd   :  { %v4148_v27 = vpop.xlane.xlu1 %4147  ;;  %v4468_v60 = vrot.slane %v3311_v57, %v8067_v45 }
0x12fe   :  { %7360 = vpow2.f32 %v4151_v26  ;;  %v4150_v59 = vsub.f32 %v4142_v32, %v4148_v27  ;;  %v4464_v27 = vrot.slane %v3311_v57, %v8071_v47 }
0x1300   :  { %v4153_v36 = vmul.f32 1.442695, %v4150_v59 }
0x1302   :  { %7362 = vpow2.f32 %v4153_v36 }
0x130b   :  { %v7361_v46 = vpop.eup %7360 }
0x130c   :  { %v4155_v0 = vsel %vm1235_vm1, %v7361_v46, 0.0 }
0x130d   :  { %4156 = vadd.xlane.f32.xlu0 %v4155_v0 }
0x130f   :  { %v7363_v48 = vpop.eup %7362 }
0x1310   :  { %v4158_v50 = vsel %vm1235_vm1, %v7363_v48, 0.0 }
0x1311   :  { %4159 = vadd.xlane.f32.xlu1 %v4158_v50 }
0x1396   :  { %v4157_v19 = vpop.xlane.xlu0 %4156 }
0x1397   :  { %7364 = vrcp.f32 %v4157_v19  ;;  %v7121_v19 = vld [vmem:[#allocation23 + $0xcc] ss:$16 sps:$4 sm:$0xff]  }
0x139a   :  { %v4160_v41 = vpop.xlane.xlu1 %4159 }
0x139b   :  { %7366 = vrcp.f32 %v4160_v41  ;;  %v7116_v41 = vld [vmem:[#allocation23 + $0xc0] ss:$16 sps:$4 sm:$0xff]  }
0x13a4   :  { %v7365_v62 = vpop.eup %7364 }
0x13a5   :  { %v4163_v35 = vmul.f32 %v7365_v62, %v7361_v46  ;;  %v7124_v62 = vld [vmem:[#allocation23 + $0xa4] ss:$16 sps:$4 sm:$0xff]  }
0x13a8   :  { %v7367_v63 = vpop.eup %7366 }
0x13a9   :  { %v4164_v2 = vmul.f32 %v7367_v63, %v7363_v48  ;;  %v7122_v63 = vld [vmem:[#allocation23 + $0xa0] ss:$16 sps:$4 sm:$0xff]  }
0x13ab   :  { %v4165_v55 = vpack.c.bf16 %v4164_v2, %v4163_v35  ;;  %v7125_v35 = vld [vmem:[#allocation23 + $0xa8] ss:$16 sps:$4 sm:$0xff]   ;;  %v7130_v2 = vld [vmem:[#allocation23 + $0x84] ss:$16 sps:$4 sm:$0xff]  }
0x13ad   :  { %6466 = vmatmul.mubr.msk.bf16.vlgmr.msra.gmra.mxu1 %vm1235_vm1, %v4165_v55  ;;  %v7128_v55 = vld [vmem:[#allocation23 + $0x80] ss:$16 sps:$4 sm:$0xff]  }
0x13ae   :  { %4418 = vmatpush1.bf16.msra.mxu1 %v7062_v6  ;;  %4449 = vmatprep.mubr.bf16.mxu1 %v7778_v7  ;;  %v7080_v7 = vld [vmem:[#allocation21 + $0x10] ss:$8 sps:$4 sm:$0xff]   ;;  %v7133_v6 = vld [vmem:[#allocation23 + $0x8c] ss:$16 sps:$4 sm:$0xff]  }
0x13af   :  { %4419 = vmatprep.subr.bf16.mxu1 %v7067_v14  ;;  %v7131_v14 = vld [vmem:[#allocation23 + $0x88] ss:$16 sps:$4 sm:$0xff]  }
0x13b2   :  { %4420 = vmatpush1.bf16.msra.mxu1 %v7065_v28  ;;  %v7136_v28 = vld [vmem:[#allocation23 + $0x64] ss:$16 sps:$4 sm:$0xff]  }
0x13b3   :  { %4421 = vmatprep.subr.bf16.mxu1 %v7070_v8  ;;  %v7139_v8 = vld [vmem:[#allocation23 + $0x6c] ss:$16 sps:$4 sm:$0xff]  }
0x13b6   :  { %4422 = vmatpush1.bf16.msra.mxu1 %v7068_v52  ;;  %v7134_v52 = vld [vmem:[#allocation23 + $0x60] ss:$16 sps:$4 sm:$0xff]  }
0x13b7   :  { %4423 = vmatprep.subr.bf16.mxu1 %v7073_v25  ;;  %v7137_v25 = vld [vmem:[#allocation23 + $0x68] ss:$16 sps:$4 sm:$0xff]  }
0x13ba   :  { %4424 = vmatpush1.bf16.msra.mxu1 %v7071_v37  ;;  %v7142_v37 = vld [vmem:[#allocation23 + $0x44] ss:$16 sps:$4 sm:$0xff]  }
0x13bb   :  { %4425 = vmatprep.subr.bf16.mxu1 %v7076_v29  ;;  %v7145_v29 = vld [vmem:[#allocation23 + $0x4c] ss:$16 sps:$4 sm:$0xff]  }
0x13be   :  { %4426 = vmatpush1.bf16.msra.mxu1 %v7074_v31  ;;  %v7140_v31 = vld [vmem:[#allocation23 + $0x40] ss:$16 sps:$4 sm:$0xff]  }
0x13bf   :  { %4427 = vmatprep.subr.bf16.mxu1 %v7079_v10  ;;  %v7143_v10 = vld [vmem:[#allocation23 + $0x48] ss:$16 sps:$4 sm:$0xff]  }
0x13c2   :  { %4428 = vmatpush1.bf16.msra.mxu1 %v7077_v13  ;;  %v7148_v13 = vld [vmem:[#allocation23 + $0x24] ss:$16 sps:$4 sm:$0xff]  }
0x13c3   :  { %4429 = vmatprep.subr.bf16.mxu1 %v7082_v15  ;;  %v7151_v15 = vld [vmem:[#allocation23 + $0x2c] ss:$16 sps:$4 sm:$0xff]  }
0x13c6   :  { %4430 = vmatpush1.bf16.msra.mxu1 %v7080_v7  ;;  %v7146_v7 = vld [vmem:[#allocation23 + $0x20] ss:$16 sps:$4 sm:$0xff]  }
0x13c7   :  { %4431 = vmatprep.subr.bf16.mxu1 %v7085_v21  ;;  %v7149_v21 = vld [vmem:[#allocation23 + $0x28] ss:$16 sps:$4 sm:$0xff]  }
0x13ca   :  { %4432 = vmatpush1.bf16.msra.mxu1 %v7083_v56  ;;  %v7154_v56 = vld [vmem:[#allocation23 + $0x4] ss:$16 sps:$4 sm:$0xff]  }
0x13cd   :  { %4450 = vmatmul.mubr.bf16.vlgmr.msra.gmra.mxu1 %v4099_v9 }
0x146d   :  { %v4206_v1 = vpop.f32.mrf.mxu1 }
0x146f   :  { %v6467_v12 = vpop.f32.mrf.mxu1 }
0x1470   :  { %v7160_v12 = vld [vmem:[#allocation23 + $0x1e4] ss:$16 sps:$4 sm:$0xff]  }
0x1471   :  { %v4209_v32 = vpop.f32.mrf.mxu1 }
0x1472   :  { %v4213_v23 = vpack.c.bf16 %v4209_v32, %v4206_v1  ;;  %v7155_v1 = vld [vmem:[#allocation23 + $0x8] ss:$16 sps:$4 sm:$0xff]   ;;  %v7163_v32 = vld [vmem:[#allocation23 + $0x1ec] ss:$16 sps:$4 sm:$0xff]  }
0x1473   :  { %v6468_v11 = vpop.f32.mrf.mxu1 }
0x1474   :  { %4327 = vmatmul.mubr.bf16.vlgmr.msra.gmra.mxu0 %v4213_v23  ;;  %v7158_v23 = vld [vmem:[#allocation23 + $0x1e0] ss:$16 sps:$4 sm:$0xff]   ;;  %v7161_v11 = vld [vmem:[#allocation23 + $0x1e8] ss:$16 sps:$4 sm:$0xff]  }
0x148d   :  { %v4451_v24 = vpop.f32.mrf.mxu1 }
0x148f   :  { %v4453_v26 = vpop.f32.mrf.mxu1 }
0x1491   :  { %v4455_v18 = vpop.f32.mrf.mxu1 }
0x1493   :  { %v4457_v61 = vpop.f32.mrf.mxu1 }
0x1534   :  { %v4328_v59 = vpop.f32.mrf.mxu0 }
0x1535   :  { %v4452_v36 = vadd.f32 %v4451_v24, %v4328_v59 }
0x1536   :  { %v4330_v9 = vpop.f32.mrf.mxu0 }
0x1537   :  { %v4471_v46 = vadd.f32 %v4464_v27, %v4452_v36  ;;  %v4454_v0 = vadd.f32 %v4453_v26, %v4330_v9 }
0x1538   :  { %v4332_v48 = vpop.f32.mrf.mxu0 }
0x1539   :  { %v4472_v50 = vadd.f32 %v4468_v60, %v4454_v0  ;;  %v4456_v51 = vadd.f32 %v4455_v18, %v4332_v48  ;;  %v8466_v16 = vadd.f32 %v4471_v46, %v8378_v4  ;;  %v7110_v4 = vld [vmem:[#allocation23 + $0xe0] ss:$16 sps:$4 sm:$0xff]  }
0x153a   :  { %v4334_v42 = vpop.f32.mrf.mxu0  ;;  %4952 = vmatpush1.bf16.msra.mxu0 %v7110_v4  ;;  %v7181_v4 = vld [vmem:[#allocation23 + $0x18c] ss:$16 sps:$4 sm:$0xff]  }
0x153b   :  { %v4473_v33 = vadd.f32 %v4464_v27, %v4456_v51  ;;  %v4458_v30 = vadd.f32 %v4457_v61, %v4334_v42  ;;  %v8469_v39 = vadd.f32 %v4472_v50, %v8374_v43  ;;  %v7115_v43 = vld [vmem:[#allocation23 + $0xec] ss:$16 sps:$4 sm:$0xff]   ;;  %4953 = vmatprep.subr.bf16.mxu0 %v7118_v17  ;;  %v7166_v61 = vld [vmem:[#allocation23 + $0x1c4] ss:$16 sps:$4 sm:$0xff]   ;;  %v7185_v17 = vld [vmem:[#allocation23 + $0x168] ss:$16 sps:$4 sm:$0xff]  }
0x153c   :  { %4994 = vmatprep.subr.bf16.mxu1 %v7115_v43  ;;  %v7169_v42 = vld [vmem:[#allocation23 + $0x1cc] ss:$16 sps:$4 sm:$0xff]   ;;  %v7182_v43 = vld [vmem:[#allocation23 + $0x160] ss:$16 sps:$4 sm:$0xff]  }
0x153d   :  { %v4474_v38 = vadd.f32 %v4468_v60, %v4458_v30  ;;  %v4481_v3 = vadd.f32 %v8469_v39, %v8466_v16  ;;  %v8474_v53 = vadd.f32 %v4473_v33, %v8380_v40  ;;  %4995 = vmatpush1.bf16.msra.mxu1 %v7113_v20  ;;  %v7119_v40 = vld [vmem:[#allocation23 + $0xc8] ss:$16 sps:$4 sm:$0xff]   ;;  %v7164_v33 = vld [vmem:[#allocation23 + $0x1c0] ss:$16 sps:$4 sm:$0xff]   ;;  %v7187_v20 = vld [vmem:[#allocation23 + $0x16c] ss:$16 sps:$4 sm:$0xff]  }
0x153e   :  { %4996 = vmatprep.subr.bf16.mxu1 %v7121_v19  ;;  %4954 = vmatpush1.bf16.msra.mxu0 %v7116_v41  ;;  %v7167_v30 = vld [vmem:[#allocation23 + $0x1c8] ss:$16 sps:$4 sm:$0xff]   ;;  %v7190_v19 = vld [vmem:[#allocation23 + $0x144] ss:$16 sps:$4 sm:$0xff]   ;;  %v7193_v41 = vld [vmem:[#allocation23 + $0x14c] ss:$16 sps:$4 sm:$0xff]  }
0x153f   :  { %4482 = vadd.xlane.f32.xlu0 %v4481_v3  ;;  %v8477_v54 = vadd.f32 %v4474_v38, %v8376_v5  ;;  %v7127_v5 = vld [vmem:[#allocation23 + $0xac] ss:$16 sps:$4 sm:$0xff]   ;;  %4955 = vmatprep.subr.bf16.mxu0 %v7124_v62  ;;  %v7170_v38 = vld [vmem:[#allocation23 + $0x1a0] ss:$16 sps:$4 sm:$0xff]   ;;  %v7173_v3 = vld [vmem:[#allocation23 + $0x1a8] ss:$16 sps:$4 sm:$0xff]  }
0x1540   :  { %v7191_v62 = vld [vmem:[#allocation23 + $0x148] ss:$16 sps:$4 sm:$0xff]  }
0x1541   :  { %v4484_v34 = vadd.f32 %v8477_v54, %v8474_v53  ;;  %4997 = vmatpush1.bf16.msra.mxu1 %v7119_v40  ;;  %v7188_v40 = vld [vmem:[#allocation23 + $0x140] ss:$16 sps:$4 sm:$0xff]  }
0x1542   :  { %4998 = vmatprep.subr.bf16.mxu1 %v7127_v5  ;;  %4956 = vmatpush1.bf16.msra.mxu0 %v7122_v63  ;;  %v7196_v5 = vld [vmem:[#allocation23 + $0x124] ss:$16 sps:$4 sm:$0xff]   ;;  %v7199_v63 = vld [vmem:[#allocation23 + $0x12c] ss:$16 sps:$4 sm:$0xff]  }
0x1543   :  { %4485 = vadd.xlane.f32.xlu1 %v4484_v34  ;;  %4957 = vmatprep.subr.bf16.mxu0 %v7130_v2  ;;  %v7179_v34 = vld [vmem:[#allocation23 + $0x188] ss:$16 sps:$4 sm:$0xff]  }
0x1544   :  { %v7197_v2 = vld [vmem:[#allocation23 + $0x128] ss:$16 sps:$4 sm:$0xff]  }
0x1545   :  { %4999 = vmatpush1.bf16.msra.mxu1 %v7125_v35  ;;  %v7194_v35 = vld [vmem:[#allocation23 + $0x120] ss:$16 sps:$4 sm:$0xff]  }
0x1546   :  { %5000 = vmatprep.subr.bf16.mxu1 %v7133_v6  ;;  %4958 = vmatpush1.bf16.msra.mxu0 %v7128_v55  ;;  %v7202_v6 = vld [vmem:[#allocation23 + $0x104] ss:$16 sps:$4 sm:$0xff]   ;;  %v7205_v55 = vld [vmem:[#allocation23 + $0x10c] ss:$16 sps:$4 sm:$0xff]  }
0x1547   :  { %4959 = vmatprep.subr.bf16.mxu0 %v7136_v28  ;;  %v7203_v28 = vld [vmem:[#allocation23 + $0x108] ss:$16 sps:$4 sm:$0xff]  }
0x1549   :  { %5001 = vmatpush1.bf16.msra.mxu1 %v7131_v14  ;;  %v7200_v14 = vld [vmem:[#allocation23 + $0x100] ss:$16 sps:$4 sm:$0xff]  }
0x154a   :  { %5002 = vmatprep.subr.bf16.mxu1 %v7139_v8  ;;  %4960 = vmatpush1.bf16.msra.mxu0 %v7134_v52  ;;  %v7208_v8 = vld [vmem:[#allocation24 + $0x74] ss:$8 sps:$4 sm:$0xff]  }
0x154b   :  { %4961 = vmatprep.subr.bf16.mxu0 %v7142_v37  ;;  %v7211_v52 = vld [vmem:[#allocation24 + $0x174] ss:$8 sps:$4 sm:$0xff]  }
0x154d   :  { %5003 = vmatpush1.bf16.msra.mxu1 %v7137_v25 }
0x154e   :  { %5004 = vmatprep.subr.bf16.mxu1 %v7145_v29  ;;  %4962 = vmatpush1.bf16.msra.mxu0 %v7140_v31 }
0x154f   :  { %4963 = vmatprep.subr.bf16.mxu0 %v7148_v13 }
0x1551   :  { %5005 = vmatpush1.bf16.msra.mxu1 %v7143_v10 }
0x1552   :  { %5006 = vmatprep.subr.bf16.mxu1 %v7151_v15  ;;  %4964 = vmatpush1.bf16.msra.mxu0 %v7146_v7  ;;  %v4479_v15 = vld [vmem:[%s8618_s28] sm:$0x3] }
0x1553   :  { %4965 = vmatprep.subr.bf16.mxu0 %v7154_v56 }
0x1555   :  { %5007 = vmatpush1.bf16.msra.mxu1 %v7149_v21  ;;  %v4480_v21 = vld [vmem:[%s8619_s30] sm:$0x3] }
0x1556   :  { %5008 = vmatprep.subr.bf16.mxu1 %v7157_v22  ;;  %4966 = vmatpush1.bf16.msra.mxu0 %v7152_v49  ;;  %v4517_v22 = vrot.slane %v4479_v15, %v8071_v47  ;;  %v4521_v49 = vrot.slane %v4479_v15, %v8067_v45  ;;  %v7271_v15 = vld [vmem:[#allocation24 + $0x1d4] ss:$8 sps:$4 sm:$0xff]  }
0x1557   :  { %4967 = vmatprep.subr.bf16.mxu0 %v7160_v12 }
0x1559   :  { %5009 = vmatpush1.bf16.msra.mxu1 %v7155_v1 }
0x155a   :  { %5010 = vmatprep.subr.bf16.mxu1 %v7163_v32  ;;  %4968 = vmatpush2.bf16.msra.mxu0 %v7158_v23  ;;  %v4532_v32 = vrot.slane %v4480_v21, %v8071_v47  ;;  %v4536_v23 = vrot.slane %v4480_v21, %v8067_v45  ;;  %v7269_v21 = vld [vmem:[#allocation24 + $0x1d0] ss:$8 sps:$4 sm:$0xff]  }
0x155b   :  { %4969 = vmatprep.subr.bf16.mxu0 %v7166_v61  ;;  %v7217_v61 = vld [vmem:[#allocation24 + $0x164] ss:$8 sps:$4 sm:$0xff]  }
0x155d   :  { %5011 = vmatpush2.bf16.msra.mxu1 %v7161_v11 }
0x155e   :  { %5012 = vmatprep.subr.bf16.mxu1 %v7169_v42  ;;  %4970 = vmatpush2.bf16.msra.mxu0 %v7164_v33  ;;  %v7212_v42 = vld [vmem:[#allocation24 + $0x60] ss:$8 sps:$4 sm:$0xff]  }
0x155f   :  { %v7215_v33 = vld [vmem:[#allocation24 + $0x160] ss:$8 sps:$4 sm:$0xff]  }
0x1561   :  { %5013 = vmatpush2.bf16.msra.mxu1 %v7167_v30  ;;  %v7220_v30 = vld [vmem:[#allocation24 + $0x54] ss:$8 sps:$4 sm:$0xff]  }
0x15c8   :  { %v4483_v24 = vpop.xlane.xlu0 %4482 }
0x15c9   :  { %v4487_v57 = vmul.f32 0.00390625, %v4483_v24 }
0x15cb   :  { %v8482_v26 = vsub.f32 %v8466_v16, %v4487_v57  ;;  %v8485_v27 = vsub.f32 %v8469_v39, %v4487_v57  ;;  %v7172_v16 = vld [vmem:[#allocation23 + $0x1a4] ss:$16 sps:$4 sm:$0xff]   ;;  %v7175_v39 = vld [vmem:[#allocation23 + $0x1ac] ss:$16 sps:$4 sm:$0xff]  }
0x15cc   :  { %v4486_v59 = vpop.xlane.xlu1 %4485  ;;  %4971 = vmatprep.subr.bf16.mxu0 %v7172_v16  ;;  %5014 = vmatprep.subr.bf16.mxu1 %v7175_v39  ;;  %v7223_v16 = vld [vmem:[#allocation24 + $0x154] ss:$8 sps:$4 sm:$0xff]   ;;  %v7218_v39 = vld [vmem:[#allocation24 + $0x50] ss:$8 sps:$4 sm:$0xff]  }
0x15cd   :  { %v4488_v36 = vmul.f32 0.00390625, %v4486_v59  ;;  %v4493_v60 = vmul.f32 %v8482_v26, %v8482_v26  ;;  %v4494_v18 = vmul.f32 %v8485_v27, %v8485_v27  ;;  %4972 = vmatpush2.bf16.msra.mxu0 %v7170_v38  ;;  %5015 = vmatpush2.bf16.msra.mxu1 %v7173_v3  ;;  %v7221_v38 = vld [vmem:[#allocation24 + $0x150] ss:$8 sps:$4 sm:$0xff]   ;;  %v7226_v3 = vld [vmem:[#allocation24 + $0x44] ss:$8 sps:$4 sm:$0xff]  }
0x15ce   :  { %5016 = vmatprep.subr.bf16.mxu1 %v7181_v4  ;;  %v7232_v4 = vld [vmem:[#allocation24 + $0x34] ss:$8 sps:$4 sm:$0xff]  }
0x15cf   :  { %v8492_v9 = vsub.f32 %v8474_v53, %v4488_v36  ;;  %v8495_v46 = vsub.f32 %v8477_v54, %v4488_v36  ;;  %v4497_v0 = vadd.f32 %v4494_v18, %v4493_v60  ;;  %v7178_v53 = vld [vmem:[#allocation23 + $0x184] ss:$16 sps:$4 sm:$0xff]   ;;  %v7176_v54 = vld [vmem:[#allocation23 + $0x180] ss:$16 sps:$4 sm:$0xff]  }
0x15d0   :  { %4973 = vmatprep.subr.bf16.mxu0 %v7178_v53  ;;  %v7229_v53 = vld [vmem:[#allocation24 + $0x144] ss:$8 sps:$4 sm:$0xff]  }
0x15d1   :  { %4498 = vadd.xlane.f32.xlu0 %v4497_v0  ;;  %v4495_v48 = vmul.f32 %v8492_v9, %v8492_v9  ;;  %v4496_v50 = vmul.f32 %v8495_v46, %v8495_v46  ;;  %4974 = vmatpush2.bf16.msra.mxu0 %v7176_v54  ;;  %v7224_v54 = vld [vmem:[#allocation24 + $0x40] ss:$8 sps:$4 sm:$0xff]  }
0x15d2   :  { %5017 = vmatpush2.bf16.msra.mxu1 %v7179_v34  ;;  %4975 = vmatprep.subr.bf16.mxu0 %v7184_v58  ;;  %v7227_v34 = vld [vmem:[#allocation24 + $0x140] ss:$8 sps:$4 sm:$0xff]   ;;  %v7235_v58 = vld [vmem:[#allocation24 + $0x134] ss:$8 sps:$4 sm:$0xff]  }
0x15d3   :  { %v4500_v51 = vadd.f32 %v4496_v50, %v4495_v48  ;;  %5018 = vmatprep.subr.bf16.mxu1 %v7187_v20  ;;  %v7206_v50 = vld [vmem:[#allocation24 + $0x70] ss:$8 sps:$4 sm:$0xff]  }
0x15d4   :  { %v7230_v20 = vld [vmem:[#allocation24 + $0x30] ss:$8 sps:$4 sm:$0xff]  }
0x15d5   :  { %4501 = vadd.xlane.f32.xlu1 %v4500_v51  ;;  %4976 = vmatpush2.bf16.msra.mxu0 %v7182_v43  ;;  %v7209_v51 = vld [vmem:[#allocation24 + $0x170] ss:$8 sps:$4 sm:$0xff]  }
0x15d6   :  { %5019 = vmatpush2.bf16.msra.mxu1 %v7185_v17  ;;  %4977 = vmatprep.subr.bf16.mxu0 %v7190_v19  ;;  %v7233_v43 = vld [vmem:[#allocation24 + $0x130] ss:$8 sps:$4 sm:$0xff]   ;;  %v7238_v17 = vld [vmem:[#allocation24 + $0x24] ss:$8 sps:$4 sm:$0xff]  }
0x15d7   :  { %5020 = vmatprep.subr.bf16.mxu1 %v7193_v41  ;;  %v7241_v19 = vld [vmem:[#allocation24 + $0x124] ss:$8 sps:$4 sm:$0xff]   ;;  %v7236_v41 = vld [vmem:[#allocation24 + $0x20] ss:$8 sps:$4 sm:$0xff]  }
0x15d9   :  { %4978 = vmatpush2.bf16.msra.mxu0 %v7188_v40  ;;  %v7239_v40 = vld [vmem:[#allocation24 + $0x120] ss:$8 sps:$4 sm:$0xff]  }
0x15da   :  { %5021 = vmatpush2.bf16.msra.mxu1 %v7191_v62  ;;  %4979 = vmatprep.subr.bf16.mxu0 %v7196_v5  ;;  %v7244_v62 = vld [vmem:[#allocation24 + $0x14] ss:$8 sps:$4 sm:$0xff]  }
0x15db   :  { %5022 = vmatprep.subr.bf16.mxu1 %v7199_v63  ;;  %v7247_v5 = vld [vmem:[#allocation24 + $0x114] ss:$8 sps:$4 sm:$0xff]   ;;  %v7242_v63 = vld [vmem:[#allocation24 + $0x10] ss:$8 sps:$4 sm:$0xff]  }
0x15dd   :  { %4980 = vmatpush2.bf16.msra.mxu0 %v7194_v35  ;;  %v7245_v35 = vld [vmem:[#allocation24 + $0x110] ss:$8 sps:$4 sm:$0xff]  }
0x15de   :  { %5023 = vmatpush2.bf16.msra.mxu1 %v7197_v2  ;;  %4981 = vmatprep.subr.bf16.mxu0 %v7202_v6  ;;  %v7250_v2 = vld [vmem:[#allocation24 + $0x4] ss:$8 sps:$4 sm:$0xff]  }
0x15df   :  { %5024 = vmatprep.subr.bf16.mxu1 %v7205_v55  ;;  %v7253_v6 = vld [vmem:[#allocation24 + $0x104] ss:$8 sps:$4 sm:$0xff]   ;;  %v7248_v55 = vld [vmem:[#allocation24] ss:$8 sps:$4 sm:$0xff]  }
0x15e1   :  { %4982 = vmatpush2.bf16.msra.mxu0 %v7200_v14  ;;  %v7251_v14 = vld [vmem:[#allocation24 + $0x100] ss:$8 sps:$4 sm:$0xff]  }
0x15e2   :  { %5025 = vmatpush2.bf16.msra.mxu1 %v7203_v28  ;;  %5509 = vmatprep.subr.bf16.mxu0 %v7208_v8  ;;  %v7256_v28 = vld [vmem:[#allocation24 + $0xf4] ss:$8 sps:$4 sm:$0xff]  }
0x15e3   :  { %5552 = vmatprep.subr.bf16.mxu1 %v7211_v52  ;;  %v7259_v8 = vld [vmem:[#allocation24 + $0x1f4] ss:$8 sps:$4 sm:$0xff]   ;;  %v7254_v52 = vld [vmem:[#allocation24 + $0xf0] ss:$8 sps:$4 sm:$0xff]  }
0x165a   :  { %v4499_v25 = vpop.xlane.xlu0 %4498 }
0x165b   :  { %v4503_v37 = vmul.f32 0.00390625, %v4499_v25  ;;  %v7257_v25 = vld [vmem:[#allocation24 + $0x1f0] ss:$8 sps:$4 sm:$0xff]  }
0x165d   :  { %v4505_v29 = vadd.f32 1e-05, %v4503_v37  ;;  %v7262_v37 = vld [vmem:[#allocation24 + $0xe4] ss:$8 sps:$4 sm:$0xff]  }
0x165e   :  { %v4502_v31 = vpop.xlane.xlu1 %4501 }
0x165f   :  { %7368 = vrsqrt.f32 %v4505_v29  ;;  %v4504_v10 = vmul.f32 0.00390625, %v4502_v31  ;;  %v7265_v29 = vld [vmem:[#allocation24 + $0x1e4] ss:$8 sps:$4 sm:$0xff]   ;;  %v7260_v31 = vld [vmem:[#allocation24 + $0xe0] ss:$8 sps:$4 sm:$0xff]  }
0x1661   :  { %v4506_v13 = vadd.f32 1e-05, %v4504_v10  ;;  %v7263_v10 = vld [vmem:[#allocation24 + $0x1e0] ss:$8 sps:$4 sm:$0xff]  }
0x1663   :  { %7370 = vrsqrt.f32 %v4506_v13  ;;  %v7268_v13 = vld [vmem:[#allocation24 + $0xd4] ss:$8 sps:$4 sm:$0xff]  }
0x166c   :  { %v7369_v7 = vpop.eup %7368 }
0x166d   :  { %v4510_v56 = vmul.f32 %v7369_v7, %v8485_v27  ;;  %v4509_v1 = vmul.f32 %v7369_v7, %v8482_v26  ;;  %v7266_v7 = vld [vmem:[#allocation24 + $0xd0] ss:$8 sps:$4 sm:$0xff]  }
0x166f   :  { %v4525_v24 = vmul.f32 %v4521_v49, %v4510_v56  ;;  %v4524_v59 = vmul.f32 %v4517_v22, %v4509_v1  ;;  %v7272_v56 = vld [vmem:[#allocation24 + $0xc0] ss:$8 sps:$4 sm:$0xff]   ;;  %v7277_v1 = vld [vmem:[#allocation24 + $0x1c4] ss:$8 sps:$4 sm:$0xff]  }
0x1670   :  { %v7371_v12 = vpop.eup %7370 }
0x1671   :  { %v4512_v11 = vmul.f32 %v7371_v12, %v8495_v46  ;;  %v4511_v57 = vmul.f32 %v7371_v12, %v8492_v9  ;;  %v8511_v27 = vadd.f32 %v4536_v23, %v4525_v24  ;;  %v8515_v0 = vadd.f32 %v4532_v32, %v4524_v59  ;;  %v7214_v9 = vld [vmem:[#allocation24 + $0x64] ss:$8 sps:$4 sm:$0xff]   ;;  %v7280_v12 = vld [vmem:[#allocation24 + $0xb4] ss:$8 sps:$4 sm:$0xff]   ;;  %v7284_v59 = vld [vmem:[#allocation24 + $0xa0] ss:$8 sps:$4 sm:$0xff]  }
0x1672   :  { %v7286_v24 = vld [vmem:[#allocation24 + $0xa4] ss:$8 sps:$4 sm:$0xff]  }
0x1673   :  { %v4527_v36 = vmul.f32 %v4521_v49, %v4512_v11  ;;  %v4526_v60 = vmul.f32 %v4517_v22, %v4511_v57  ;;  %v7274_v22 = vld [vmem:[#allocation24 + $0xc4] ss:$8 sps:$4 sm:$0xff]   ;;  %v7275_v49 = vld [vmem:[#allocation24 + $0x1c0] ss:$8 sps:$4 sm:$0xff]   ;;  %v7281_v11 = vld [vmem:[#allocation24 + $0x1b0] ss:$8 sps:$4 sm:$0xff]  }
0x1674   :  { %v7289_v57 = vld [vmem:[#allocation24 + $0x1a4] ss:$8 sps:$4 sm:$0xff]  }
0x1675   :  { %v8513_v18 = vadd.f32 %v4536_v23, %v4527_v36  ;;  %v8517_v26 = vadd.f32 %v4532_v32, %v4526_v60  ;;  %v7283_v32 = vld [vmem:[#allocation24 + $0x1b4] ss:$8 sps:$4 sm:$0xff]   ;;  %v7278_v23 = vld [vmem:[#allocation24 + $0xb0] ss:$8 sps:$4 sm:$0xff]   ;;  %v7287_v36 = vld [vmem:[#allocation24 + $0x1a0] ss:$8 sps:$4 sm:$0xff]  }
0x1676   :  { %v7292_v60 = vld [vmem:[#allocation24 + $0x94] ss:$8 sps:$4 sm:$0xff]  }
0x1677   :  { %v4544_v48 = vpack.c.bf16 %v8513_v18, %v8511_v27  ;;  %v4543_v46 = vpack.c.bf16 %v8517_v26, %v8515_v0 }
0x1679   :  { %4983 = vmatprep.mubr.bf16.mxu0 %v4544_v48  ;;  %5026 = vmatprep.mubr.bf16.mxu1 %v4544_v48  ;;  %v7295_v48 = vld [vmem:[#allocation24 + $0x194] ss:$8 sps:$4 sm:$0xff]  }
0x167a   :  { %4984 = vmatmul.mubr.bf16.vlgmr.msra.gmra.mxu0 %v4543_v46  ;;  %5027 = vmatmul.mubr.bf16.vlgmr.msra.gmra.mxu1 %v4543_v46  ;;  %v7290_v46 = vld [vmem:[#allocation24 + $0x90] ss:$8 sps:$4 sm:$0xff]  }
0x167b   :  { %5510 = vmatpush1.bf16.msra.mxu0 %v7206_v50  ;;  %5553 = vmatpush1.bf16.msra.mxu1 %v7209_v51  ;;  %v7293_v50 = vld [vmem:[#allocation24 + $0x190] ss:$8 sps:$4 sm:$0xff]   ;;  %v7298_v51 = vld [vmem:[#allocation24 + $0x84] ss:$8 sps:$4 sm:$0xff]  }
0x167c   :  { %5511 = vmatprep.subr.bf16.mxu0 %v7214_v9  ;;  %5554 = vmatprep.subr.bf16.mxu1 %v7217_v61  ;;  %v7301_v9 = vld [vmem:[#allocation24 + $0x184] ss:$8 sps:$4 sm:$0xff]   ;;  %v7296_v61 = vld [vmem:[#allocation24 + $0x80] ss:$8 sps:$4 sm:$0xff]  }
0x167f   :  { %5512 = vmatpush1.bf16.msra.mxu0 %v7212_v42  ;;  %5555 = vmatpush1.bf16.msra.mxu1 %v7215_v33  ;;  %v7299_v42 = vld [vmem:[#allocation24 + $0x180] ss:$8 sps:$4 sm:$0xff]   ;;  %v4621_v33 = vsub.s32 2, %v8064_v44 }
0x1680   :  { %5513 = vmatprep.subr.bf16.mxu0 %v7220_v30  ;;  %5556 = vmatprep.subr.bf16.mxu1 %v7223_v16  ;;  %v4609_v30 = vld [vmem:[%s8620_s27] sm:$0xf]  ;;  %v4625_v16 = vsub.s32 3, %v8064_v44 }
0x1683   :  { %5514 = vmatpush1.bf16.msra.mxu0 %v7218_v39  ;;  %5557 = vmatpush1.bf16.msra.mxu1 %v7221_v38  ;;  %v4614_v39 = vrot.slane %v4609_v30, %v8071_v47  ;;  %v4622_v38 = vrot.slane %v4609_v30, %v4621_v33 }
0x1684   :  { %5515 = vmatprep.subr.bf16.mxu0 %v7226_v3  ;;  %5558 = vmatprep.subr.bf16.mxu1 %v7229_v53  ;;  %v4618_v3 = vrot.slane %v4609_v30, %v8067_v45  ;;  %v4626_v53 = vrot.slane %v4609_v30, %v4625_v16 }
0x1687   :  { %5516 = vmatpush1.bf16.msra.mxu0 %v7224_v54  ;;  %5559 = vmatpush1.bf16.msra.mxu1 %v7227_v34 }
0x1688   :  { %5517 = vmatprep.subr.bf16.mxu0 %v7232_v4  ;;  %5560 = vmatprep.subr.bf16.mxu1 %v7235_v58 }
0x168b   :  { %5518 = vmatpush1.bf16.msra.mxu0 %v7230_v20  ;;  %5561 = vmatpush1.bf16.msra.mxu1 %v7233_v43 }
0x168c   :  { %5519 = vmatprep.subr.bf16.mxu0 %v7238_v17  ;;  %5562 = vmatprep.subr.bf16.mxu1 %v7241_v19 }
0x168f   :  { %5520 = vmatpush1.bf16.msra.mxu0 %v7236_v41  ;;  %5563 = vmatpush1.bf16.msra.mxu1 %v7239_v40 }
0x1690   :  { %5521 = vmatprep.subr.bf16.mxu0 %v7244_v62  ;;  %5564 = vmatprep.subr.bf16.mxu1 %v7247_v5 }
0x1693   :  { %5522 = vmatpush1.bf16.msra.mxu0 %v7242_v63  ;;  %5565 = vmatpush1.bf16.msra.mxu1 %v7245_v35 }
0x1694   :  { %5523 = vmatprep.subr.bf16.mxu0 %v7250_v2  ;;  %5566 = vmatprep.subr.bf16.mxu1 %v7253_v6 }
0x1697   :  { %5524 = vmatpush1.bf16.msra.mxu0 %v7248_v55  ;;  %5567 = vmatpush1.bf16.msra.mxu1 %v7251_v14 }
0x1698   :  { %5525 = vmatprep.subr.bf16.mxu0 %v7256_v28  ;;  %5568 = vmatprep.subr.bf16.mxu1 %v7259_v8 }
0x169b   :  { %5526 = vmatpush2.bf16.msra.mxu0 %v7254_v52  ;;  %5569 = vmatpush2.bf16.msra.mxu1 %v7257_v25 }
0x169c   :  { %5527 = vmatprep.subr.bf16.mxu0 %v7262_v37  ;;  %5570 = vmatprep.subr.bf16.mxu1 %v7265_v29 }
0x169f   :  { %5528 = vmatpush2.bf16.msra.mxu0 %v7260_v31  ;;  %5571 = vmatpush2.bf16.msra.mxu1 %v7263_v10 }
0x16a0   :  { %5529 = vmatprep.subr.bf16.mxu0 %v7268_v13  ;;  %5572 = vmatprep.subr.bf16.mxu1 %v7271_v15 }
0x16a3   :  { %5530 = vmatpush2.bf16.msra.mxu0 %v7266_v7  ;;  %5573 = vmatpush2.bf16.msra.mxu1 %v7269_v21 }
0x16a4   :  { %5531 = vmatprep.subr.bf16.mxu0 %v7274_v22  ;;  %5574 = vmatprep.subr.bf16.mxu1 %v7277_v1 }
0x16a7   :  { %5532 = vmatpush2.bf16.msra.mxu0 %v7272_v56  ;;  %5575 = vmatpush2.bf16.msra.mxu1 %v7275_v49 }
0x16a8   :  { %5533 = vmatprep.subr.bf16.mxu0 %v7280_v12  ;;  %5576 = vmatprep.subr.bf16.mxu1 %v7283_v32 }
0x16ab   :  { %5534 = vmatpush2.bf16.msra.mxu0 %v7278_v23  ;;  %5577 = vmatpush2.bf16.msra.mxu1 %v7281_v11 }
0x16ac   :  { %5535 = vmatprep.subr.bf16.mxu0 %v7286_v24  ;;  %5578 = vmatprep.subr.bf16.mxu1 %v7289_v57 }
0x16af   :  { %5536 = vmatpush2.bf16.msra.mxu0 %v7284_v59  ;;  %5579 = vmatpush2.bf16.msra.mxu1 %v7287_v36 }
0x16b0   :  { %5537 = vmatprep.subr.bf16.mxu0 %v7292_v60  ;;  %5580 = vmatprep.subr.bf16.mxu1 %v7295_v48 }
0x16b3   :  { %5538 = vmatpush2.bf16.msra.mxu0 %v7290_v46  ;;  %5581 = vmatpush2.bf16.msra.mxu1 %v7293_v50 }
0x16b4   :  { %5539 = vmatprep.subr.bf16.mxu0 %v7298_v51  ;;  %5582 = vmatprep.subr.bf16.mxu1 %v7301_v9 }
0x16b7   :  { %5540 = vmatpush2.bf16.msra.mxu0 %v7296_v61  ;;  %5583 = vmatpush2.bf16.msra.mxu1 %v7299_v42 }
0x173a   :  { %v4985_v54 = vpop.f32.mrf.mxu0  ;;  %v5028_v34 = vpop.f32.mrf.mxu1 }
0x173b   :  { %v8528_v4 = vadd.f32 %v4985_v54, %v4614_v39  ;;  %v8530_v58 = vadd.f32 %v5028_v34, %v4622_v38 }
0x173c   :  { %v4987_v20 = vpop.f32.mrf.mxu0  ;;  %v5030_v43 = vpop.f32.mrf.mxu1 }
0x173d   :  { %v5045_v17 = vmul.f32 0.044715, %v8528_v4  ;;  %v5047_v19 = vmul.f32 0.044715, %v8530_v58  ;;  %v4988_v41 = vadd.f32 %v4987_v20, %v4618_v3  ;;  %v8534_v44 = vadd.f32 %v5030_v43, %v4626_v53 }
0x173e   :  { %v4989_v40 = vpop.f32.mrf.mxu0  ;;  %v5032_v62 = vpop.f32.mrf.mxu1 }
0x173f   :  { %v5053_v5 = vmul.f32 %v5045_v17, %v8528_v4  ;;  %v5055_v63 = vmul.f32 %v5047_v19, %v8530_v58  ;;  %v5046_v35 = vmul.f32 0.044715, %v4988_v41  ;;  %v5048_v2 = vmul.f32 0.044715, %v8534_v44 }
0x1740   :  { %v4990_v6 = vadd.f32 %v4989_v40, %v4614_v39  ;;  %v8539_v55 = vadd.f32 %v5032_v62, %v4622_v38  ;;  %v4991_v14 = vpop.f32.mrf.mxu0  ;;  %v5034_v28 = vpop.f32.mrf.mxu1  ;;  %v5038_v17 = vmul.f32 0.5, %v4988_v41  ;;  %v5037_v40 = vmul.f32 0.5, %v8528_v4 }
0x1741   :  { %v5061_v8 = vmul.f32 %v5053_v5, %v8528_v4  ;;  %v5063_v52 = vmul.f32 %v5055_v63, %v8530_v58  ;;  %v5054_v25 = vmul.f32 %v5046_v35, %v4988_v41  ;;  %v5056_v37 = vmul.f32 %v5048_v2, %v8534_v44 }
0x1742   :  { %v5049_v29 = vmul.f32 0.044715, %v4990_v6  ;;  %v5051_v31 = vmul.f32 0.044715, %v8539_v55  ;;  %v4992_v10 = vadd.f32 %v4991_v14, %v4618_v3  ;;  %v5035_v13 = vadd.f32 %v5034_v28, %v4626_v53 }
0x1743   :  { %v5069_v15 = vadd.f32 %v5061_v8, %v8528_v4  ;;  %v5071_v7 = vadd.f32 %v5063_v52, %v8530_v58  ;;  %v5062_v21 = vmul.f32 %v5054_v25, %v4988_v41  ;;  %v5064_v56 = vmul.f32 %v5056_v37, %v8534_v44 }
0x1744   :  { %v5057_v22 = vmul.f32 %v5049_v29, %v4990_v6  ;;  %v5059_v49 = vmul.f32 %v5051_v31, %v8539_v55  ;;  %v5050_v1 = vmul.f32 0.044715, %v4992_v10  ;;  %v5052_v12 = vmul.f32 0.044715, %v5035_v13 }
0x1745   :  { %v5077_v32 = vmul.f32 0.7978846, %v5069_v15  ;;  %v5079_v23 = vmul.f32 0.7978846, %v5071_v7  ;;  %v5070_v11 = vadd.f32 %v5062_v21, %v4988_v41  ;;  %v5072_v48 = vadd.f32 %v5064_v56, %v8534_v44 }
0x1746   :  { %v5065_v24 = vmul.f32 %v5057_v22, %v4990_v6  ;;  %v5067_v57 = vmul.f32 %v5059_v49, %v8539_v55  ;;  %v5058_v59 = vmul.f32 %v5050_v1, %v4992_v10  ;;  %v5060_v36 = vmul.f32 %v5052_v12, %v5035_v13 }
0x1747   :  { %v5078_v60 = vmul.f32 0.7978846, %v5070_v11  ;;  %7372 = vtanh.f32 %v5077_v32  ;;  %v5080_v61 = vmul.f32 0.7978846, %v5072_v48  ;;  %v5041_v35 = vmul.f32 0.5, %v4990_v6 }
0x1748   :  { %v5073_v46 = vadd.f32 %v5065_v24, %v4990_v6  ;;  %v5075_v50 = vadd.f32 %v5067_v57, %v8539_v55  ;;  %v5066_v51 = vmul.f32 %v5058_v59, %v4992_v10  ;;  %7374 = vtanh.f32 %v5079_v23 }
0x1749   :  { %v5068_v9 = vmul.f32 %v5060_v36, %v5035_v13  ;;  %7376 = vtanh.f32 %v5078_v60  ;;  %v5042_v8 = vmul.f32 0.5, %v4992_v10  ;;  %v5043_v25 = vmul.f32 0.5, %v8539_v55 }
0x174a   :  { %v5081_v42 = vmul.f32 0.7978846, %v5073_v46  ;;  %v5083_v33 = vmul.f32 0.7978846, %v5075_v50  ;;  %v5074_v30 = vadd.f32 %v5066_v51, %v4992_v10  ;;  %7378 = vtanh.f32 %v5080_v61 }
0x174b   :  { %v5076_v16 = vadd.f32 %v5068_v9, %v5035_v13  ;;  %v5040_v29 = vmul.f32 0.5, %v8534_v44  ;;  %v5044_v31 = vmul.f32 0.5, %v5035_v13  ;;  %v5039_v21 = vmul.f32 0.5, %v8530_v58  ;;  %v5177_v44 = vld [vmem:[%s8621_s1] sm:$0x3] }
0x174c   :  { %7380 = vtanh.f32 %v5081_v42  ;;  %v5082_v39 = vmul.f32 0.7978846, %v5074_v30  ;;  %v5182_v13 = vrot.slane %v5177_v44, %v8071_v47  ;;  %v5186_v23 = vrot.slane %v5177_v44, %v8067_v45 }
0x174d   :  { %7382 = vtanh.f32 %v5083_v33  ;;  %v5084_v38 = vmul.f32 0.7978846, %v5076_v16 }
0x174e   :  { %7384 = vtanh.f32 %v5082_v39 }
0x174f   :  { %7386 = vtanh.f32 %v5084_v38 }
0x1754   :  { %v7373_v3 = vpop.eup %7372 }
0x1755   :  { %v7375_v53 = vpop.eup %7374  ;;  %v5093_v2 = vadd.f32 1.0, %v7373_v3 }
0x1756   :  { %v7377_v54 = vpop.eup %7376  ;;  %v5095_v37 = vadd.f32 1.0, %v7375_v53 }
0x1757   :  { %v7379_v34 = vpop.eup %7378  ;;  %v5094_v19 = vadd.f32 1.0, %v7377_v54  ;;  %v5101_v49 = vmul.f32 %v5093_v2, %v5037_v40 }
0x1758   :  { %v5096_v63 = vadd.f32 1.0, %v7379_v34  ;;  %v5103_v10 = vmul.f32 %v5095_v37, %v5039_v21 }
0x1759   :  { %v7381_v20 = vpop.eup %7380  ;;  %v5102_v7 = vmul.f32 %v5094_v19, %v5038_v17 }
0x175a   :  { %v7383_v43 = vpop.eup %7382  ;;  %v5097_v62 = vadd.f32 1.0, %v7381_v20  ;;  %v5104_v6 = vmul.f32 %v5096_v63, %v5040_v29 }
0x175b   :  { %v7385_v5 = vpop.eup %7384  ;;  %v5099_v14 = vadd.f32 1.0, %v7383_v43 }
0x175c   :  { %v7387_v28 = vpop.eup %7386  ;;  %v5098_v52 = vadd.f32 1.0, %v7385_v5  ;;  %v5105_v41 = vmul.f32 %v5097_v62, %v5041_v35 }
0x175d   :  { %v5100_v15 = vadd.f32 1.0, %v7387_v28  ;;  %v5107_v56 = vmul.f32 %v5099_v14, %v5043_v25  ;;  %v5664_v28 = vld [vmem:[#allocation2] sm:$0x1] }
0x175e   :  { %v5106_v4 = vmul.f32 %v5098_v52, %v5042_v8  ;;  %v5109_v32 = vpack.c.bf16 %v5105_v41, %v5101_v49  ;;  %v5599_v41 = vld [vmem:[%s8622_s2] sm:$0x3] }
0x175f   :  { %v5108_v22 = vmul.f32 %v5100_v15, %v5044_v31  ;;  %v5111_v55 = vpack.c.bf16 %v5107_v56, %v5103_v10 }
0x1760   :  { %v5110_v1 = vpack.c.bf16 %v5106_v4, %v5102_v7  ;;  %v5600_v7 = vld [vmem:[%s7975_s4] sm:$0x3]  ;;  %v5641_v4 = vrot.slane %v5599_v41, %v8067_v45 }
0x1761   :  { %v5112_v12 = vpack.c.bf16 %v5108_v22, %v5104_v6  ;;  %v5637_v22 = vrot.slane %v5599_v41, %v8071_v47 }
0x1762   :  { %5541 = vmatprep.mubr.bf16.mxu0 %v5110_v1  ;;  %v5652_v1 = vrot.slane %v5600_v7, %v8071_v47 }
0x1763   :  { %5584 = vmatprep.mubr.bf16.mxu1 %v5112_v12  ;;  %5542 = vmatmul.mubr.bf16.vlgmr.msra.gmra.mxu0 %v5109_v32  ;;  %v5656_v32 = vrot.slane %v5600_v7, %v8067_v45 }
0x1764   :  { %5585 = vmatmul.mubr.bf16.vlgmr.msra.gmra.mxu1 %v5111_v55 }
0x1823   :  { %v5543_v11 = vpop.f32.mrf.mxu0 }
0x1824   :  { %v5544_v58 = vadd.f32 %v5543_v11, %v5182_v13  ;;  %v5586_v24 = vpop.f32.mrf.mxu1 }
0x1825   :  { %v5545_v57 = vpop.f32.mrf.mxu0 }
0x1826   :  { %v5587_v59 = vadd.f32 %v5586_v24, %v5544_v58  ;;  %v5546_v36 = vadd.f32 %v5545_v57, %v5186_v23  ;;  %v5588_v60 = vpop.f32.mrf.mxu1 }
0x1827   :  { %v5547_v48 = vpop.f32.mrf.mxu0 }
0x1828   :  { %v5589_v46 = vadd.f32 %v5588_v60, %v5546_v36  ;;  %v5548_v50 = vadd.f32 %v5547_v48, %v5182_v13  ;;  %v5590_v51 = vpop.f32.mrf.mxu1  ;;  %v5595_v61 = vadd.f32 %v5587_v59, %v8515_v0 }
0x1829   :  { %v5549_v9 = vpop.f32.mrf.mxu0 }
0x182a   :  { %v5596_v42 = vadd.f32 %v5589_v46, %v8511_v27  ;;  %v5591_v33 = vadd.f32 %v5590_v51, %v5548_v50  ;;  %v5550_v30 = vadd.f32 %v5549_v9, %v5186_v23  ;;  %v5592_v16 = vpop.f32.mrf.mxu1 }
0x182c   :  { %v5593_v39 = vadd.f32 %v5592_v16, %v5550_v30  ;;  %v5601_v38 = vadd.f32 %v5596_v42, %v5595_v61  ;;  %v5597_v3 = vadd.f32 %v5591_v33, %v8517_v26 }
0x182e   :  { %v5598_v53 = vadd.f32 %v5593_v39, %v8513_v18  ;;  %5602 = vadd.xlane.f32.xlu1 %v5601_v38  ;;  %v5663_v18 = vld [vmem:[%s7980_s5] sm:$0x3]  ;;  %s7781_s5 = smov [#allocation26]  }
0x182f   :  { %v5682_v14 = vrot.slane %v5663_v18, %v8067_v45  ;;  %v5678_v57 = vrot.slane %v5663_v18, %v8071_v47  ;;  %s5769_s4 = sshll.u32 %s7781_s5, 4  ;;  %s5770_s4 = int_to_ptr.vmem [resolvable:$true] %s5769_s4 }
0x1830   :  { %v5604_v54 = vadd.f32 %v5598_v53, %v5597_v3  ;;  %s7682_s6 = scalar_lea.vmem %s5770_s4, 16  ;;  %s7686_s12 = scalar_lea.vmem %s5770_s4, 32 }
0x1831   :  { %5749 = vmatprep.mubr.f32.mxu0 %v5682_v14  ;;  %p7683_p0 = scmp.ne.s32.totalorder %s5770_s4, %s7682_s6  ;;  %p7687_p1 = scmp.lt.s32.totalorder %s5770_s4, %s5770_s4 }
0x1832   :  { %5605 = vadd.xlane.f32.xlu0 %v5604_v54  ;;  %p7688_p2 = scmp.lt.s32.totalorder %s7686_s12, %s7682_s6 }
0x1834   :  { %p7689_p3 = por %p7688_p2, %p7687_p1 }
0x1836   :  { %p7690_p4 = pnand %p7689_p3, %p7683_p0 }
0x18b7   :  { %v5603_v34 = vpop.xlane.xlu1 %5602 }
0x18b8   :  { %v5607_v20 = vmul.f32 0.00390625, %v5603_v34 }
0x18ba   :  { %v5609_v43 = vsub.f32 %v5595_v61, %v5607_v20  ;;  %v5610_v17 = vsub.f32 %v5596_v42, %v5607_v20 }
0x18bb   :  { %v5606_v0 = vpop.xlane.xlu0 %5605 }
0x18bc   :  { %v5608_v19 = vmul.f32 0.00390625, %v5606_v0  ;;  %v5613_v27 = vmul.f32 %v5609_v43, %v5609_v43  ;;  %v5614_v40 = vmul.f32 %v5610_v17, %v5610_v17 }
0x18be   :  { %v5611_v62 = vsub.f32 %v5597_v3, %v5608_v19  ;;  %v5612_v5 = vsub.f32 %v5598_v53, %v5608_v19  ;;  %v5617_v63 = vadd.f32 %v5614_v40, %v5613_v27 }
0x18c0   :  { %5618 = vadd.xlane.f32.xlu1 %v5617_v63  ;;  %v5615_v35 = vmul.f32 %v5611_v62, %v5611_v62  ;;  %v5616_v26 = vmul.f32 %v5612_v5, %v5612_v5 }
0x18c2   :  { %v5620_v2 = vadd.f32 %v5616_v26, %v5615_v35 }
0x18c4   :  { %5621 = vadd.xlane.f32.xlu0 %v5620_v2 }
0x18da   :  { %5667 = vperm.xlu0 %6533, %v5664_v28  }
0x1949   :  { %v5619_v8 = vpop.xlane.xlu1 %5618 }
0x194a   :  { %v5623_v52 = vmul.f32 0.00390625, %v5619_v8 }
0x194c   :  { %v5625_v25 = vadd.f32 1e-05, %v5623_v52 }
0x194d   :  { %v5622_v37 = vpop.xlane.xlu0 %5621 }
0x194e   :  { %7388 = vrsqrt.f32 %v5625_v25  ;;  %v5624_v29 = vmul.f32 0.00390625, %v5622_v37 }
0x1950   :  { %v5626_v31 = vadd.f32 1e-05, %v5624_v29 }
0x1952   :  { %7390 = vrsqrt.f32 %v5626_v31 }
0x1955   :  { %v5668_v59 = vpop.permute.xlu0 %5667 }
0x1956   :  { %v5673_v36 = vrot.slane %v5668_v59, %v8071_v47 }
0x195b   :  { %v7389_v15 = vpop.eup %7388 }
0x195c   :  { %v5630_v21 = vmul.f32 %v7389_v15, %v5610_v17  ;;  %v5629_v10 = vmul.f32 %v7389_v15, %v5609_v43 }
0x195e   :  { %v5645_v44 = vmul.f32 %v5641_v4, %v5630_v21  ;;  %v5644_v11 = vmul.f32 %v5637_v22, %v5629_v10 }
0x195f   :  { %v7391_v56 = vpop.eup %7390 }
0x1960   :  { %v5632_v6 = vmul.f32 %v7391_v56, %v5612_v5  ;;  %v5631_v49 = vmul.f32 %v7391_v56, %v5611_v62  ;;  %v5660_v58 = vadd.f32 %v5656_v32, %v5645_v44  ;;  %v5659_v24 = vadd.f32 %v5652_v1, %v5644_v11 }
0x1962   :  { %v5647_v12 = vmul.f32 %v5641_v4, %v5632_v6  ;;  %v5646_v55 = vmul.f32 %v5637_v22, %v5631_v49 }
0x1964   :  { %v5662_v13 = vadd.f32 %v5656_v32, %v5647_v12  ;;  %v5661_v23 = vadd.f32 %v5652_v1, %v5646_v55 }
0x1966   :  { %5713 = vmatprep.subr.mxu0 %v5662_v13 }
0x1967   :  { %5714 = vmatpush1.xpose.msra.mxu0 %v5661_v23 }
0x1968   :  { %5715 = vmatprep.subr.mxu0 %v5660_v58 }
0x196b   :  { %5716 = vmatpush1.xpose.msra.mxu0 %v5659_v24 }
0x196e   :  { %5750 = vmatmul.mubr.f32.vlgmr.msra.gmra.mxu0 %v5678_v57 }
0x1a2e   :  { %v5751_v60 = vpop.f32.mrf.mxu0 }
0x1a2f   :  { %v5752_v48 = vadd.f32 %v5751_v60, %v5673_v36 }
0x1a30   :  { %v5753_v45 = vpop.f32.mrf.mxu0 }
0x1a31   :  { %v5755_v46 = vsub.f32 0.0, %v5752_v48 }
0x1a33   :  { %v5756_v50 = vmul.f32 1.442695, %v5755_v46 }
0x1a35   :  { %7392 = vpow2.f32 %v5756_v50 }
0x1a42   :  { %v7393_v51 = vpop.eup %7392 }
0x1a43   :  { %v5758_v9 = vadd.f32 1.0, %v7393_v51 }
0x1a45   :  { %7394 = vrcp.f32 %v5758_v9 }
0x1a52   :  { %v7395_v61 = vpop.eup %7394 }
0x1a53   :  { %5762 = vst.msk [vmem:[#allocation26] sm:$0x1] %vm5761_vm4, %v7395_v61 }
0x1a54   :  { %7693 = shalt.err (!%p7690_p4)
}
0x1a55   :  { %5772 = dma.vmem_to_hbm [thread:$0]  %s5770_s4, 16, %s7988_s17, [#allocation5]  }
0x1a56   :  { %7718 = dma.done.wait [#allocation5], 16  }
0x1a57   :  { %7719 = vsyncadd [#allocation5], 4294967280 }
0x1a58   :  { %5776 = vsyncpa [#allocation4], 1 }
0x1a59   :  { %5777 = vsyncpa [#allocation7], 1 }
0x1a5a   :  { %5778 = vsyncpa [#allocation10], 1 }
0x1a5b   :  { %5779 = vsyncpa [#allocation13], 1 }
0x1a5c   :  { %5780 = vsyncpa [#allocation16], 1 }
0x1a5d   :  { %5781 = vsyncpa [#allocation19], 1 }
0x1a5e   :  { %5782 = vsyncpa [#allocation22], 1 }
0x1a5f   :  { %5783 = vsyncpa [#allocation25], 1 }
0x1a60   :  { %5784 = vsyncpa [#allocation5], 1 }

</bundles_post_ra>
